<compile_context>
chip_gen: v7x
topology: tpu7x:2x2x1
jax: 0.10.0
libtpu: 0.0.40
codegen_flags: <defaults>
</compile_context>

<pallas_src>
import jax
import jax.numpy as jnp
from jax.experimental import pallas as pl
from jax.experimental.pallas import tpu as pltpu

IN_DIM, H1, H2 = 784, 512, 256
QCHUNK = 128                    # per-chunk rows of the q=784 axis (lane-aligned)
NQ = 7                          # number of chunks
PAD = NQ * QCHUNK               # 896 = 784 padded up to a multiple of 128


def _leaky(x):
    # nn.LeakyReLU(0.2)
    return jnp.maximum(x, 0.2 * x)


# ---------------------------------------------------------------------------
# Kernel A: is_train_g=False path — plain discriminator MLP, batch-tiled grid.
#   out = sigmoid(fc3(leaky(fc2(leaky(fc1(x))))))
# fc3 (out_features == 1) is a VPU multiply + lane reduce, not an N=1 MXU matmul.
# ---------------------------------------------------------------------------
def _mlp_kernel(x_ref, w1t_ref, b1_ref, w2t_ref, b2_ref, w3_ref, b3_ref, out_ref):
    h = _leaky(jnp.dot(x_ref[...].astype(jnp.bfloat16), w1t_ref[...],
                       preferred_element_type=jnp.float32) + b1_ref[...])
    h = _leaky(jnp.dot(h.astype(jnp.bfloat16), w2t_ref[...],
                       preferred_element_type=jnp.float32) + b2_ref[...])
    logits = jnp.sum(h * w3_ref[...], axis=-1, keepdims=True) + b3_ref[0, 0]
    out_ref[...] = jax.nn.sigmoid(logits)


# ---------------------------------------------------------------------------
# Kernel B: fused is_train_g=True path.  Grid = (num_batch_tiles, nc); per step (bi, i)
# an inner fori_loop over NQ chunks of the q axis computes, per chunk c (128 rows):
#   a_c      = i - sample_x[:, c]                                   (tb, 128)
#   h1_c     = leaky(dout1[:,None,:] + a_c[:,:,None] * W1.T[c])     (tb, 128, 512) -> bf16
#   h2_c     = leaky(h1_c_flat @ W2.T + b2)                         (tb*128, 256)
#   fnew_c   = sigmoid(sum(h2_c * w3_row, -1) + b3)                 (tb, 128)
#   s_part  += <x[:, i, c] - is_last * xsum[:, c], fnew_c>
# so that s = sum_i <x_i, fnew_i> - <xsum, fnew_{nc-1}> accumulates in VMEM scratch.
# dout1 (fc1 pre-activation of sample_x) is computed once per batch tile at i == 0.
# At i == nc-1:  out = s + (sigmoid(fc3(leaky(fc2(leaky(dout1))))) - s)
# ---------------------------------------------------------------------------
def _fused_kernel(xch_ref, sxq_ref, xsq_ref, w1q_ref, b1_ref, w2t_ref, b2_ref,
                  w3_ref, b3_ref, out_ref, dout1_sc, s_sc):
    i = pl.program_id(1)
    nc = pl.num_programs(1)
    nq, tb, qc = sxq_ref.shape

    @pl.when(i == 0)
    def _():
        # fc1 pre-activation of sample_x, accumulated chunk by chunk (f32 accumulator).
        def fc1_body(c, acc):
            return acc + jnp.dot(sxq_ref[c].astype(jnp.bfloat16), w1q_ref[c],
                                 preferred_element_type=jnp.float32)
        dout1_sc[...] = jax.lax.fori_loop(
            0, nq, fc1_body, jnp.zeros((tb, H1), jnp.float32)) + b1_ref[...]
        s_sc[...] = jnp.zeros_like(s_sc)

    i_f = i.astype(jnp.float32)
    is_last = (i == nc - 1).astype(jnp.float32)
    b3 = b3_ref[0, 0]                       # scalar read from SMEM
    dout1 = dout1_sc[...]                   # (tb, 512) f32

    def chunk_body(c, s_part):
        a_c = i_f - sxq_ref[c]                                       # (tb, 128) f32
        # h1[b, q, d] = dout1[b, d] + a[b, q] * W1.T[q, d]; leaky; bf16 for the MXU.
        h1 = _leaky(dout1[:, None, :] + a_c[:, :, None] * w1q_ref[c])
        h1 = h1.astype(jnp.bfloat16).reshape(tb * qc, H1)
        h2 = _leaky(jnp.dot(h1, w2t_ref[...],
                            preferred_element_type=jnp.float32) + b2_ref[...])
        # fc3 (out_features == 1) on the VPU/XLU: row scale + lane reduce.
        h3 = jnp.sum(h2.reshape(tb, qc, H2) * w3_ref[...], axis=-1) + b3
        fnew_c = jax.nn.sigmoid(h3)                                  # (tb, 128)
        # s = sum_i <x_i, fnew_i> - <xsum, fnew_{nc-1}>  (xsum term only at i == nc-1).
        coef_c = xch_ref[c][0] - is_last * xsq_ref[c]                # (tb, 128)
        return s_part + jnp.sum(coef_c * fnew_c, axis=-1, keepdims=True)

    s_part = jax.lax.fori_loop(0, nq, chunk_body, jnp.zeros((tb, 1), jnp.float32))
    s_sc[...] += s_part

    @pl.when(i == nc - 1)
    def _():
        # logits path: fc3(leaky(fc2(leaky(dout1))))
        h = _leaky(dout1)
        h = _leaky(jnp.dot(h.astype(jnp.bfloat16), w2t_ref[...],
                           preferred_element_type=jnp.float32) + b2_ref[...])
        logits = jnp.sum(h * w3_ref[...], axis=-1, keepdims=True) + b3
        fout = jax.nn.sigmoid(logits)
        s = s_sc[...]
        # TODO(synk): .detach() straight-through gradient semantics need
        # jax.lax.stop_gradient / a custom_vjp; only forward values are reproduced here.
        out_ref[...] = s + (fout - s)


# ---------------------------------------------------------------------------
# Wrapper
# ---------------------------------------------------------------------------
def dis_or_funcf_forward(params, x, is_train_g):
    # PyTorch-style (out, in) weights -> (in, out); matmul operands bf16, biases f32.
    # TODO(synk): SpectralNorm power-iteration normalization not reproduced; raw weights used.
    w2t_bf = params['w2'].T.astype(jnp.bfloat16)          # (512, 256)
    w3r = params['w3'].astype(jnp.float32)                # (1, 256) row form for VPU fc3
    b1r = params['b1'].astype(jnp.float32)[None, :]       # (1, 512)
    b2r = params['b2'].astype(jnp.float32)[None, :]       # (1, 256)
    b3s = params['b3'].astype(jnp.float32).reshape(1, 1)  # (1, 1) scalar -> SMEM

    if not is_train_g:
        x = x.astype(jnp.float32)
        B = x.shape[0]
        w1t_bf = params['w1'].T.astype(jnp.bfloat16)      # (784, 512), unpadded
        tbm = B if B <= 256 else 256
        nbm = pl.cdiv(B, tbm)
        return pl.pallas_call(
            _mlp_kernel,
            grid=(nbm,),
            in_specs=[
                pl.BlockSpec((tbm, IN_DIM), lambda i: (i, 0)),
                pl.BlockSpec((IN_DIM, H1), lambda i: (0, 0)),
                pl.BlockSpec((1, H1), lambda i: (0, 0)),
                pl.BlockSpec((H1, H2), lambda i: (0, 0)),
                pl.BlockSpec((1, H2), lambda i: (0, 0)),
                pl.BlockSpec((1, H2), lambda i: (0, 0)),
                pl.BlockSpec(memory_space=pltpu.MemorySpace.SMEM),
            ],
            out_specs=pl.BlockSpec((tbm, 1), lambda i: (i, 0)),
            out_shape=jax.ShapeDtypeStruct((B, 1), jnp.float32),
            compiler_params=pltpu.CompilerParams(
                dimension_semantics=("parallel",)),
        )(x, w1t_bf, b1r, w2t_bf, b2r, w3r, b3s)

    # ------------------------- is_train_g = True path -------------------------
    x = x.astype(jnp.float32)
    B, nc, _ = x.shape
    padq = PAD - IN_DIM

    def to_chunks_2d(v):  # (B, 784) -> (NQ, B, 128), zero-padded (exactness preserved)
        v = jnp.pad(v, ((0, 0), (0, padq)))
        return v.reshape(B, NQ, QCHUNK).transpose(1, 0, 2)

    sx_q = to_chunks_2d(x[:, 0, :])                                   # (7, B, 128)
    xs_q = to_chunks_2d(jnp.sum(x, axis=1))                           # (7, B, 128)
    xch_q = (jnp.pad(x, ((0, 0), (0, 0), (0, padq)))
             .reshape(B, nc, NQ, QCHUNK).transpose(2, 1, 0, 3))       # (7, nc, B, 128)
    w1t_q = (jnp.pad(params['w1'].T, ((0, padq), (0, 0)))
             .astype(jnp.bfloat16).reshape(NQ, QCHUNK, H1))           # (7, 128, 512)

    # Batch tile: == B for small batches (keeps blocks layout-legal), else a multiple
    # of 8 so larger batches give nb >= 2 tiles (v7x megacore) and v6e amortizes steps.
    if B <= 16:
        tb = B
    elif B <= 32:
        tb = 8
    else:
        tb = 16
    nb = pl.cdiv(B, tb)
    # Note: if B % tb != 0 the last tile computes on Pallas-padded rows; results are
    # per-row and the output write is masked, so valid rows are unaffected.

    return pl.pallas_call(
        _fused_kernel,
        grid=(nb, nc),
        in_specs=[
            # x, viewed per channel i and pre-chunked along q (constant in q/chunks).
            pl.BlockSpec((NQ, 1, tb, QCHUNK), lambda bi, i: (0, i, bi, 0)),
            pl.BlockSpec((NQ, tb, QCHUNK), lambda bi, i: (0, bi, 0)),   # sample_x (chunked)
            pl.BlockSpec((NQ, tb, QCHUNK), lambda bi, i: (0, bi, 0)),   # xsum (chunked)
            pl.BlockSpec((NQ, QCHUNK, H1), lambda bi, i: (0, 0, 0)),    # W1.T bf16 (chunked)
            pl.BlockSpec((1, H1), lambda bi, i: (0, 0)),                # b1
            pl.BlockSpec((H1, H2), lambda bi, i: (0, 0)),               # W2.T bf16
            pl.BlockSpec((1, H2), lambda bi, i: (0, 0)),                # b2
            pl.BlockSpec((1, H2), lambda bi, i: (0, 0)),                # W3 row
            pl.BlockSpec(memory_space=pltpu.MemorySpace.SMEM),          # b3 scalar
        ],
        out_specs=pl.BlockSpec((tb, 1), lambda bi, i: (bi, 0)),
        out_shape=jax.ShapeDtypeStruct((B, 1), jnp.float32),
        scratch_shapes=[pltpu.VMEM((tb, H1), jnp.float32),   # dout1 (fc1 pre-activation)
                        pltpu.VMEM((tb, 1), jnp.float32)],   # s accumulator
        compiler_params=pltpu.CompilerParams(
            dimension_semantics=("parallel", "arbitrary"),
            vmem_limit_bytes=32 * 1024 * 1024),
    )(xch_q, sx_q, xs_q, w1t_q, b1r, w2t_bf, b2r, w3r, b3s)


# ---------------------------------------------------------------------------
# Pure-JAX reference (mirrors the PyTorch forward)
# ---------------------------------------------------------------------------
def _ref_forward(params, x, is_train_g):
    w1, b1 = params['w1'], params['b1']
    w2, b2 = params['w2'], params['b2']
    w3, b3 = params['w3'], params['b3']
    if not is_train_g:
        h = _leaky(x @ w1.T + b1)
        h = _leaky(h @ w2.T + b2)
        return jax.nn.sigmoid(h @ w3.T + b3)
    B, nc, _ = x.shape
    sx = x[:, 0, :]
    dout = sx @ w1.T + b1
    fnew = []
    for i in range(nc):
        a = i - sx
        t = _leaky(dout[:, None, :] + a[:, :, None] * w1.T[None, :, :])
        t = _leaky(jnp.einsum('bqd,dk->bqk', t, w2.T) + b2)
        t = jnp.einsum('bqd,dk->bqk', t, w3.T) + b3
        fnew.append(jax.nn.sigmoid(t[..., 0]))
    fnew = jnp.stack(fnew, axis=0)                       # (nc, B, 784)
    h = _leaky(dout)
    h = _leaky(h @ w2.T + b2)
    fout = jax.nn.sigmoid(h @ w3.T + b3)
    g = jnp.transpose(fnew - fnew[-1], (1, 0, 2))        # (B, nc, 784)
    s = jnp.sum(jnp.sum(x * g, axis=-1), axis=-1, keepdims=True)
    return s + (fout - s)


def init_params(key):
    # Deterministic, PyTorch-Linear-style uniform(-1/sqrt(fan_in), 1/sqrt(fan_in)).
    ks = jax.random.split(key, 6)

    def lin(kw, kb, fan_in, fan_out):
        bound = fan_in ** -0.5
        w = jax.random.uniform(kw, (fan_out, fan_in), jnp.float32, -bound, bound)
        b = jax.random.uniform(kb, (fan_out,), jnp.float32, -bound, bound)
        return w, b

    w1, b1 = lin(ks[0], ks[1], IN_DIM, H1)
    w2, b2 = lin(ks[2], ks[3], H1, H2)
    w3, b3 = lin(ks[4], ks[5], H2, 1)
    return dict(w1=w1, b1=b1, w2=w2, b2=b2, w3=w3, b3=b3)


if __name__ == "__main__":
    key = jax.random.PRNGKey(0)
    kp, kx, kx2 = jax.random.split(key, 3)
    params = init_params(kp)

    B, bit = 2, 2
    nc = 2 ** bit                                        # 4 channel levels

    # is_train_g = True branch: x is (B, nc, 784)
    x = jax.random.uniform(kx, (B, nc, IN_DIM), dtype=jnp.float32)
    out = jax.block_until_ready(dis_or_funcf_forward(params, x, is_train_g=True))
    ref = _ref_forward(params, x, True)
    assert out.shape == (B, 1)
    assert bool(jnp.all(jnp.isfinite(out)))
    assert bool(jnp.allclose(out, ref, rtol=2e-2, atol=2e-2)), (out, ref)

    # is_train_g = False branch: x is (B, 784)
    x2 = jax.random.uniform(kx2, (B, IN_DIM), dtype=jnp.float32)
    out2 = jax.block_until_ready(dis_or_funcf_forward(params, x2, is_train_g=False))
    ref2 = _ref_forward(params, x2, False)
    assert out2.shape == (B, 1)
    assert bool(jnp.all(jnp.isfinite(out2)))
    assert bool(jnp.allclose(out2, ref2, rtol=2e-2, atol=2e-2)), (out2, ref2)

    print("KERNEL_OK")
</pallas_src>

<mosaic_0001>
module attributes {stable_mosaic.version = 11 : i64} {
  func.func @_fused_kernel(%arg0: i32, %arg1: i32, %arg2: memref<7x1x2x128xf32, #tpu.memory_space<vmem>>, %arg3: memref<7x2x128xf32, #tpu.memory_space<vmem>>, %arg4: memref<7x2x128xf32, #tpu.memory_space<vmem>>, %arg5: memref<7x128x512xbf16, #tpu.memory_space<vmem>>, %arg6: memref<1x512xf32, #tpu.memory_space<vmem>>, %arg7: memref<512x256xbf16, #tpu.memory_space<vmem>>, %arg8: memref<1x256xf32, #tpu.memory_space<vmem>>, %arg9: memref<1x256xf32, #tpu.memory_space<vmem>>, %arg10: memref<1x1xf32, #tpu.memory_space<smem>>, %arg11: memref<2x1xf32, #tpu.memory_space<vmem>>, %arg12: memref<2x512xf32, #tpu.memory_space<vmem>>, %arg13: memref<2x1xf32, #tpu.memory_space<vmem>>) attributes {dimension_semantics = [#tpu.dimension_semantics<parallel>, #tpu.dimension_semantics<arbitrary>], iteration_bounds = array<i64: 1, 4>, scalar_prefetch = 0 : i64, scratch_operands = 2 : i64, tpu.core_type = #tpu.core_type<tc>, window_params = [{transform_indices = @transform_0, window_bounds = array<i64: 7, 1, 2, 128>}, {transform_indices = @transform_1, window_bounds = array<i64: 7, 2, 128>}, {transform_indices = @transform_2, window_bounds = array<i64: 7, 2, 128>}, {pipeline_mode = #tpu.pipeline_mode<synchronous>, transform_indices = @transform_3, window_bounds = array<i64: 7, 128, 512>}, {pipeline_mode = #tpu.pipeline_mode<synchronous>, transform_indices = @transform_4, window_bounds = array<i64: 1, 512>}, {pipeline_mode = #tpu.pipeline_mode<synchronous>, transform_indices = @transform_5, window_bounds = array<i64: 512, 256>}, {pipeline_mode = #tpu.pipeline_mode<synchronous>, transform_indices = @transform_6, window_bounds = array<i64: 1, 256>}, {pipeline_mode = #tpu.pipeline_mode<synchronous>, transform_indices = @transform_7, window_bounds = array<i64: 1, 256>}, {transform_indices = @transform_8, window_bounds = array<i64: 1, 1>}, {transform_indices = @transform_9, window_bounds = array<i64: 2, 1>}]} {
    %c0_i32 = arith.constant 0 : i32
    %0 = arith.cmpi eq, %arg1, %c0_i32 : i32
    %1 = arith.extui %0 : i1 to i32
    %c0_i32_0 = arith.constant 0 : i32
    %2 = arith.cmpi ne, %1, %c0_i32_0 : i32
    scf.if %2 {
      %cst_12 = arith.constant 0.000000e+00 : f32
      %18 = vector.broadcast %cst_12 : f32 to vector<2x512xf32>
      %c0_i32_13 = arith.constant 0 : i32
      %c7_i32_14 = arith.constant 7 : i32
      %19 = arith.addi %c0_i32_13, %c7_i32_14 : i32
      %c1_i32_15 = arith.constant 1 : i32
      %20 = scf.for %arg14 = %c0_i32_13 to %19 step %c1_i32_15 iter_args(%arg15 = %18) -> (vector<2x512xf32>)  : i32 {
        %27 = arith.index_cast %arg14 : i32 to index
        %c0_24 = arith.constant 0 : index
        %c0_25 = arith.constant 0 : index
        %28 = vector.load %arg3[%27, %c0_24, %c0_25] : memref<7x2x128xf32, #tpu.memory_space<vmem>>, vector<1x2x128xf32>
        %29 = vector.shape_cast %28 : vector<1x2x128xf32> to vector<2x128xf32>
        %30 = arith.truncf %29 : vector<2x128xf32> to vector<2x128xbf16>
        %31 = arith.index_cast %arg14 : i32 to index
        %c0_26 = arith.constant 0 : index
        %c0_27 = arith.constant 0 : index
        %32 = vector.load %arg5[%31, %c0_26, %c0_27] : memref<7x128x512xbf16, #tpu.memory_space<vmem>>, vector<1x128x512xbf16>
        %33 = vector.shape_cast %32 : vector<1x128x512xbf16> to vector<128x512xbf16>
        %cst_28 = arith.constant dense<0.000000e+00> : vector<2x512xf32>
        %34 = tpu.matmul %30, %33, %cst_28 {dimension_numbers = #tpu.dot_dimension_numbers<[1], [0], [0], [1], [0, 0, 1, 1], [], []>} : vector<2x128xbf16>, vector<128x512xbf16>, vector<2x512xf32> -> vector<2x512xf32>
        %35 = arith.addf %arg15, %34 : vector<2x512xf32>
        scf.yield %35 : vector<2x512xf32>
      }
      %c7_i32_16 = arith.constant 7 : i32
      %c0_17 = arith.constant 0 : index
      %c0_18 = arith.constant 0 : index
      %21 = vector.load %arg6[%c0_17, %c0_18] : memref<1x512xf32, #tpu.memory_space<vmem>>, vector<1x512xf32>
      %22 = vector.broadcast %21 : vector<1x512xf32> to vector<2x512xf32>
      %23 = arith.addf %20, %22 : vector<2x512xf32>
      %c0_19 = arith.constant 0 : index
      %c0_20 = arith.constant 0 : index
      %24 = vector.load %arg12[%c0_19, %c0_20] : memref<2x512xf32, #tpu.memory_space<vmem>>, vector<2x512xf32>
      tpu.vector_store %arg12[%c0_19, %c0_20], %23 {strides = array<i32>} : memref<2x512xf32, #tpu.memory_space<vmem>>, vector<2x512xf32>,
      %cst_21 = arith.constant 0.000000e+00 : f32
      %25 = vector.broadcast %cst_21 : f32 to vector<2x1xf32>
      %c0_22 = arith.constant 0 : index
      %c0_23 = arith.constant 0 : index
      %26 = vector.load %arg13[%c0_22, %c0_23] : memref<2x1xf32, #tpu.memory_space<vmem>>, vector<2x1xf32>
      tpu.vector_store %arg13[%c0_22, %c0_23], %25 {strides = array<i32>} : memref<2x1xf32, #tpu.memory_space<vmem>>, vector<2x1xf32>,
    } else {
    }
    %3 = arith.sitofp %arg1 : i32 to f32
    %c3_i32 = arith.constant 3 : i32
    %4 = arith.cmpi eq, %arg1, %c3_i32 : i32
    %5 = arith.extui %4 : i1 to i32
    %6 = arith.sitofp %5 : i32 to f32
    %c0 = arith.constant 0 : index
    %c0_1 = arith.constant 0 : index
    %7 = memref.load %arg10[%c0, %c0_1] : memref<1x1xf32, #tpu.memory_space<smem>>
    %c0_2 = arith.constant 0 : index
    %c0_3 = arith.constant 0 : index
    %8 = vector.load %arg12[%c0_2, %c0_3] : memref<2x512xf32, #tpu.memory_space<vmem>>, vector<2x512xf32>
    %cst = arith.constant 0.000000e+00 : f32
    %9 = vector.broadcast %cst : f32 to vector<2x1xf32>
    %c0_i32_4 = arith.constant 0 : i32
    %c7_i32 = arith.constant 7 : i32
    %10 = arith.addi %c0_i32_4, %c7_i32 : i32
    %c1_i32 = arith.constant 1 : i32
    %11 = scf.for %arg14 = %c0_i32_4 to %10 step %c1_i32 iter_args(%arg15 = %9) -> (vector<2x1xf32>)  : i32 {
      %18 = arith.index_cast %arg14 : i32 to index
      %c0_12 = arith.constant 0 : index
      %c0_13 = arith.constant 0 : index
      %19 = vector.load %arg3[%18, %c0_12, %c0_13] : memref<7x2x128xf32, #tpu.memory_space<vmem>>, vector<1x2x128xf32>
      %20 = vector.shape_cast %19 : vector<1x2x128xf32> to vector<2x128xf32>
      %21 = vector.broadcast %3 : f32 to vector<2x128xf32>
      %22 = arith.subf %21, %20 : vector<2x128xf32>
      %23 = vector.shape_cast %8 : vector<2x512xf32> to vector<2x1x512xf32>
      %24 = vector.shape_cast %22 : vector<2x128xf32> to vector<2x128x1xf32>
      %25 = arith.index_cast %arg14 : i32 to index
      %c0_14 = arith.constant 0 : index
      %c0_15 = arith.constant 0 : index
      %26 = vector.load %arg5[%25, %c0_14, %c0_15] : memref<7x128x512xbf16, #tpu.memory_space<vmem>>, vector<1x128x512xbf16>
      %27 = vector.shape_cast %26 : vector<1x128x512xbf16> to vector<128x512xbf16>
      %28 = arith.extf %27 : vector<128x512xbf16> to vector<128x512xf32>
      %29 = vector.shape_cast %28 : vector<128x512xf32> to vector<1x128x512xf32>
      %30 = vector.broadcast %24 : vector<2x128x1xf32> to vector<2x128x512xf32>
      %31 = vector.broadcast %29 : vector<1x128x512xf32> to vector<2x128x512xf32>
      %32 = arith.mulf %30, %31 : vector<2x128x512xf32>
      %33 = vector.broadcast %23 : vector<2x1x512xf32> to vector<2x128x512xf32>
      %34 = arith.addf %33, %32 : vector<2x128x512xf32>
      %cst_16 = arith.constant 2.000000e-01 : f32
      %35 = vector.broadcast %cst_16 : f32 to vector<2x128x512xf32>
      %36 = arith.mulf %35, %34 : vector<2x128x512xf32>
      %37 = arith.maximumf %34, %36 : vector<2x128x512xf32>
      %38 = arith.truncf %37 : vector<2x128x512xf32> to vector<2x128x512xbf16>
      %39 = vector.shape_cast %38 : vector<2x128x512xbf16> to vector<256x512xbf16>
      %c0_17 = arith.constant 0 : index
      %c0_18 = arith.constant 0 : index
      %40 = vector.load %arg7[%c0_17, %c0_18] : memref<512x256xbf16, #tpu.memory_space<vmem>>, vector<512x256xbf16>
      %cst_19 = arith.constant dense<0.000000e+00> : vector<256x256xf32>
      %41 = tpu.matmul %39, %40, %cst_19 {dimension_numbers = #tpu.dot_dimension_numbers<[1], [0], [0], [1], [0, 0, 1, 1], [], []>} : vector<256x512xbf16>, vector<512x256xbf16>, vector<256x256xf32> -> vector<256x256xf32>
      %c0_20 = arith.constant 0 : index
      %c0_21 = arith.constant 0 : index
      %42 = vector.load %arg8[%c0_20, %c0_21] : memref<1x256xf32, #tpu.memory_space<vmem>>, vector<1x256xf32>
      %43 = vector.broadcast %42 : vector<1x256xf32> to vector<256x256xf32>
      %44 = arith.addf %41, %43 : vector<256x256xf32>
      %cst_22 = arith.constant 2.000000e-01 : f32
      %45 = vector.broadcast %cst_22 : f32 to vector<256x256xf32>
      %46 = arith.mulf %45, %44 : vector<256x256xf32>
      %47 = arith.maximumf %44, %46 : vector<256x256xf32>
      %48 = vector.shape_cast %47 : vector<256x256xf32> to vector<2x128x256xf32>
      %c0_23 = arith.constant 0 : index
      %c0_24 = arith.constant 0 : index
      %49 = vector.load %arg9[%c0_23, %c0_24] : memref<1x256xf32, #tpu.memory_space<vmem>>, vector<1x256xf32>
      %50 = vector.shape_cast %49 : vector<1x256xf32> to vector<1x1x256xf32>
      %51 = vector.broadcast %50 : vector<1x1x256xf32> to vector<2x128x256xf32>
      %52 = arith.mulf %48, %51 : vector<2x128x256xf32>
      %cst_25 = arith.constant dense<0.000000e+00> : vector<2x128xf32>
      %53 = vector.multi_reduction <add>, %52, %cst_25 [2] : vector<2x128x256xf32> to vector<2x128xf32>
      %54 = vector.broadcast %7 : f32 to vector<2x128xf32>
      %55 = arith.addf %53, %54 : vector<2x128xf32>
      %56 = arith.negf %55 : vector<2x128xf32>
      %57 = math.exp %56 : vector<2x128xf32>
      %cst_26 = arith.constant 1.000000e+00 : f32
      %58 = vector.broadcast %cst_26 : f32 to vector<2x128xf32>
      %59 = arith.addf %58, %57 : vector<2x128xf32>
      %60 = arith.divf %58, %59 : vector<2x128xf32>
      %61 = arith.index_cast %arg14 : i32 to index
      %c0_27 = arith.constant 0 : index
      %c0_28 = arith.constant 0 : index
      %c0_29 = arith.constant 0 : index
      %62 = vector.load %arg2[%61, %c0_27, %c0_28, %c0_29] : memref<7x1x2x128xf32, #tpu.memory_space<vmem>>, vector<1x1x2x128xf32>
      %63 = vector.shape_cast %62 : vector<1x1x2x128xf32> to vector<1x2x128xf32>
      %64 = vector.shape_cast %63 : vector<1x2x128xf32> to vector<2x128xf32>
      %65 = arith.index_cast %arg14 : i32 to index
      %c0_30 = arith.constant 0 : index
      %c0_31 = arith.constant 0 : index
      %66 = vector.load %arg4[%65, %c0_30, %c0_31] : memref<7x2x128xf32, #tpu.memory_space<vmem>>, vector<1x2x128xf32>
      %67 = vector.shape_cast %66 : vector<1x2x128xf32> to vector<2x128xf32>
      %68 = vector.broadcast %6 : f32 to vector<2x128xf32>
      %69 = arith.mulf %68, %67 : vector<2x128xf32>
      %70 = arith.subf %64, %69 : vector<2x128xf32>
      %71 = arith.mulf %70, %60 : vector<2x128xf32>
      %cst_32 = arith.constant dense<0.000000e+00> : vector<2xf32>
      %72 = vector.multi_reduction <add>, %71, %cst_32 [1] : vector<2x128xf32> to vector<2xf32>
      %73 = vector.shape_cast %72 : vector<2xf32> to vector<2x1xf32>
      %74 = arith.addf %arg15, %73 : vector<2x1xf32>
      scf.yield %74 : vector<2x1xf32>
    }
    %c7_i32_5 = arith.constant 7 : i32
    %c0_6 = arith.constant 0 : index
    %c0_7 = arith.constant 0 : index
    %12 = vector.load %arg13[%c0_6, %c0_7] : memref<2x1xf32, #tpu.memory_space<vmem>>, vector<2x1xf32>
    %13 = arith.addf %12, %11 : vector<2x1xf32>
    %c0_8 = arith.constant 0 : index
    %c0_9 = arith.constant 0 : index
    %14 = vector.load %arg13[%c0_8, %c0_9] : memref<2x1xf32, #tpu.memory_space<vmem>>, vector<2x1xf32>
    tpu.vector_store %arg13[%c0_8, %c0_9], %13 {strides = array<i32>} : memref<2x1xf32, #tpu.memory_space<vmem>>, vector<2x1xf32>,
    %c3_i32_10 = arith.constant 3 : i32
    %15 = arith.cmpi eq, %arg1, %c3_i32_10 : i32
    %16 = arith.extui %15 : i1 to i32
    %c0_i32_11 = arith.constant 0 : i32
    %17 = arith.cmpi ne, %16, %c0_i32_11 : i32
    scf.if %17 {
      %cst_12 = arith.constant 2.000000e-01 : f32
      %18 = vector.broadcast %cst_12 : f32 to vector<2x512xf32>
      %19 = arith.mulf %18, %8 : vector<2x512xf32>
      %20 = arith.maximumf %8, %19 : vector<2x512xf32>
      %21 = arith.truncf %20 : vector<2x512xf32> to vector<2x512xbf16>
      %c0_13 = arith.constant 0 : index
      %c0_14 = arith.constant 0 : index
      %22 = vector.load %arg7[%c0_13, %c0_14] : memref<512x256xbf16, #tpu.memory_space<vmem>>, vector<512x256xbf16>
      %cst_15 = arith.constant dense<0.000000e+00> : vector<2x256xf32>
      %23 = tpu.matmul %21, %22, %cst_15 {dimension_numbers = #tpu.dot_dimension_numbers<[1], [0], [0], [1], [0, 0, 1, 1], [], []>} : vector<2x512xbf16>, vector<512x256xbf16>, vector<2x256xf32> -> vector<2x256xf32>
      %c0_16 = arith.constant 0 : index
      %c0_17 = arith.constant 0 : index
      %24 = vector.load %arg8[%c0_16, %c0_17] : memref<1x256xf32, #tpu.memory_space<vmem>>, vector<1x256xf32>
      %25 = vector.broadcast %24 : vector<1x256xf32> to vector<2x256xf32>
      %26 = arith.addf %23, %25 : vector<2x256xf32>
      %cst_18 = arith.constant 2.000000e-01 : f32
      %27 = vector.broadcast %cst_18 : f32 to vector<2x256xf32>
      %28 = arith.mulf %27, %26 : vector<2x256xf32>
      %29 = arith.maximumf %26, %28 : vector<2x256xf32>
      %c0_19 = arith.constant 0 : index
      %c0_20 = arith.constant 0 : index
      %30 = vector.load %arg9[%c0_19, %c0_20] : memref<1x256xf32, #tpu.memory_space<vmem>>, vector<1x256xf32>
      %31 = vector.broadcast %30 : vector<1x256xf32> to vector<2x256xf32>
      %32 = arith.mulf %29, %31 : vector<2x256xf32>
      %cst_21 = arith.constant dense<0.000000e+00> : vector<2xf32>
      %33 = vector.multi_reduction <add>, %32, %cst_21 [1] : vector<2x256xf32> to vector<2xf32>
      %34 = vector.shape_cast %33 : vector<2xf32> to vector<2x1xf32>
      %35 = vector.broadcast %7 : f32 to vector<2x1xf32>
      %36 = arith.addf %34, %35 : vector<2x1xf32>
      %37 = arith.negf %36 : vector<2x1xf32>
      %38 = math.exp %37 : vector<2x1xf32>
      %cst_22 = arith.constant 1.000000e+00 : f32
      %39 = vector.broadcast %cst_22 : f32 to vector<2x1xf32>
      %40 = arith.addf %39, %38 : vector<2x1xf32>
      %41 = arith.divf %39, %40 : vector<2x1xf32>
      %c0_23 = arith.constant 0 : index
      %c0_24 = arith.constant 0 : index
      %42 = vector.load %arg13[%c0_23, %c0_24] : memref<2x1xf32, #tpu.memory_space<vmem>>, vector<2x1xf32>
      %43 = arith.subf %41, %42 : vector<2x1xf32>
      %44 = arith.addf %42, %43 : vector<2x1xf32>
      %c0_25 = arith.constant 0 : index
      %c0_26 = arith.constant 0 : index
      %45 = vector.load %arg11[%c0_25, %c0_26] : memref<2x1xf32, #tpu.memory_space<vmem>>, vector<2x1xf32>
      tpu.vector_store %arg11[%c0_25, %c0_26], %44 {strides = array<i32>} : memref<2x1xf32, #tpu.memory_space<vmem>>, vector<2x1xf32>,
    } else {
    }
    return
  }
  func.func @transform_0(%arg0: i32, %arg1: i32) -> (i32, i32, i32, i32) {
    %c0_i32 = arith.constant 0 : i32
    %c0_i32_0 = arith.constant 0 : i32
    %c0_i32_1 = arith.constant 0 : i32
    return %c0_i32, %arg1, %arg0, %c0_i32_0 : i32, i32, i32, i32
  }
  func.func @transform_1(%arg0: i32, %arg1: i32) -> (i32, i32, i32) {
    %c0_i32 = arith.constant 0 : i32
    %c0_i32_0 = arith.constant 0 : i32
    %c0_i32_1 = arith.constant 0 : i32
    return %c0_i32, %arg0, %c0_i32_0 : i32, i32, i32
  }
  func.func @transform_2(%arg0: i32, %arg1: i32) -> (i32, i32, i32) {
    %c0_i32 = arith.constant 0 : i32
    %c0_i32_0 = arith.constant 0 : i32
    %c0_i32_1 = arith.constant 0 : i32
    return %c0_i32, %arg0, %c0_i32_0 : i32, i32, i32
  }
  func.func @transform_3(%arg0: i32, %arg1: i32) -> (i32, i32, i32) {
    %c0_i32 = arith.constant 0 : i32
    %c0_i32_0 = arith.constant 0 : i32
    %c0_i32_1 = arith.constant 0 : i32
    %c0_i32_2 = arith.constant 0 : i32
    return %c0_i32, %c0_i32_0, %c0_i32_1 : i32, i32, i32
  }
  func.func @transform_4(%arg0: i32, %arg1: i32) -> (i32, i32) {
    %c0_i32 = arith.constant 0 : i32
    %c0_i32_0 = arith.constant 0 : i32
    %c0_i32_1 = arith.constant 0 : i32
    return %c0_i32, %c0_i32_0 : i32, i32
  }
  func.func @transform_5(%arg0: i32, %arg1: i32) -> (i32, i32) {
    %c0_i32 = arith.constant 0 : i32
    %c0_i32_0 = arith.constant 0 : i32
    %c0_i32_1 = arith.constant 0 : i32
    return %c0_i32, %c0_i32_0 : i32, i32
  }
  func.func @transform_6(%arg0: i32, %arg1: i32) -> (i32, i32) {
    %c0_i32 = arith.constant 0 : i32
    %c0_i32_0 = arith.constant 0 : i32
    %c0_i32_1 = arith.constant 0 : i32
    return %c0_i32, %c0_i32_0 : i32, i32
  }
  func.func @transform_7(%arg0: i32, %arg1: i32) -> (i32, i32) {
    %c0_i32 = arith.constant 0 : i32
    %c0_i32_0 = arith.constant 0 : i32
    %c0_i32_1 = arith.constant 0 : i32
    return %c0_i32, %c0_i32_0 : i32, i32
  }
  func.func @transform_8(%arg0: i32, %arg1: i32) -> (i32, i32) {
    %c0_i32 = arith.constant 0 : i32
    %c0_i32_0 = arith.constant 0 : i32
    %c0_i32_1 = arith.constant 0 : i32
    return %c0_i32, %c0_i32_0 : i32, i32
  }
  func.func @transform_9(%arg0: i32, %arg1: i32) -> (i32, i32) {
    %c0_i32 = arith.constant 0 : i32
    %c0_i32_0 = arith.constant 0 : i32
    return %arg0, %c0_i32 : i32, i32
  }
}

</mosaic_0001>

<bundles_post_ra>
// kernel: tpu_custom_call.1
= control target key start
LH: loop header
LB: loop body
LE: loop exit
PB: predicated region body
PF: predicated region fallthrough
CT: control target
= control target key end

     0   :  { %s6838_s0 = inlined_call_operand.hbm [shape: f32[7,4,2,128], index: 0, kind: input, shape index: {}]   ;;  %s6839_s1 = inlined_call_operand.hbm [shape: f32[7,2,128], index: 1, kind: input, shape index: {}]   ;;  %s6840_s2 = inlined_call_operand.hbm [shape: f32[7,2,128], index: 2, kind: input, shape index: {}]   ;;  %s6841_s3 = inlined_call_operand.hbm [shape: bf16[7,128,512], index: 3, kind: input, shape index: {}]   ;;  %s6842_s4 = inlined_call_operand.vmem [shape: f32[1,512], index: 4, kind: input, shape index: {}]   ;;  %s6843_s5 = inlined_call_operand.hbm [shape: bf16[512,256], index: 5, kind: input, shape index: {}]   ;;  %s6844_s6 = inlined_call_operand.vmem [shape: f32[1,256], index: 6, kind: input, shape index: {}]   ;;  %s6845_s7 = inlined_call_operand.vmem [shape: f32[1,256], index: 7, kind: input, shape index: {}]   ;;  %s6846_s8 = inlined_call_operand.<no memory space> [shape: f32[1,1], index: 8, kind: input, shape index: {}]   ;;  %s6847_s9 = inlined_call_operand.vmem [shape: f32[2,1], index: 9, kind: output, shape index: {}]  }
   0x1   :  { %6907 = sst [smem:[#allocation39_spill]] %s6839_s1 }
   0x2   :  { %6908 = sst [smem:[#allocation40_spill]] %s6840_s2 }
   0x3   :  { %6909 = sst [smem:[#allocation41_spill]] %s6847_s9 }
   0x4   :  { %14 = sst [smem:[#allocation4]] %s6846_s8 }
   0x5   :  { %15 = vsyncpa [#allocation6], 0 }
   0x6   :  { %17 = vsyncpa [#allocation6 + $0x1], 0 }
   0x7   :  { %18 = vsyncpa [#allocation8], 0 }
   0x8   :  { %19 = vsyncpa [#allocation11], 0  ;;  %s5124_s11 = smov 0   ;;  %s5126_s12 = smov 0  }
   0x9   :  { %s5128_s13 = smov 0   ;;  %s5130_s14 = smov 0  }
   0xa   :  { %s5132_s15 = smov 0   ;;  %s5134_s16 = smov 0  }
   0xb LB: > { %s3909_s8 = sadd.s32 4294967295, %s5025_s16   ;;  %p59_p0 = scmp.ne.s32.totalorder %s5009_s12, %s5005_s11  ;;  %s5025_s16 = sphi %s5134_s16, %s25_s16   ;;  %s5021_s15 = sphi %s5132_s15, %s7106_s15   ;;  %s5017_s14 = sphi %s5130_s14, %s7105_s14   ;;  %s5013_s13 = sphi %s5128_s13, %s7104_s13   ;;  %s5009_s12 = sphi %s5126_s12, %s7103_s12   ;;  %s5005_s11 = sphi %s5124_s11, %s7102_s11  }
   0xc   : > { %p5154_p1 = scmp.eq.s32.totalorder %s3909_s8, 0  ;;  %p3910_p2 = scmp.ge.s32.totalorder %s5025_s16, 1 }
   0xd   : > { %p274_p3 = scmp.lt.s32.totalorder %s5025_s16, 5  ;;  %s5055_s20 = smov [#allocation7]  }
   0xe   : > { %s6910_s17 = scalar_select %p5154_p1, 1, 0 }
   0xf   : > { %p5162_p4 = por %p5154_p1, %p59_p0  ;;  %p5166_p5 = pnand %p3910_p2, %p274_p3 }
  0x10   : > { %s288_s21 = sshll.u32 %s5055_s20, 4  ;;  %s5056_s23 = smov [#allocation10]   ;;  %s289_s21 = int_to_ptr.vmem [resolvable:$true] %s288_s21 }
  0x11   : > { %s6911_s18 = scalar_select %p5162_p4, 1, 0 }
  0x12   : > { %s6912_s19 = scalar_select %p5166_p5, 1, 0 }
  0x13   : > { %p4280_p6 = pneg %p5166_p5  ;;  %s316_s24 = sshll.u32 %s5056_s23, 4  ;;  %s5178_s24 = int_to_ptr.vmem [resolvable:$true] %s316_s24 }
  0x14   : > { %s6914_s1 = sld [smem:[#allocation39_spill]] }
  0x15   : > { %p5174_p7 = pnand %p4280_p6, %p5154_p1 }
  0x17   : > { %p5188_p9 = pneg %p5174_p7 }
  0x1a   : > { %s4797_s27 = scalar_lea.hbm %s6914_s1, 224 }
  0x1b   : > { %p4798_p8 = scmp.ne.s32.totalorder %s6914_s1, %s4797_s27  ;;  %p4804_p12 = scmp.lt.u32.totalorder %s4797_s27, %s6914_s1 }
  0x1d   : > { %p4800_p10 = pnand %p5188_p9, %p4798_p8 }
  0x1f   : > { %p4801_p11 = pneg %p4800_p10 }
  0x21   : > { %p4806_p13 = pnand %p4804_p12, %p4801_p11 }
  0x23   : > { %4809 = shalt.err (!%p4806_p13)
}
  0x24   : > { %s4810_s8 = scalar_lea.vmem %s289_s21, 224  ;;  %p4818_p6 = scmp.lt.s32.totalorder %s289_s21, %s289_s21 }
  0x25   : > { %p4811_p0 = scmp.ne.s32.totalorder %s289_s21, %s4810_s8  ;;  %p4819_p1 = scmp.lt.s32.totalorder %s4810_s8, %s4810_s8 }
  0x27   : > { %p4813_p2 = pnand %p4811_p0, %p5188_p9  ;;  %p4820_p4 = por %p4819_p1, %p4818_p6 }
  0x29   : > { %p4814_p3 = pneg %p4813_p2 }
  0x2b   : > { %p4821_p5 = pnand %p4820_p4, %p4814_p3 }
  0x2d   : > { %4824 = shalt.err (!%p4821_p5)
}
  0x2e   : > { %s6852_s20 = smov 32   ;;  %s6854_s23 = smov 2  }
  0x2f   : > { %4283 = dma.hbm_to_vmem [thread:$0]  (!%p5174_p7), %s6914_s1, 224, %s289_s21, [#allocation8], %s6852_s20, %s6852_s20, %s6854_s23  }
  0x30   : > { %s4825_s29 = scalar_lea.hbm %s6841_s3, 28672 }
  0x31   : > { %p4826_p1 = scmp.ne.s32.totalorder %s6841_s3, %s4825_s29  ;;  %p4832_p8 = scmp.lt.u32.totalorder %s4825_s29, %s6841_s3 }
  0x33   : > { %p4828_p4 = pnand %p4826_p1, %p5188_p9 }
  0x35   : > { %p4829_p5 = pneg %p4828_p4 }
  0x37   : > { %p4834_p10 = pnand %p4832_p8, %p4829_p5 }
  0x39   : > { %4837 = shalt.err (!%p4834_p10)
}
  0x3a   : > { %s4838_s21 = scalar_lea.vmem %s5178_s24, 28672  ;;  %p4846_p0 = scmp.lt.s32.totalorder %s5178_s24, %s5178_s24 }
  0x3b   : > { %p4839_p11 = scmp.ne.s32.totalorder %s5178_s24, %s4838_s21  ;;  %p4847_p2 = scmp.lt.s32.totalorder %s4838_s21, %s4838_s21 }
  0x3d   : > { %p4841_p12 = pnand %p4839_p11, %p5188_p9  ;;  %p4848_p3 = por %p4847_p2, %p4846_p0 }
  0x3f   : > { %p4842_p13 = pneg %p4841_p12 }
  0x41   : > { %p4849_p6 = pnand %p4848_p3, %p4842_p13 }
  0x43   : > { %4852 = shalt.err (!%p4849_p6)
}
  0x44   : > { %s5059_s25 = smov 256   ;;  %s5060_s9 = smov 16  }
  0x45   : > { %4289 = dma.hbm_to_vmem [thread:$0]  (!%p5174_p7), %s6841_s3, 28672, %s5178_s24, [#allocation11], %s5059_s25, %s5059_s25, %s5060_s9  }
  0x46   : > { %s5061_s28 = smov [#allocation9]   ;;  %s5062_s10 = smov [#allocation12]  }
  0x47   : > { %s303_s29 = sshll.u32 %s5061_s28, 4  ;;  %s332_s11 = sshll.u32 %s5062_s10, 4  ;;  %s304_s29 = int_to_ptr.vmem [resolvable:$true] %s303_s29  ;;  %s5230_s11 = int_to_ptr.vmem [resolvable:$true] %s332_s11 }
  0x48   : > { %s6916_s2 = sld [smem:[#allocation40_spill]] }
  0x4e   : > { %s4853_s20 = scalar_lea.hbm %s6916_s2, 224 }
  0x4f   : > { %p4854_p1 = scmp.ne.s32.totalorder %s6916_s2, %s4853_s20  ;;  %p4860_p8 = scmp.lt.u32.totalorder %s4853_s20, %s6916_s2 }
  0x51   : > { %p4856_p4 = pnand %p4854_p1, %p5188_p9 }
  0x53   : > { %p4857_p5 = pneg %p4856_p4 }
  0x55   : > { %p4862_p10 = pnand %p4860_p8, %p4857_p5 }
  0x57   : > { %4865 = shalt.err (!%p4862_p10)
}
  0x58   : > { %s4866_s25 = scalar_lea.vmem %s304_s29, 224  ;;  %p4874_p0 = scmp.lt.s32.totalorder %s304_s29, %s304_s29 }
  0x59   : > { %p4867_p11 = scmp.ne.s32.totalorder %s304_s29, %s4866_s25  ;;  %p4875_p2 = scmp.lt.s32.totalorder %s4866_s25, %s4866_s25 }
  0x5b   : > { %p4869_p12 = pnand %p4867_p11, %p5188_p9  ;;  %p4876_p3 = por %p4875_p2, %p4874_p0 }
  0x5d   : > { %p4870_p13 = pneg %p4869_p12 }
  0x5f   : > { %p4877_p6 = pnand %p4876_p3, %p4870_p13 }
  0x61   : > { %4880 = shalt.err (!%p4877_p6)
}
  0x62   : > { %s6917_s1 = smov 2   ;;  %s6918_s23 = smov 32  }
  0x63   : > { %4286 = dma.hbm_to_vmem [thread:$0]  (!%p5174_p7), %s6916_s2, 224, %s304_s29, [#allocation8], %s6918_s23, %s6918_s23, %s6917_s1  }
  0x64   : > { %s4881_s10 = scalar_lea.hbm %s6843_s5, 8192 }
  0x65   : > { %p4882_p1 = scmp.ne.s32.totalorder %s6843_s5, %s4881_s10  ;;  %p4888_p8 = scmp.lt.u32.totalorder %s4881_s10, %s6843_s5 }
  0x67   : > { %p4884_p4 = pnand %p4882_p1, %p5188_p9 }
  0x69   : > { %p4885_p5 = pneg %p4884_p4 }
  0x6b   : > { %p4890_p10 = pnand %p4888_p8, %p4885_p5 }
  0x6d   : > { %4893 = shalt.err (!%p4890_p10)
}
  0x6e   : > { %s4894_s29 = scalar_lea.vmem %s5230_s11, 8192  ;;  %p4902_p0 = scmp.lt.s32.totalorder %s5230_s11, %s5230_s11 }
  0x6f   : > { %p4895_p11 = scmp.ne.s32.totalorder %s5230_s11, %s4894_s29  ;;  %p4903_p2 = scmp.lt.s32.totalorder %s4894_s29, %s4894_s29 }
  0x71   : > { %p4897_p12 = pnand %p4895_p11, %p5188_p9  ;;  %p4904_p3 = por %p4903_p2, %p4902_p0 }
  0x73   : > { %p4898_p13 = pneg %p4897_p12 }
  0x75   : > { %p4905_p6 = pnand %p4904_p3, %p4898_p13 }
  0x77   : > { %4908 = shalt.err (!%p4905_p6)
}
  0x78   : > { %s6856_s25 = smov 128   ;;  %s5064_s30 = smov 8  }
  0x79   : > { %4292 = dma.hbm_to_vmem [thread:$0]  (!%p5174_p7), %s6843_s5, 8192, %s5230_s11, [#allocation11], %s6856_s25, %s6856_s25, %s5064_s30  }
  0x7a   : > { %s34_s27 = sadd.s32 1, %s5021_s15  ;;  %s46_s28 = sadd.s32 1, %s5013_s13 }
  0x7b   : > { %p35_p9 = scmp.ge.s32.totalorder %s34_s27, 4  ;;  %p53_p1 = scmp.ne.s32.totalorder %s5013_s13, %s5009_s12 }
  0x7c   : > { %p54_p4 = scmp.eq.s32.totalorder %s5025_s16, 0  ;;  %p4301_p5 = scmp.lt.s32.totalorder %s5025_s16, 4 }
  0x7d   : > { %s7108_s27 = smov (%p35_p9, %s34_s27), 0  ;;  %s355_s10 = sand.u32 1, %s5013_s13  }
  0x7e   : > { %p55_p8 = por %p54_p4, %p53_p1  ;;  %s41_s8 = ssub.s32 %s5021_s15, %s7108_s27 }
  0x7f   : > { %p44_p10 = scmp.eq.s32.totalorder %s41_s8, 0  ;;  %s4260_s22 = smul.u32 14, %s355_s10 }
  0x80   : > { %s3916_s21 = sshll.u32 %s5021_s15, 5  ;;  %p5290_p11 = pnand %p4301_p5, %p55_p8 }
  0x81   : > { %s5295_s11 = scalar_select %p44_p10, %s5013_s13, %s46_s28  }
  0x82   : > { %s5300_s30 = scalar_lea.hbm %s6838_s0, %s3916_s21  ;;  %s359_s9 = scalar_lea.vmem [#allocation5], %s4260_s22 }
  0x83   : > { %s366_s20 = sshll.u32 %s359_s9, 4  ;;  %s5304_s8 = scalar_lea.sflag [#allocation6], %s355_s10  ;;  %s5302_s20 = int_to_ptr.vmem [resolvable:$true] %s366_s20 }
  0x84   : > { %s4909_s25 = scalar_lea.hbm %s5300_s30, 224  ;;  %p4911_p12 = pneg %p5290_p11 }
  0x85   : > { %p4910_p7 = scmp.ne.s32.totalorder %s5300_s30, %s4909_s25  ;;  %s4914_s24 = scalar_lea.hbm %s6838_s0, 896 }
  0x86   : > { %p4915_p2 = scmp.lt.u32.totalorder %s5300_s30, %s6838_s0  ;;  %p4916_p3 = scmp.lt.u32.totalorder %s4914_s24, %s4909_s25 }
  0x87   : > { %p4912_p13 = pnand %p4911_p12, %p4910_p7  ;;  %p4918_p9 = scmp.lt.u32.totalorder %s4909_s25, %s5300_s30 }
  0x88   : > { %p4917_p6 = por %p4916_p3, %p4915_p2 }
  0x89   : > { %p4913_p0 = pneg %p4912_p13 }
  0x8a   : > { %p4919_p1 = por %p4918_p9, %p4917_p6 }
  0x8c   : > { %p4920_p4 = pnand %p4919_p1, %p4913_p0 }
  0x8e   : > { %4923 = shalt.err (!%p4920_p4)
}
  0x8f   : > { %s4924_s10 = scalar_lea.vmem %s5302_s20, 224  ;;  %s5065_s22 = smov [#allocation5]  }
  0x90   : > { %p4925_p5 = scmp.ne.s32.totalorder %s5302_s20, %s4924_s10  ;;  %s4929_s9 = sshll.u32 %s5065_s22, 4  ;;  %s4930_s9 = int_to_ptr.vmem [resolvable:$false] %s4929_s9 }
  0x91   : > { %s4931_s2 = scalar_lea.vmem %s4930_s9, 448  ;;  %p4932_p7 = scmp.lt.s32.totalorder %s5302_s20, %s4930_s9 }
  0x92   : > { %p4927_p8 = pnand %p4925_p5, %p4911_p12  ;;  %p4933_p13 = scmp.lt.s32.totalorder %s4931_s2, %s4924_s10 }
  0x94   : > { %p4928_p10 = pneg %p4927_p8  ;;  %p4934_p2 = por %p4933_p13, %p4932_p7 }
  0x96   : > { %p4935_p3 = pnand %p4934_p2, %p4928_p10 }
  0x98   : > { %4938 = shalt.err (!%p4935_p3)
}
  0x99   : > { %s6920_s25 = smov 128   ;;  %p6921_p12 = scmp.ne.s32.totalorder %s6912_s19, 0 }
  0x9a   : > { %4296 = dma.hbm_to_vmem [thread:$0]  (!%p5290_p11), %s5300_s30, 224, %s5302_s20, %s5304_s8, %s6920_s25, %s6918_s23, %s6917_s1  }
  0x9b   : > { %378 = sbr.rel (%p6921_p12) target bundleno = 1769 (0x6e9), region = 56 }
  0xa2   : > { %s380_s28 = sand.u32 1, %s5009_s12   ;;  %p6922_p0 = scmp.ne.s32.totalorder %s6911_s18, 0 }
  0xa3   : > { %s5338_s21 = smul.u32 14, %s380_s28  ;;  %s381_s24 = scalar_lea.sflag [#allocation6], %s380_s28 }
  0xa5   : > { %s384_s29 = scalar_lea.vmem [#allocation5], %s5338_s21 }
  0xa6   : > { %4992 = dma.done.wait (%p6922_p0), %s381_s24, 224  }
  0xa7   : > { %4994 = vsyncadd (%p6922_p0), %s381_s24, 4294967072  ;;  %p6923_p6 = scmp.ne.s32.totalorder %s6910_s17, 0 }
  0xa9   : > { %4996 = dma.done.wait (%p6923_p6), [#allocation8], 448  }
  0xaa   : > { %4998 = vsyncadd (%p6923_p6), [#allocation8], 4294966848 }
  0xab   : > { %5000 = dma.done.wait (%p6923_p6), [#allocation11], 36864  }
  0xac   : > { %5002 = vsyncadd (%p6923_p6), [#allocation11], 4294930432  ;;  %p3922_p11 = scmp.ne.s32.totalorder %s5017_s14, 0 }
  0xad   : > { %v5354_v0 = vmov (!%p3922_p11), 0.0   ;;  %v5356_v1 = vmov (!%p3922_p11), 0.0   ;;  %v5358_v2 = vmov (!%p3922_p11), 0.0   ;;  %v5360_v3 = vmov (!%p3922_p11), 0.0   ;;  %s5362_s18 = smov (!%p3922_p11), 0  }
  0xae   : > { %442 = sbr.rel (%p3922_p11) target bundleno = 442 (0x1ba), region = 80 }
  0xb5 LB: >> { %v5066_v4 = vmov 0   ;;  %s4126_s17 = sshll.u32 %s5045_s18, 8  ;;  %s3923_s1 = sshll.u32 %s5045_s18, 1  ;;  %s5045_s18 = sphi %s5362_s18, %s448_s18   ;;  %v5041_v3 = vphi %v5360_v3, %v6927_v3   ;;  %v5037_v2 = vphi %v5358_v2, %v6926_v2   ;;  %v5033_v1 = vphi %v5356_v1, %v6925_v1   ;;  %v5029_v0 = vphi %v5354_v0, %v6924_v0  }
  0xb6   : >> { %684 = vmatprep.mubr.bf16.mxu0 %v5066_v4  ;;  %725 = vmatprep.mubr.bf16.mxu1 %v5066_v4  ;;  %s5380_s19 = scalar_lea.vmem [#allocation10], %s4126_s17  ;;  %s454_s23 = scalar_lea.vmem [#allocation7], %s3923_s1 }
  0xb7   : >> { %v4425_v5 = vld [vmem:[%s5380_s19 + $0x4] ss:$16 sps:$4 sm:$0xff]   ;;  %v4427_v6 = vld [vmem:[%s5380_s19 + $0xc] ss:$16 sps:$4 sm:$0xff]   ;;  %v4429_v7 = vld [vmem:[%s5380_s19] ss:$16 sps:$4 sm:$0xff]  }
  0xb8   : >> { %652 = vmatprep.subr.bf16.mxu0 %v4425_v5  ;;  %v4430_v8 = vld [vmem:[%s5380_s19 + $0x8] ss:$16 sps:$4 sm:$0xff]   ;;  %693 = vmatprep.subr.bf16.mxu1 %v4427_v6  ;;  %v4431_v9 = vld [vmem:[%s5380_s19 + $0x24] ss:$16 sps:$4 sm:$0xff]   ;;  %v4433_v10 = vld [vmem:[%s5380_s19 + $0x2c] ss:$16 sps:$4 sm:$0xff]  }
  0xb9   : >> { %653 = vmatpush1.bf16.msra.mxu0 %v4429_v7  ;;  %694 = vmatpush1.bf16.msra.mxu1 %v4430_v8  ;;  %v4435_v11 = vld [vmem:[%s5380_s19 + $0x20] ss:$16 sps:$4 sm:$0xff]   ;;  %v4436_v12 = vld [vmem:[%s5380_s19 + $0x28] ss:$16 sps:$4 sm:$0xff]   ;;  %v4437_v13 = vld [vmem:[%s5380_s19 + $0x44] ss:$16 sps:$4 sm:$0xff]  }
  0xba   : >> { %654 = vmatprep.subr.bf16.mxu0 %v4431_v9  ;;  %695 = vmatprep.subr.bf16.mxu1 %v4433_v10  ;;  %v4439_v14 = vld [vmem:[%s5380_s19 + $0x4c] ss:$16 sps:$4 sm:$0xff]   ;;  %v4441_v15 = vld [vmem:[%s5380_s19 + $0x40] ss:$16 sps:$4 sm:$0xff]   ;;  %v4442_v16 = vld [vmem:[%s5380_s19 + $0x48] ss:$16 sps:$4 sm:$0xff]  }
  0xbb   : >> { %v4443_v17 = vld [vmem:[%s5380_s19 + $0x64] ss:$16 sps:$4 sm:$0xff]   ;;  %v4445_v18 = vld [vmem:[%s5380_s19 + $0x6c] ss:$16 sps:$4 sm:$0xff]   ;;  %v4447_v19 = vld [vmem:[%s5380_s19 + $0x60] ss:$16 sps:$4 sm:$0xff]  }
  0xbc   : >> { %v4448_v20 = vld [vmem:[%s5380_s19 + $0x68] ss:$16 sps:$4 sm:$0xff]   ;;  %v4449_v21 = vld [vmem:[%s5380_s19 + $0x84] ss:$16 sps:$4 sm:$0xff]   ;;  %v4451_v22 = vld [vmem:[%s5380_s19 + $0x8c] ss:$16 sps:$4 sm:$0xff]  }
  0xbd   : >> { %655 = vmatpush1.bf16.msra.mxu0 %v4435_v11  ;;  %696 = vmatpush1.bf16.msra.mxu1 %v4436_v12  ;;  %v4453_v23 = vld [vmem:[%s5380_s19 + $0x80] ss:$16 sps:$4 sm:$0xff]   ;;  %v4454_v24 = vld [vmem:[%s5380_s19 + $0x88] ss:$16 sps:$4 sm:$0xff]   ;;  %v4455_v25 = vld [vmem:[%s5380_s19 + $0xa4] ss:$16 sps:$4 sm:$0xff]  }
  0xbe   : >> { %656 = vmatprep.subr.bf16.mxu0 %v4437_v13  ;;  %697 = vmatprep.subr.bf16.mxu1 %v4439_v14  ;;  %v4457_v26 = vld [vmem:[%s5380_s19 + $0xac] ss:$16 sps:$4 sm:$0xff]   ;;  %v4459_v27 = vld [vmem:[%s5380_s19 + $0xa0] ss:$16 sps:$4 sm:$0xff]   ;;  %v4460_v28 = vld [vmem:[%s5380_s19 + $0xa8] ss:$16 sps:$4 sm:$0xff]  }
  0xbf   : >> { %v4461_v29 = vld [vmem:[%s5380_s19 + $0xc4] ss:$16 sps:$4 sm:$0xff]   ;;  %v4463_v30 = vld [vmem:[%s5380_s19 + $0xcc] ss:$16 sps:$4 sm:$0xff]   ;;  %v4465_v31 = vld [vmem:[%s5380_s19 + $0xc0] ss:$16 sps:$4 sm:$0xff]  }
  0xc0   : >> { %v4466_v32 = vld [vmem:[%s5380_s19 + $0xc8] ss:$16 sps:$4 sm:$0xff]   ;;  %v4467_v33 = vld [vmem:[%s5380_s19 + $0xe4] ss:$16 sps:$4 sm:$0xff]   ;;  %v4469_v34 = vld [vmem:[%s5380_s19 + $0xec] ss:$16 sps:$4 sm:$0xff]  }
  0xc1   : >> { %657 = vmatpush1.bf16.msra.mxu0 %v4441_v15  ;;  %698 = vmatpush1.bf16.msra.mxu1 %v4442_v16  ;;  %v4471_v35 = vld [vmem:[%s5380_s19 + $0xe0] ss:$16 sps:$4 sm:$0xff]   ;;  %v4472_v36 = vld [vmem:[%s5380_s19 + $0xe8] ss:$16 sps:$4 sm:$0xff]   ;;  %s448_s18 = sadd.s32 1, %s5045_s18  }
  0xc2   : >> { %658 = vmatprep.subr.bf16.mxu0 %v4443_v17  ;;  %699 = vmatprep.subr.bf16.mxu1 %v4445_v18  ;;  %v455_v37 = vld [vmem:[%s454_s23] sm:$0x3]  ;;  %p445_p9 = scmp.ge.s32.totalorder %s448_s18, 7  }
  0xc3   : >> { %v456_v38 = vpack.c.bf16 %v455_v37, %v455_v37  ;;  %v740_v51 = vlaneseq (%p445_p9)  ;;  %vm787_vm0 = vcmask (%p445_p9), 1024   ;;  %v5067_v52 = vmov (%p445_p9), 1983009808   ;;  %v738_v56 = vld [vmem:[%s6842_s4] sm:$0xf] (%p445_p9) }
  0xc4   : > { %v771_v53 = vunpack.c.l.s4 (%p445_p9), %v5067_v52  ;;  %v5068_v54 = vmov (%p445_p9), 0.0  }
  0xc5   : >> { %659 = vmatpush1.bf16.msra.mxu0 %v4447_v19  ;;  %700 = vmatpush1.bf16.msra.mxu1 %v4448_v20  ;;  %788 = vst.msk [vmem:[#allocation3] sm:$0x3] (%p445_p9), %vm787_vm0, %v5068_v54  ;;  %v741_v55 = vshrl.u32 (%p445_p9), %v740_v51, 7 }
  0xc6   : >> { %660 = vmatprep.subr.bf16.mxu0 %v4449_v21  ;;  %701 = vmatprep.subr.bf16.mxu1 %v4451_v22  ;;  %v772_v57 = vunpack.c.0.s8 (%p445_p9), %v771_v53 }
  0xc7   : > { %v742_v58 = vsub.s32 (%p445_p9), 0, %v741_v55  ;;  %v746_v59 = vsub.s32 (%p445_p9), 1, %v741_v55  ;;  %v750_v60 = vsub.s32 (%p445_p9), 2, %v741_v55  ;;  %v754_v61 = vsub.s32 (%p445_p9), 3, %v741_v55 }
  0xc9   : >> { %661 = vmatpush1.bf16.msra.mxu0 %v4453_v23  ;;  %702 = vmatpush1.bf16.msra.mxu1 %v4454_v24  ;;  %v743_v62 = vrot.slane (%p445_p9), %v738_v56, %v742_v58  ;;  %v747_v63 = vrot.slane (%p445_p9), %v738_v56, %v746_v59  ;;  %v755_v4 = vrot.slane (%p445_p9), %v738_v56, %v754_v61 }
  0xca   : >> { %662 = vmatprep.subr.bf16.mxu0 %v4455_v25  ;;  %703 = vmatprep.subr.bf16.mxu1 %v4457_v26 }
  0xcd   : >> { %663 = vmatpush1.bf16.msra.mxu0 %v4459_v27  ;;  %704 = vmatpush1.bf16.msra.mxu1 %v4460_v28 }
  0xce   : >> { %664 = vmatprep.subr.bf16.mxu0 %v4461_v29  ;;  %705 = vmatprep.subr.bf16.mxu1 %v4463_v30 }
  0xd1   : >> { %665 = vmatpush1.bf16.msra.mxu0 %v4465_v31  ;;  %706 = vmatpush1.bf16.msra.mxu1 %v4466_v32 }
  0xd2   : >> { %666 = vmatprep.subr.bf16.mxu0 %v4467_v33  ;;  %707 = vmatprep.subr.bf16.mxu1 %v4469_v34 }
  0xd5   : >> { %667 = vmatpush1.bf16.msra.mxu0 %v4471_v35  ;;  %708 = vmatpush1.bf16.msra.mxu1 %v4472_v36 }
  0xd8   : >> { %685 = vmatmul.mubr.bf16.vlgmr.msra.gmra.mrb[0].mxu0 %v456_v38  ;;  %726 = vmatmul.mubr.bf16.vlgmr.msra.gmra.mrb[0].mxu1 %v456_v38 }
 0x1a9   : > { %447 = sbr.rel (!%p445_p9) target bundleno = 181 (0xb5), region = 142 }
 0x1ab   : >> { %v686_v39 = vpop.f32.mrb[0].mxu0  ;;  %v727_v40 = vpop.f32.mrb[0].mxu1 }
 0x1ac   : >> { %v734_v41 = vadd.f32 %v5041_v3, %v686_v39   ;;  %v736_v42 = vadd.f32 %v5033_v1, %v727_v40   ;;  %v688_v43 = vpop.f32.mrb[1].mxu0  ;;  %v729_v44 = vpop.f32.mrb[1].mxu1 }
 0x1ad   : >> { %v735_v45 = vadd.f32 %v5037_v2, %v688_v43   ;;  %v737_v46 = vadd.f32 %v5029_v0, %v729_v44   ;;  %v690_v47 = vpop.f32.mrb[2].mxu0  ;;  %v731_v48 = vpop.f32.mrb[2].mxu1 }
 0x1ae   : >> { %v691_v49 = vpop.f32.mrb[3].mxu0  ;;  %v732_v50 = vpop.f32.mrb[3].mxu1  ;;  %v6925_v1 = vmov %v736_v42  ;;  %v6927_v3 = vmov %v734_v41 }
 0x1af   : >> { %v6924_v0 = vmov %v737_v46  ;;  %v6926_v2 = vmov %v735_v45  ;;  %v751_v3 = vrot.slane (%p445_p9), %v738_v56, %v750_v60  ;;  %v760_v1 = vadd.f32 (%p445_p9), %v743_v62, %v734_v41 }
 0x1b0   : > { %v775_v0 = vsub.s32 %v772_v57, %v741_v55  ;;  %v761_v2 = vadd.f32 %v747_v63, %v735_v45  ;;  %v763_v6 = vadd.f32 %v755_v4, %v737_v46 }
 0x1b1   : > { %v762_v5 = vadd.f32 %v751_v3, %v736_v42 }
 0x1b2   : > { %v768_v7 = vcombine.low %v760_v1, %v761_v2 }
 0x1b3   : > { %v769_v8 = vcombine.low %v762_v5, %v763_v6 }
 0x1b4   : > { %v776_v9 = vrot.slane %v768_v7, %v775_v0 }
 0x1b5   : > { %v783_v10 = vrot.slane %v769_v8, %v775_v0 }
 0x1b7   : > { %v784_v11 = vcombine.low %v776_v9, %v783_v10 }
 0x1b9   : > { %786 = vst [vmem:[#allocation2] sm:$0xff] %v784_v11 }
 0x1ba PF: > { %s789_s20 = scvt.s32.f32 %s5017_s14  ;;  %p790_p1 = scmp.eq.s32.totalorder %s5017_s14, 3  ;;  %v5442_v13 = vmov 0.0  }
 0x1bb   : > { %s5437_s8 = sld [smem:[#allocation4]]  ;;  %s5444_s9 = smov 0  }
 0x1bc   : > { %s5439_s10 = scalar_select %p790_p1, 1, 0 }
 0x1be   : > { %s792_s22 = scvt.s32.f32 %s5439_s10 }
 0x1c0   : > { %v5435_v12 = vld [vmem:[#allocation2] sm:$0xff] }
 0x1c1   : > { %6928 = vst [vmem:[#allocation16_spill] sm:$0xff] %v5435_v12 }
 0x1c2 LB: >> { %6929 = vst [vmem:[#allocation17_spill] sm:$0xff] %v5049_v13  ;;  %v6857_v14 = vlaneseq  ;;  %v4473_v15 = vld [vmem:[#allocation12 + $0x4] ss:$8 sps:$4 sm:$0xff]   ;;  %s5453_s2 = sshll.u32 %s5053_s9, 1  ;;  %v805_v16 = vstv %s789_s20  ;;  %v4477_v19 = vld [vmem:[#allocation12] ss:$8 sps:$4 sm:$0xff]   ;;  %s5053_s9 = sphi %s5444_s9, %s800_s9   ;;  %v5049_v13 = vphi %v5442_v13, %v7095_v13  }
 0x1c3   : >> { %v4475_v18 = vld [vmem:[#allocation12 + $0x104] ss:$8 sps:$4 sm:$0xff]   ;;  %2061 = vmatprep.subr.bf16.mxu1 %v4473_v15  ;;  %v4478_v20 = vld [vmem:[#allocation12 + $0x100] ss:$8 sps:$4 sm:$0xff]   ;;  %s803_s25 = scalar_lea.vmem [#allocation7], %s5453_s2  ;;  %s4127_s28 = sshll.u32 %s5053_s9, 8 }
 0x1c4   : >> { %v5458_v17 = vshrl.u32 %v6857_v14, 7  ;;  %v804_v21 = vld [vmem:[%s803_s25] sm:$0x3]  ;;  %2254 = vmatprep.subr.bf16.mxu0 %v4475_v18  ;;  %2062 = vmatpush1.bf16.msra.mxu1 %v4477_v19  ;;  %v4483_v26 = vld [vmem:[#allocation12 + $0x10] ss:$8 sps:$4 sm:$0xff]   ;;  %s5524_s24 = scalar_lea.vmem [#allocation10], %s4127_s28  ;;  %s2972_s26 = scalar_lea.vmem %s384_s29, %s5453_s2 [#allocation5] }
 0x1c5   : >> { %v5464_v23 = vsub.f32 %v805_v16, %v804_v21  ;;  %2255 = vmatpush1.bf16.msra.mxu0 %v4478_v20  ;;  %v4479_v24 = vld [vmem:[#allocation12 + $0x14] ss:$8 sps:$4 sm:$0xff]   ;;  %v4484_v27 = vld [vmem:[#allocation12 + $0x110] ss:$8 sps:$4 sm:$0xff]   ;;  %v4485_v29 = vld [vmem:[#allocation12 + $0x24] ss:$8 sps:$4 sm:$0xff]  }
 0x1c6   : >> { %6930 = vst [vmem:[#allocation18_spill] sm:$0xff] %v5458_v17  ;;  %v5462_v22 = vsub.s32 0, %v5458_v17  ;;  %v4481_v25 = vld [vmem:[#allocation12 + $0x114] ss:$8 sps:$4 sm:$0xff]   ;;  %2063 = vmatprep.subr.bf16.mxu1 %v4479_v24  ;;  %v4487_v30 = vld [vmem:[#allocation12 + $0x124] ss:$8 sps:$4 sm:$0xff]  }
 0x1c7   : >> { %2256 = vmatprep.subr.bf16.mxu0 %v4481_v25  ;;  %v4489_v31 = vld [vmem:[#allocation12 + $0x20] ss:$8 sps:$4 sm:$0xff]   ;;  %v4491_v33 = vld [vmem:[#allocation12 + $0x34] ss:$8 sps:$4 sm:$0xff]   ;;  %v4495_v35 = vld [vmem:[#allocation12 + $0x30] ss:$8 sps:$4 sm:$0xff]  }
 0x1c8   : >> { %6931 = vst [vmem:[#allocation19_spill] sm:$0xff] %v5462_v22  ;;  %v5468_v28 = vrot.slane %v5464_v23, %v5462_v22  ;;  %v4490_v32 = vld [vmem:[#allocation12 + $0x120] ss:$8 sps:$4 sm:$0xff]   ;;  %2064 = vmatpush1.bf16.msra.mxu1 %v4483_v26  ;;  %v4493_v34 = vld [vmem:[#allocation12 + $0x134] ss:$8 sps:$4 sm:$0xff]   ;;  %v5483_v55 = vsub.s32 1, %v5458_v17 }
 0x1c9   : >> { %2257 = vmatpush1.bf16.msra.mxu0 %v4484_v27  ;;  %2065 = vmatprep.subr.bf16.mxu1 %v4485_v29  ;;  %v4496_v36 = vld [vmem:[#allocation12 + $0x130] ss:$8 sps:$4 sm:$0xff]   ;;  %v4497_v37 = vld [vmem:[#allocation12 + $0x44] ss:$8 sps:$4 sm:$0xff]   ;;  %v4501_v39 = vld [vmem:[#allocation12 + $0x40] ss:$8 sps:$4 sm:$0xff]  }
 0x1ca   : >> { %821 = vbcast.lane.b32.xlu0 %v5468_v28, 256  ;;  %829 = vbcast.lane.b32.xlu1 %v5468_v28, 272  ;;  %v4499_v38 = vld [vmem:[#allocation12 + $0x144] ss:$8 sps:$4 sm:$0xff]   ;;  %v4502_v40 = vld [vmem:[#allocation12 + $0x140] ss:$8 sps:$4 sm:$0xff]   ;;  %v5491_v60 = vrot.slane %v5464_v23, %v5483_v55 }
 0x1cb   : >> { %2258 = vmatprep.subr.bf16.mxu0 %v4487_v30  ;;  %v4503_v41 = vld [vmem:[#allocation12 + $0x54] ss:$8 sps:$4 sm:$0xff]   ;;  %v4507_v43 = vld [vmem:[#allocation12 + $0x50] ss:$8 sps:$4 sm:$0xff]   ;;  %v4509_v45 = vld [vmem:[#allocation12 + $0x64] ss:$8 sps:$4 sm:$0xff]  }
 0x1cc   : >> { %2066 = vmatpush1.bf16.msra.mxu1 %v4489_v31  ;;  %v4505_v42 = vld [vmem:[#allocation12 + $0x154] ss:$8 sps:$4 sm:$0xff]   ;;  %v4508_v44 = vld [vmem:[#allocation12 + $0x150] ss:$8 sps:$4 sm:$0xff]   ;;  %v4511_v46 = vld [vmem:[#allocation12 + $0x164] ss:$8 sps:$4 sm:$0xff]  }
 0x1cd   : >> { %2259 = vmatpush1.bf16.msra.mxu0 %v4490_v32  ;;  %2067 = vmatprep.subr.bf16.mxu1 %v4491_v33  ;;  %v4513_v47 = vld [vmem:[#allocation12 + $0x60] ss:$8 sps:$4 sm:$0xff]   ;;  %v4515_v49 = vld [vmem:[#allocation12 + $0x74] ss:$8 sps:$4 sm:$0xff]   ;;  %v4519_v51 = vld [vmem:[#allocation12 + $0x70] ss:$8 sps:$4 sm:$0xff]  }
 0x1ce   : >> { %825 = vbcast.lane.b32.xlu0 %v5468_v28, 264  ;;  %833 = vbcast.lane.b32.xlu1 %v5468_v28, 280  ;;  %v4514_v48 = vld [vmem:[#allocation12 + $0x160] ss:$8 sps:$4 sm:$0xff]   ;;  %v4517_v50 = vld [vmem:[#allocation12 + $0x174] ss:$8 sps:$4 sm:$0xff]  }
 0x1cf   : >> { %2260 = vmatprep.subr.bf16.mxu0 %v4493_v34  ;;  %v4520_v52 = vld [vmem:[#allocation12 + $0x170] ss:$8 sps:$4 sm:$0xff]   ;;  %v4521_v53 = vld [vmem:[#allocation12 + $0x84] ss:$8 sps:$4 sm:$0xff]   ;;  %6932 = vst [vmem:[#allocation20_spill] sm:$0xff] %v5483_v55  ;;  %v1187_v33 = vsub.s32 2, %v5458_v17 }
 0x1d0   : >> { %2068 = vmatpush1.bf16.msra.mxu1 %v4495_v35  ;;  %v4523_v54 = vld [vmem:[#allocation12 + $0x184] ss:$8 sps:$4 sm:$0xff]   ;;  %v4525_v56 = vld [vmem:[#allocation12 + $0x80] ss:$8 sps:$4 sm:$0xff]   ;;  %v4527_v58 = vld [vmem:[#allocation12 + $0x94] ss:$8 sps:$4 sm:$0xff]  }
 0x1d1   : >> { %2261 = vmatpush1.bf16.msra.mxu0 %v4496_v36  ;;  %2069 = vmatprep.subr.bf16.mxu1 %v4497_v37  ;;  %v4526_v57 = vld [vmem:[#allocation12 + $0x180] ss:$8 sps:$4 sm:$0xff]   ;;  %v4529_v59 = vld [vmem:[#allocation12 + $0x194] ss:$8 sps:$4 sm:$0xff]   ;;  %v4531_v61 = vld [vmem:[#allocation12 + $0x90] ss:$8 sps:$4 sm:$0xff]  }
 0x1d2   : >> { %841 = vbcast.lane.b32.xlu1 %v5468_v28, 296  ;;  %837 = vbcast.lane.b32.xlu0 %v5468_v28, 288  ;;  %v4532_v62 = vld [vmem:[#allocation12 + $0x190] ss:$8 sps:$4 sm:$0xff]   ;;  %v4533_v63 = vld [vmem:[#allocation12 + $0xa4] ss:$8 sps:$4 sm:$0xff]  }
 0x1d3   : >> { %2262 = vmatprep.subr.bf16.mxu0 %v4499_v38  ;;  %v4535_v3 = vld [vmem:[#allocation12 + $0x1a4] ss:$8 sps:$4 sm:$0xff]   ;;  %v4537_v4 = vld [vmem:[#allocation12 + $0xa0] ss:$8 sps:$4 sm:$0xff]   ;;  %v4539_v1 = vld [vmem:[#allocation12 + $0xb4] ss:$8 sps:$4 sm:$0xff]  }
 0x1d4   : >> { %2070 = vmatpush1.bf16.msra.mxu1 %v4501_v39  ;;  %v4538_v0 = vld [vmem:[#allocation12 + $0x1a0] ss:$8 sps:$4 sm:$0xff]   ;;  %v4541_v2 = vld [vmem:[#allocation12 + $0x1b4] ss:$8 sps:$4 sm:$0xff]   ;;  %v4543_v5 = vld [vmem:[#allocation12 + $0xb0] ss:$8 sps:$4 sm:$0xff]  }
 0x1d5   : >> { %2263 = vmatpush1.bf16.msra.mxu0 %v4502_v40  ;;  %2071 = vmatprep.subr.bf16.mxu1 %v4503_v41  ;;  %v4544_v6 = vld [vmem:[#allocation12 + $0x1b0] ss:$8 sps:$4 sm:$0xff]   ;;  %v4545_v7 = vld [vmem:[#allocation12 + $0xc4] ss:$8 sps:$4 sm:$0xff]   ;;  %v4549_v9 = vld [vmem:[#allocation12 + $0xc0] ss:$8 sps:$4 sm:$0xff]  }
 0x1d6   : >> { %849 = vbcast.lane.b32.xlu1 %v5468_v28, 312  ;;  %845 = vbcast.lane.b32.xlu0 %v5468_v28, 304  ;;  %v4547_v8 = vld [vmem:[#allocation12 + $0x1c4] ss:$8 sps:$4 sm:$0xff]   ;;  %v4550_v10 = vld [vmem:[#allocation12 + $0x1c0] ss:$8 sps:$4 sm:$0xff]  }
 0x1d7   : >> { %2264 = vmatprep.subr.bf16.mxu0 %v4505_v42  ;;  %v4551_v11 = vld [vmem:[#allocation12 + $0xd4] ss:$8 sps:$4 sm:$0xff]   ;;  %v5069_v16 = vmov 1966171168   ;;  %v4555_v19 = vld [vmem:[#allocation12 + $0xd0] ss:$8 sps:$4 sm:$0xff]  }
 0x1d8   : >> { %2072 = vmatpush1.bf16.msra.mxu1 %v4507_v43  ;;  %v4553_v15 = vld [vmem:[#allocation12 + $0x1d4] ss:$8 sps:$4 sm:$0xff]   ;;  %v809_v18 = vunpack.c.l.s4 %v5069_v16  ;;  %v4556_v20 = vld [vmem:[#allocation12 + $0x1d0] ss:$8 sps:$4 sm:$0xff]   ;;  %v4557_v21 = vld [vmem:[#allocation12 + $0xe4] ss:$8 sps:$4 sm:$0xff]  }
 0x1d9   : >> { %2265 = vmatpush1.bf16.msra.mxu0 %v4508_v44  ;;  %2073 = vmatprep.subr.bf16.mxu1 %v4509_v45  ;;  %v4559_v23 = vld [vmem:[#allocation12 + $0x1e4] ss:$8 sps:$4 sm:$0xff]   ;;  %v4561_v25 = vld [vmem:[#allocation12 + $0xe0] ss:$8 sps:$4 sm:$0xff]   ;;  %v4563_v27 = vld [vmem:[#allocation12 + $0xf4] ss:$8 sps:$4 sm:$0xff]  }
 0x1da   : >> { %857 = vbcast.lane.b32.xlu1 %v5468_v28, 328  ;;  %853 = vbcast.lane.b32.xlu0 %v5468_v28, 320  ;;  %v810_v24 = vunpack.c.0.s8 %v809_v18  ;;  %v4562_v26 = vld [vmem:[#allocation12 + $0x1e0] ss:$8 sps:$4 sm:$0xff]   ;;  %v4567_v30 = vld [vmem:[#allocation12 + $0xf0] ss:$8 sps:$4 sm:$0xff]  }
 0x1db   : >> { %2266 = vmatprep.subr.bf16.mxu0 %v4511_v46  ;;  %v4568_v31 = vld [vmem:[#allocation12 + $0x1f0] ss:$8 sps:$4 sm:$0xff]   ;;  %v6933_v12 = vld [vmem:[#allocation16_spill] sm:$0xff]  ;;  %v1191_v34 = vsub.s32 3, %v5458_v17  ;;  %vm3022_vm1 = vcmask 130112   ;;  %vm3029_vm2 = vcmask 195712  }
 0x1dc   : >> { %2074 = vmatpush1.bf16.msra.mxu1 %v4513_v47  ;;  %v813_v29 = vsub.s32 %v810_v24, %v5458_v17  ;;  %v5527_v40 = vld [vmem:[%s5524_s24] sm:$0xff]  ;;  %v5530_v41 = vld [vmem:[%s5524_s24 + $0x8] sm:$0xff]  ;;  %v5652_v18 = vld [vmem:[%s5524_s24 + $0xd8] sm:$0xff]  ;;  %vm3036_vm3 = vcmask 261312   ;;  %vm3043_vm4 = vcmask 326912   ;;  %vm3050_vm5 = vcmask 392512  }
 0x1dd   : >> { %2267 = vmatpush1.bf16.msra.mxu0 %v4514_v48  ;;  %2075 = vmatprep.subr.bf16.mxu1 %v4515_v49  ;;  %6938 = vst [vmem:[#allocation25_spill] sm:$0xff] %v5527_v40  ;;  %6939 = vst [vmem:[#allocation26_spill] sm:$0xff] %v5530_v41  ;;  %v5533_v42 = vld [vmem:[%s5524_s24 + $0x20] sm:$0xff]  ;;  %v5536_v43 = vld [vmem:[%s5524_s24 + $0x28] sm:$0xff]  ;;  %vm3057_vm6 = vcmask 458112   ;;  %vm3064_vm7 = vcmask 523712  }
 0x1de   : >> { %865 = vbcast.lane.b32.xlu1 %v5468_v28, 344  ;;  %861 = vbcast.lane.b32.xlu0 %v5468_v28, 336  ;;  %v814_v32 = vrot.slane %v6933_v12, %v813_v29  ;;  %6940 = vst [vmem:[#allocation27_spill] sm:$0xff] %v5533_v42  ;;  %6941 = vst [vmem:[#allocation28_spill] sm:$0xff] %v5536_v43  ;;  %v5549_v48 = vld [vmem:[%s5524_s24 + $0x10] sm:$0xff]  ;;  %v5552_v49 = vld [vmem:[%s5524_s24 + $0x18] sm:$0xff] }
 0x1df   : >> { %2268 = vmatprep.subr.bf16.mxu0 %v4517_v50  ;;  %6942 = vst [vmem:[#allocation29_spill] sm:$0xff] %v5549_v48  ;;  %6943 = vst [vmem:[#allocation30_spill] sm:$0xff] %v5552_v49  ;;  %v6858_v50 = vunpack.c.l.bf16 %v5527_v40  ;;  %v5629_v29 = vld [vmem:[%s5524_s24 + $0xb0] sm:$0xff]  ;;  %v5659_v14 = vld [vmem:[%s5524_s24 + $0xc0] sm:$0xff]  ;;  %s2974_s23 = scalar_lea.vmem [#allocation9], %s5453_s2  ;;  %vm3071_vm8 = vcmask 589312  }
 0x1e0   : >> { %2076 = vmatpush1.bf16.msra.mxu1 %v4519_v51  ;;  %v815_v35 = vcombine.high %v814_v32, %v814_v32  ;;  %v5539_v44 = vrot.slane %v814_v32, %v5462_v22  ;;  %v5541_v45 = vrot.slane %v814_v32, %v1187_v33  ;;  %v5544_v46 = vrot.slane %v814_v32, %v5483_v55  ;;  %s800_s9 = sadd.s32 1, %s5053_s9  }
 0x1e1   : >> { %2269 = vmatpush1.bf16.msra.mxu0 %v4520_v52  ;;  %2077 = vmatprep.subr.bf16.mxu1 %v4521_v53  ;;  %v5546_v47 = vrot.slane %v814_v32, %v1191_v34  ;;  %v6859_v51 = vunpack.c.h.bf16 %v5527_v40  ;;  %v6860_v52 = vunpack.c.l.bf16 %v5530_v41  ;;  %v6861_v53 = vunpack.c.h.bf16 %v5530_v41  ;;  %v5619_v32 = vld [vmem:[%s5524_s24 + $0x80] sm:$0xff]  ;;  %6946 = vst [vmem:[#allocation33_spill] sm:$0xff] %v5659_v14  ;;  %p797_p4 = scmp.ge.s32.totalorder %s800_s9, 7  }
 0x1e2   : >> { %873 = vbcast.lane.b32.xlu1 %v5468_v28, 360  ;;  %869 = vbcast.lane.b32.xlu0 %v5468_v28, 352  ;;  %v5512_v36 = vrot.slane %v815_v35, %v5462_v22  ;;  %v5515_v37 = vrot.slane %v815_v35, %v5483_v55  ;;  %v5517_v38 = vrot.slane %v815_v35, %v1187_v33  ;;  %v5622_v33 = vld [vmem:[%s5524_s24 + $0x88] sm:$0xff]  ;;  %vm3078_vm9 = vcmask 654912   ;;  %p4057_p5 = scmp.ne.s32.totalorder (%p797_p4), %s5017_s14, 3 }
 0x1e3   : >> { %2270 = vmatprep.subr.bf16.mxu0 %v4523_v54  ;;  %v5519_v39 = vrot.slane %v815_v35, %v1191_v34  ;;  %v5559_v54 = vld [vmem:[%s5524_s24 + $0x30] sm:$0xff]  ;;  %v5639_v35 = vld [vmem:[%s5524_s24 + $0xa0] sm:$0xff]  ;;  %v5672_v34 = vld [vmem:[%s5524_s24 + $0xf8] sm:$0xff]  ;;  %vm3085_vm10 = vcmask 720512   ;;  %vm3092_vm11 = vcmask 786112   ;;  %vm3099_vm12 = vcmask 851712  }
 0x1e4   : >> { %2078 = vmatpush1.bf16.msra.mxu1 %v4525_v56  ;;  %6934 = vst [vmem:[#allocation21_spill] sm:$0xff] %v5512_v36  ;;  %6935 = vst [vmem:[#allocation22_spill] sm:$0xff] %v5515_v37  ;;  %v5562_v56 = vld [vmem:[%s5524_s24 + $0x38] sm:$0xff]  ;;  %v6957_v17 = vunpack.c.h.bf16 %v5559_v54  ;;  %vm3106_vm13 = vcmask 917312   ;;  %vm3113_vm14 = vcmask 982912   ;;  %vm3120_vm15 = vcmask 1048512  }
 0x1e5   : >> { %2271 = vmatpush1.bf16.msra.mxu0 %v4526_v57  ;;  %2079 = vmatprep.subr.bf16.mxu1 %v4527_v58  ;;  %6936 = vst [vmem:[#allocation23_spill] sm:$0xff] %v5517_v38  ;;  %6937 = vst [vmem:[#allocation24_spill] sm:$0xff] %v5519_v39  ;;  %v6862_v57 = vunpack.c.l.bf16 %v5533_v42  ;;  %v6863_v58 = vunpack.c.h.bf16 %v5533_v42  ;;  %v6958_v55 = vunpack.c.l.bf16 %v5562_v56  ;;  %vm3201_vm0 = vcmask 1041409  }
 0x1e6   : >> { %881 = vbcast.lane.b32.xlu1 %v5468_v28, 376  ;;  %877 = vbcast.lane.b32.xlu0 %v5468_v28, 368  ;;  %v4565_v28 = vld [vmem:[#allocation12 + $0x1f4] ss:$8 sps:$4 sm:$0xff]   ;;  %6944 = vst [vmem:[#allocation31_spill] sm:$0xff] %v5559_v54  ;;  %6945 = vst [vmem:[#allocation32_spill] sm:$0xff] %v5562_v56 }
 0x1e7   : >> { %2272 = vmatprep.subr.bf16.mxu0 %v4529_v59  ;;  %v6864_v59 = vunpack.c.l.bf16 %v5536_v43  ;;  %6949 = vst [vmem:[#allocation36_spill] sm:$0xff] %v5672_v34 }
 0x1e8   : >> { %2080 = vmatpush1.bf16.msra.mxu1 %v4531_v61  ;;  %v5569_v61 = vld [vmem:[%s5524_s24 + $0x50] sm:$0xff] }
 0x1e9   : >> { %2273 = vmatpush1.bf16.msra.mxu0 %v4532_v62  ;;  %2081 = vmatprep.subr.bf16.mxu1 %v4533_v63  ;;  %v5572_v62 = vld [vmem:[%s5524_s24 + $0x58] sm:$0xff]  ;;  %v6960_v39 = vunpack.c.l.bf16 %v5569_v61 }
 0x1ea   : >> { %892 = vbcast.lane.b32.xlu1 %v5491_v60, 264  ;;  %888 = vbcast.lane.b32.xlu0 %v5491_v60, 256 }
 0x1eb   : >> { %2274 = vmatprep.subr.bf16.mxu0 %v4535_v3 }
 0x1ec   : >> { %2082 = vmatpush1.bf16.msra.mxu1 %v4537_v4 }
 0x1ed   : >> { %2275 = vmatpush1.bf16.msra.mxu0 %v4538_v0  ;;  %2083 = vmatprep.subr.bf16.mxu1 %v4539_v1  ;;  %v5579_v1 = vld [vmem:[%s5524_s24 + $0x40] sm:$0xff] }
 0x1ee   : >> { %900 = vbcast.lane.b32.xlu1 %v5491_v60, 280  ;;  %896 = vbcast.lane.b32.xlu0 %v5491_v60, 272 }
 0x1ef   : >> { %2276 = vmatprep.subr.bf16.mxu0 %v4541_v2  ;;  %v5582_v2 = vld [vmem:[%s5524_s24 + $0x48] sm:$0xff] }
 0x1f0   : >> { %2084 = vmatpush1.bf16.msra.mxu1 %v4543_v5  ;;  %v5679_v5 = vld [vmem:[%s5524_s24 + $0xe0] sm:$0xff] }
 0x1f1   : >> { %2277 = vmatpush1.bf16.msra.mxu0 %v4544_v6  ;;  %2085 = vmatprep.subr.bf16.mxu1 %v4545_v7  ;;  %6950 = vst [vmem:[#allocation37_spill] sm:$0xff] %v5679_v5 }
 0x1f2   : >> { %908 = vbcast.lane.b32.xlu1 %v5491_v60, 296  ;;  %904 = vbcast.lane.b32.xlu0 %v5491_v60, 288 }
 0x1f3   : >> { %2278 = vmatprep.subr.bf16.mxu0 %v4547_v8  ;;  %v5669_v8 = vld [vmem:[%s5524_s24 + $0xf0] sm:$0xff] }
 0x1f4   : >> { %2086 = vmatpush1.bf16.msra.mxu1 %v4549_v9  ;;  %v5589_v9 = vld [vmem:[%s5524_s24 + $0x70] sm:$0xff]  ;;  %6948 = vst [vmem:[#allocation35_spill] sm:$0xff] %v5669_v8 }
 0x1f5   : >> { %2279 = vmatpush1.bf16.msra.mxu0 %v4550_v10  ;;  %2087 = vmatprep.subr.bf16.mxu1 %v4551_v11  ;;  %v5592_v10 = vld [vmem:[%s5524_s24 + $0x78] sm:$0xff] }
 0x1f6   : >> { %916 = vbcast.lane.b32.xlu1 %v5491_v60, 312  ;;  %912 = vbcast.lane.b32.xlu0 %v5491_v60, 304 }
 0x1f7   : >> { %2280 = vmatprep.subr.bf16.mxu0 %v4553_v15  ;;  %v5662_v15 = vld [vmem:[%s5524_s24 + $0xc8] sm:$0xff] }
 0x1f8   : >> { %2088 = vmatpush1.bf16.msra.mxu1 %v4555_v19  ;;  %v5599_v19 = vld [vmem:[%s5524_s24 + $0x60] sm:$0xff]  ;;  %6947 = vst [vmem:[#allocation34_spill] sm:$0xff] %v5662_v15 }
 0x1f9   : >> { %2281 = vmatpush1.bf16.msra.mxu0 %v4556_v20  ;;  %2089 = vmatprep.subr.bf16.mxu1 %v4557_v21  ;;  %v5602_v20 = vld [vmem:[%s5524_s24 + $0x68] sm:$0xff] }
 0x1fa   : >> { %924 = vbcast.lane.b32.xlu1 %v5491_v60, 328  ;;  %920 = vbcast.lane.b32.xlu0 %v5491_v60, 320  ;;  %v5682_v21 = vld [vmem:[%s5524_s24 + $0xe8] sm:$0xff] }
 0x1fb   : >> { %2282 = vmatprep.subr.bf16.mxu0 %v4559_v23  ;;  %v5642_v23 = vld [vmem:[%s5524_s24 + $0xa8] sm:$0xff]  ;;  %6951 = vst [vmem:[#allocation38_spill] sm:$0xff] %v5682_v21 }
 0x1fc   : >> { %2090 = vmatpush1.bf16.msra.mxu1 %v4561_v25  ;;  %v5632_v25 = vld [vmem:[%s5524_s24 + $0xb8] sm:$0xff] }
 0x1fd   : >> { %2283 = vmatpush1.bf16.msra.mxu0 %v4562_v26  ;;  %2091 = vmatprep.subr.bf16.mxu1 %v4563_v27  ;;  %v5609_v26 = vld [vmem:[%s5524_s24 + $0x90] sm:$0xff]  ;;  %v5612_v27 = vld [vmem:[%s5524_s24 + $0x98] sm:$0xff] }
 0x1fe   : >> { %932 = vbcast.lane.b32.xlu1 %v5491_v60, 344  ;;  %928 = vbcast.lane.b32.xlu0 %v5491_v60, 336 }
 0x1ff   : >> { %2284 = vmatprep.subr.bf16.mxu0 %v4565_v28 }
 0x200   : >> { %2092 = vmatpush1.bf16.msra.mxu1 %v4567_v30  ;;  %v5649_v30 = vld [vmem:[%s5524_s24 + $0xd0] sm:$0xff] }
 0x201   : >> { %2285 = vmatpush1.bf16.msra.mxu0 %v4568_v31 }
 0x202   : >> { %940 = vbcast.lane.b32.xlu1 %v5491_v60, 360  ;;  %936 = vbcast.lane.b32.xlu0 %v5491_v60, 352 }
 0x206   : >> { %948 = vbcast.lane.b32.xlu1 %v5491_v60, 376  ;;  %944 = vbcast.lane.b32.xlu0 %v5491_v60, 368  ;;  %v6865_v60 = vunpack.c.h.bf16 %v5536_v43 }
 0x23c   : >> { %v822_v4 = vpop.permute.xlu0 %821  ;;  %v830_v3 = vpop.permute.xlu1 %829 }
 0x23d   : >> { %v1049_v0 = vmul.f32 %v6858_v50, %v822_v4  ;;  %v1050_v16 = vmul.f32 %v6859_v51, %v822_v4  ;;  %v1051_v7 = vmul.f32 %v6860_v52, %v822_v4  ;;  %v1052_v6 = vmul.f32 %v6861_v53, %v822_v4 }
 0x23e   : >> { %v1057_v63 = vmul.f32 %v6862_v57, %v830_v3  ;;  %v1058_v24 = vmul.f32 %v6863_v58, %v830_v3  ;;  %v1059_v31 = vmul.f32 %v6864_v59, %v830_v3  ;;  %v1060_v50 = vmul.f32 %v6865_v60, %v830_v3 }
 0x23f   : >> { %v1217_v51 = vadd.f32 %v5539_v44, %v1049_v0  ;;  %v1219_v11 = vadd.f32 %v5541_v45, %v1051_v7  ;;  %v1218_v52 = vadd.f32 %v5544_v46, %v1050_v16  ;;  %v1220_v4 = vadd.f32 %v5546_v47, %v1052_v6 }
 0x240   : >> { %v5717_v53 = vadd.f32 %v5539_v44, %v1057_v63  ;;  %v1226_v57 = vadd.f32 %v5544_v46, %v1058_v24  ;;  %v5721_v58 = vadd.f32 %v5541_v45, %v1059_v31  ;;  %v1228_v59 = vadd.f32 %v5546_v47, %v1060_v50  ;;  %v826_v28 = vpop.permute.xlu0 %825  ;;  %v834_v3 = vpop.permute.xlu1 %833 }
 0x241   : >> { %v6952_v0 = vunpack.c.l.bf16 %v5549_v48  ;;  %v6953_v7 = vunpack.c.h.bf16 %v5549_v48  ;;  %v6954_v6 = vunpack.c.l.bf16 %v5552_v49  ;;  %v6955_v63 = vunpack.c.h.bf16 %v5552_v49 }
 0x242   : >> { %v6956_v24 = vunpack.c.l.bf16 %v5559_v54  ;;  %v1062_v50 = vmul.f32 %v6957_v17, %v834_v3  ;;  %v1063_v22 = vmul.f32 %v6958_v55, %v834_v3  ;;  %v1346_v41 = vmul.f32 0.2, %v1218_v52 }
 0x243   : >> { %v1053_v60 = vmul.f32 %v6952_v0, %v826_v28  ;;  %v1054_v16 = vmul.f32 %v6953_v7, %v826_v28  ;;  %v1055_v12 = vmul.f32 %v6954_v6, %v826_v28  ;;  %v1056_v13 = vmul.f32 %v6955_v63, %v826_v28 }
 0x244   : >> { %v1061_v31 = vmul.f32 %v6956_v24, %v834_v3  ;;  %v6959_v0 = vunpack.c.h.bf16 %v5562_v56  ;;  %v1230_v63 = vadd.f32 %v5544_v46, %v1062_v50  ;;  %v5748_v17 = vadd.f32 %v5541_v45, %v1063_v22  ;;  %v842_v24 = vpop.permute.xlu1 %841  ;;  %v838_v15 = vpop.permute.xlu0 %837 }
 0x245   : >> { %v1221_v7 = vadd.f32 %v5539_v44, %v1053_v60  ;;  %v1223_v42 = vadd.f32 %v5541_v45, %v1055_v12  ;;  %v1222_v6 = vadd.f32 %v5544_v46, %v1054_v16  ;;  %v1224_v60 = vadd.f32 %v5546_v47, %v1056_v13 }
 0x246   : >> { %v1064_v43 = vmul.f32 %v6959_v0, %v834_v3  ;;  %v5744_v28 = vadd.f32 %v5539_v44, %v1061_v31  ;;  %v1474_v3 = vmax.f32 %v1218_v52, %v1346_v41  ;;  %v1348_v0 = vmul.f32 0.2, %v1220_v4 }
 0x247   : >> { %v1350_v56 = vmul.f32 0.2, %v1222_v6  ;;  %v1345_v12 = vmul.f32 0.2, %v1217_v51  ;;  %v1349_v54 = vmul.f32 0.2, %v1221_v7  ;;  %v1069_v31 = vmul.f32 %v6960_v39, %v842_v24 }
 0x248   : >> { %v1232_v55 = vadd.f32 %v5546_v47, %v1064_v43  ;;  %v1347_v16 = vmul.f32 0.2, %v1219_v11  ;;  %v1352_v40 = vmul.f32 0.2, %v1224_v60  ;;  %v1476_v50 = vmax.f32 %v1220_v4, %v1348_v0 }
 0x249   : >> { %v1478_v38 = vmax.f32 %v1222_v6, %v1350_v56  ;;  %v1351_v37 = vmul.f32 0.2, %v1223_v42  ;;  %v1473_v22 = vmax.f32 %v1217_v51, %v1345_v12  ;;  %v1477_v36 = vmax.f32 %v1221_v7, %v1349_v54 }
 0x24a   : >> { %v1475_v49 = vmax.f32 %v1219_v11, %v1347_v16  ;;  %v1354_v43 = vmul.f32 0.2, %v1226_v57  ;;  %v1480_v21 = vmax.f32 %v1224_v60, %v1352_v40  ;;  %v1358_v52 = vmul.f32 0.2, %v1230_v63 }
 0x24b   : >> { %v1602_v48 = vpack.c.bf16 %v1478_v38, %v1474_v3  ;;  %v1479_v41 = vmax.f32 %v1223_v42, %v1351_v37  ;;  %v1601_v13 = vpack.c.bf16 %v1477_v36, %v1473_v22  ;;  %v1356_v34 = vmul.f32 0.2, %v1228_v59 }
 0x24c   : >> { %v1482_v5 = vmax.f32 %v1226_v57, %v1354_v43  ;;  %v1360_v8 = vmul.f32 0.2, %v1232_v55  ;;  %v1604_v14 = vpack.c.bf16 %v1480_v21, %v1476_v50  ;;  %v1486_v56 = vmax.f32 %v1230_v63, %v1358_v52  ;;  %v846_v50 = vpop.permute.xlu0 %845 }
 0x24d   : >> { %2093 = vmatprep.mubr.bf16.mxu1 %v1602_v48  ;;  %v1603_v39 = vpack.c.bf16 %v1479_v41, %v1475_v49  ;;  %v6961_v4 = vunpack.c.h.bf16 %v5569_v61  ;;  %v1484_v51 = vmax.f32 %v1228_v59, %v1356_v34  ;;  %v6962_v38 = vunpack.c.l.bf16 %v5572_v62 }
 0x24e   : >> { %2094 = vmatmul.mubr.bf16.vlgmr.msra.gmra.mrb[0].mxu1 %v1601_v13  ;;  %v1488_v54 = vmax.f32 %v1232_v55, %v1360_v8  ;;  %v6963_v37 = vunpack.c.h.bf16 %v5572_v62  ;;  %2286 = vmatprep.mubr.bf16.mxu0 %v1604_v14  ;;  %v1606_v42 = vpack.c.bf16 %v1486_v56, %v1482_v5  ;;  %v5761_v57 = vadd.f32 %v5539_v44, %v1069_v31  ;;  %v850_v14 = vpop.permute.xlu1 %849 }
 0x24f   : >> { %v1070_v6 = vmul.f32 %v6961_v4, %v842_v24  ;;  %v1071_v40 = vmul.f32 %v6962_v38, %v842_v24  ;;  %v6964_v49 = vunpack.c.l.bf16 %v5579_v1  ;;  %2287 = vmatmul.mubr.bf16.vlgmr.msra.gmra.mrb[0].mxu0 %v1603_v39  ;;  %v6965_v34 = vunpack.c.h.bf16 %v5579_v1 }
 0x250   : >> { %v1072_v36 = vmul.f32 %v6963_v37, %v842_v24  ;;  %v1608_v21 = vpack.c.bf16 %v1488_v54, %v1484_v51  ;;  %2103 = vmatprep.mubr.bf16.mxu1 %v1606_v42  ;;  %v6966_v5 = vunpack.c.l.bf16 %v5582_v2  ;;  %v6967_v55 = vunpack.c.h.bf16 %v5582_v2 }
 0x251   : >> { %v1238_v48 = vadd.f32 %v5544_v46, %v1070_v6  ;;  %v1065_v11 = vmul.f32 %v6964_v49, %v838_v15  ;;  %v5767_v59 = vadd.f32 %v5541_v45, %v1071_v40  ;;  %v1066_v7 = vmul.f32 %v6965_v34, %v838_v15 }
 0x252   : >> { %v1240_v8 = vadd.f32 %v5546_v47, %v1072_v36  ;;  %v1067_v63 = vmul.f32 %v6966_v5, %v838_v15  ;;  %v1068_v24 = vmul.f32 %v6967_v55, %v838_v15  ;;  %v1353_v60 = vmul.f32 0.2, %v5717_v53  ;;  %2296 = vmatprep.mubr.bf16.mxu0 %v1608_v21 }
 0x253   : >> { %v1233_v3 = vadd.f32 %v5539_v44, %v1065_v11  ;;  %v1234_v0 = vadd.f32 %v5544_v46, %v1066_v7  ;;  %v1357_v12 = vmul.f32 0.2, %v5744_v28  ;;  %v1355_v16 = vmul.f32 0.2, %v5721_v58 }
 0x254   : >> { %v1359_v31 = vmul.f32 0.2, %v5748_v17  ;;  %v1235_v22 = vadd.f32 %v5541_v45, %v1067_v63  ;;  %v1236_v43 = vadd.f32 %v5546_v47, %v1068_v24  ;;  %v1481_v15 = vmax.f32 %v5717_v53, %v1353_v60 }
 0x255   : >> { %v6968_v41 = vunpack.c.l.bf16 %v5589_v9  ;;  %v1485_v13 = vmax.f32 %v5744_v28, %v1357_v12  ;;  %v1483_v39 = vmax.f32 %v5721_v58, %v1355_v16  ;;  %v6969_v4 = vunpack.c.h.bf16 %v5589_v9 }
 0x256   : >> { %v1487_v56 = vmax.f32 %v5748_v17, %v1359_v31  ;;  %v6970_v51 = vunpack.c.l.bf16 %v5592_v10  ;;  %v6971_v38 = vunpack.c.h.bf16 %v5592_v10  ;;  %v6972_v37 = vunpack.c.l.bf16 %v5599_v19 }
 0x257   : >> { %v1077_v52 = vmul.f32 %v6968_v41, %v850_v14  ;;  %v1078_v6 = vmul.f32 %v6969_v4, %v850_v14  ;;  %v1605_v28 = vpack.c.bf16 %v1485_v13, %v1481_v15  ;;  %v6973_v17 = vunpack.c.h.bf16 %v5599_v19  ;;  %v858_v41 = vpop.permute.xlu1 %857 }
 0x258   : >> { %v1079_v54 = vmul.f32 %v6970_v51, %v850_v14  ;;  %v1080_v40 = vmul.f32 %v6971_v38, %v850_v14  ;;  %v1073_v36 = vmul.f32 %v6972_v37, %v846_v50  ;;  %v1607_v42 = vpack.c.bf16 %v1487_v56, %v1483_v39 }
 0x259   : >> { %v5797_v53 = vadd.f32 %v5539_v44, %v1077_v52  ;;  %v5802_v58 = vadd.f32 %v5544_v46, %v1078_v6  ;;  %v1074_v49 = vmul.f32 %v6973_v17, %v846_v50  ;;  %v6974_v34 = vunpack.c.l.bf16 %v5602_v20  ;;  %2104 = vmatmul.mubr.bf16.gmra.mrb[4].mxu1 %v1605_v28  ;;  %v854_v28 = vpop.permute.xlu0 %853 }
 0x25a   : >> { %v5807_v11 = vadd.f32 %v5541_v45, %v1079_v54  ;;  %v5810_v21 = vadd.f32 %v5546_v47, %v1080_v40  ;;  %v6975_v14 = vunpack.c.h.bf16 %v5602_v20  ;;  %2297 = vmatmul.mubr.bf16.gmra.mrb[4].mxu0 %v1607_v42  ;;  %v5817_v63 = vadd.f32 %v5539_v44, %v1073_v36 }
 0x25b   : >> { %v1075_v7 = vmul.f32 %v6974_v34, %v846_v50  ;;  %v1242_v55 = vadd.f32 %v5544_v46, %v1074_v49  ;;  %v1362_v24 = vmul.f32 0.2, %v1234_v0  ;;  %v1366_v60 = vmul.f32 0.2, %v1238_v48 }
 0x25c   : >> { %v1076_v5 = vmul.f32 %v6975_v14, %v846_v50  ;;  %v1364_v31 = vmul.f32 0.2, %v1236_v43  ;;  %v1368_v15 = vmul.f32 0.2, %v1240_v8  ;;  %v1361_v50 = vmul.f32 0.2, %v1233_v3 }
 0x25d   : >> { %v5821_v12 = vadd.f32 %v5541_v45, %v1075_v7  ;;  %v1490_v52 = vmax.f32 %v1234_v0, %v1362_v24  ;;  %v1494_v13 = vmax.f32 %v1238_v48, %v1366_v60  ;;  %v1365_v39 = vmul.f32 0.2, %v5761_v57 }
 0x25e   : >> { %v1244_v16 = vadd.f32 %v5546_v47, %v1076_v5  ;;  %v1492_v56 = vmax.f32 %v1236_v43, %v1364_v31  ;;  %v1496_v4 = vmax.f32 %v1240_v8, %v1368_v15  ;;  %v1363_v6 = vmul.f32 0.2, %v1235_v22 }
 0x25f   : >> { %v1367_v51 = vmul.f32 0.2, %v5767_v59  ;;  %v1610_v54 = vpack.c.bf16 %v1494_v13, %v1490_v52  ;;  %v1489_v38 = vmax.f32 %v1233_v3, %v1361_v50  ;;  %v1493_v40 = vmax.f32 %v5761_v57, %v1365_v39 }
 0x260   : >> { %v6976_v37 = vunpack.c.l.bf16 %v5609_v26  ;;  %v1612_v42 = vpack.c.bf16 %v1496_v4, %v1492_v56  ;;  %v1491_v17 = vmax.f32 %v1235_v22, %v1363_v6  ;;  %v6977_v0 = vunpack.c.h.bf16 %v5609_v26 }
 0x261   : >> { %v1495_v48 = vmax.f32 %v5767_v59, %v1367_v51  ;;  %2113 = vmatprep.mubr.bf16.mxu1 %v1610_v54  ;;  %v1609_v8 = vpack.c.bf16 %v1493_v40, %v1489_v38  ;;  %v6978_v43 = vunpack.c.l.bf16 %v5612_v27  ;;  %v6979_v3 = vunpack.c.h.bf16 %v5612_v27 }
 0x262   : >> { %v1085_v36 = vmul.f32 %v6976_v37, %v858_v41  ;;  %v1086_v49 = vmul.f32 %v6977_v0, %v858_v41  ;;  %2306 = vmatprep.mubr.bf16.mxu0 %v1612_v42  ;;  %v6980_v59 = vunpack.c.l.bf16 %v5619_v32  ;;  %v6981_v24 = vunpack.c.h.bf16 %v5619_v32  ;;  %v866_v37 = vpop.permute.xlu1 %865 }
 0x263   : >> { %v1087_v34 = vmul.f32 %v6978_v43, %v858_v41  ;;  %v1088_v7 = vmul.f32 %v6979_v3, %v858_v41  ;;  %v1611_v14 = vpack.c.bf16 %v1495_v48, %v1491_v17  ;;  %2114 = vmatmul.mubr.bf16.gmra.mrb[8].mxu1 %v1609_v8  ;;  %v6982_v41 = vunpack.c.l.bf16 %v5622_v33 }
 0x264   : >> { %v5837_v57 = vadd.f32 %v5539_v44, %v1085_v36  ;;  %v5840_v22 = vadd.f32 %v5544_v46, %v1086_v49  ;;  %v1081_v5 = vmul.f32 %v6980_v59, %v854_v28  ;;  %v1082_v60 = vmul.f32 %v6981_v24, %v854_v28 }
 0x265   : >> { %v5847_v31 = vadd.f32 %v5541_v45, %v1087_v34  ;;  %v5850_v15 = vadd.f32 %v5546_v47, %v1088_v7  ;;  %v1083_v52 = vmul.f32 %v6982_v41, %v854_v28  ;;  %v6983_v13 = vunpack.c.h.bf16 %v5622_v33  ;;  %2307 = vmatmul.mubr.bf16.gmra.mrb[8].mxu0 %v1611_v14 }
 0x266   : >> { %v5857_v39 = vadd.f32 %v5539_v44, %v1081_v5  ;;  %v1250_v56 = vadd.f32 %v5544_v46, %v1082_v60  ;;  %v1370_v4 = vmul.f32 0.2, %v1242_v55  ;;  %v1374_v6 = vmul.f32 0.2, %v5802_v58 }
 0x267   : >> { %v1084_v50 = vmul.f32 %v6983_v13, %v854_v28  ;;  %v5862_v51 = vadd.f32 %v5541_v45, %v1083_v52  ;;  %v1372_v38 = vmul.f32 0.2, %v1244_v16  ;;  %v1376_v40 = vmul.f32 0.2, %v5810_v21 }
 0x268   : >> { %v1498_v36 = vmax.f32 %v1242_v55, %v1370_v4  ;;  %v1502_v28 = vmax.f32 %v5802_v58, %v1374_v6  ;;  %v1369_v42 = vmul.f32 0.2, %v5817_v63  ;;  %v1373_v17 = vmul.f32 0.2, %v5797_v53  ;;  %v862_v58 = vpop.permute.xlu0 %861 }
 0x269   : >> { %v1252_v54 = vadd.f32 %v5546_v47, %v1084_v50  ;;  %v1500_v48 = vmax.f32 %v1244_v16, %v1372_v38  ;;  %v1504_v0 = vmax.f32 %v5810_v21, %v1376_v40  ;;  %v1371_v49 = vmul.f32 0.2, %v5821_v12 }
 0x26a   : >> { %v1375_v8 = vmul.f32 0.2, %v5807_v11  ;;  %v1614_v43 = vpack.c.bf16 %v1502_v28, %v1498_v36  ;;  %v1497_v34 = vmax.f32 %v5817_v63, %v1369_v42  ;;  %v1501_v3 = vmax.f32 %v5797_v53, %v1373_v17 }
 0x26b   : >> { %v6984_v55 = vunpack.c.l.bf16 %v5629_v29  ;;  %v1616_v14 = vpack.c.bf16 %v1504_v0, %v1500_v48  ;;  %v1499_v59 = vmax.f32 %v5821_v12, %v1371_v49  ;;  %v6985_v21 = vunpack.c.h.bf16 %v5629_v29 }
 0x26c   : >> { %v1503_v16 = vmax.f32 %v5807_v11, %v1375_v8  ;;  %2123 = vmatprep.mubr.bf16.mxu1 %v1614_v43  ;;  %v1613_v24 = vpack.c.bf16 %v1501_v3, %v1497_v34  ;;  %v6986_v60 = vunpack.c.l.bf16 %v5632_v25  ;;  %v6987_v63 = vunpack.c.h.bf16 %v5632_v25 }
 0x26d   : >> { %v1093_v7 = vmul.f32 %v6984_v55, %v866_v37  ;;  %v1094_v5 = vmul.f32 %v6985_v21, %v866_v37  ;;  %2316 = vmatprep.mubr.bf16.mxu0 %v1616_v14  ;;  %v6988_v11 = vunpack.c.l.bf16 %v5639_v35  ;;  %v6989_v4 = vunpack.c.h.bf16 %v5639_v35  ;;  %v874_v55 = vpop.permute.xlu1 %873 }
 0x26e   : >> { %v1095_v41 = vmul.f32 %v6986_v60, %v866_v37  ;;  %v1096_v53 = vmul.f32 %v6987_v63, %v866_v37  ;;  %v1615_v13 = vpack.c.bf16 %v1503_v16, %v1499_v59  ;;  %2124 = vmatmul.mubr.bf16.gmra.mrb[12].mxu1 %v1613_v24  ;;  %v6990_v37 = vunpack.c.l.bf16 %v5642_v23 }
 0x26f   : >> { %v5885_v52 = vadd.f32 %v5539_v44, %v1093_v7  ;;  %v5888_v12 = vadd.f32 %v5544_v46, %v1094_v5  ;;  %v1089_v50 = vmul.f32 %v6988_v11, %v862_v58  ;;  %v1090_v6 = vmul.f32 %v6989_v4, %v862_v58 }
 0x270   : >> { %v5895_v38 = vadd.f32 %v5541_v45, %v1095_v41  ;;  %v5898_v40 = vadd.f32 %v5546_v47, %v1096_v53  ;;  %v1091_v36 = vmul.f32 %v6990_v37, %v862_v58  ;;  %v6991_v28 = vunpack.c.h.bf16 %v5642_v23  ;;  %2317 = vmatmul.mubr.bf16.gmra.mrb[12].mxu0 %v1615_v13 }
 0x271   : >> { %v5905_v17 = vadd.f32 %v5539_v44, %v1089_v50  ;;  %v1258_v48 = vadd.f32 %v5544_v46, %v1090_v6  ;;  %v1378_v0 = vmul.f32 0.2, %v1250_v56  ;;  %v1382_v49 = vmul.f32 0.2, %v5840_v22 }
 0x272   : >> { %v1092_v42 = vmul.f32 %v6991_v28, %v862_v58  ;;  %v5910_v8 = vadd.f32 %v5541_v45, %v1091_v36  ;;  %v1380_v34 = vmul.f32 0.2, %v1252_v54  ;;  %v1384_v3 = vmul.f32 0.2, %v5850_v15 }
 0x273   : >> { %v1506_v7 = vmax.f32 %v1250_v56, %v1378_v0  ;;  %v1510_v58 = vmax.f32 %v5840_v22, %v1382_v49  ;;  %v1377_v14 = vmul.f32 0.2, %v5857_v39  ;;  %v1381_v59 = vmul.f32 0.2, %v5837_v57  ;;  %v870_v22 = vpop.permute.xlu0 %869 }
 0x274   : >> { %v1260_v43 = vadd.f32 %v5546_v47, %v1092_v42  ;;  %v1508_v16 = vmax.f32 %v1252_v54, %v1380_v34  ;;  %v1512_v21 = vmax.f32 %v5850_v15, %v1384_v3  ;;  %v1379_v5 = vmul.f32 0.2, %v5862_v51 }
 0x275   : >> { %v1383_v24 = vmul.f32 0.2, %v5847_v31  ;;  %v1618_v60 = vpack.c.bf16 %v1510_v58, %v1506_v7  ;;  %v1505_v41 = vmax.f32 %v5857_v39, %v1377_v14  ;;  %v1509_v63 = vmax.f32 %v5837_v57, %v1381_v59  ;;  %v6999_v7 = vld [vmem:[#allocation34_spill] sm:$0xff] }
 0x276   : >> { %v6992_v56 = vunpack.c.l.bf16 %v5649_v30  ;;  %v1620_v13 = vpack.c.bf16 %v1512_v21, %v1508_v16  ;;  %v1507_v11 = vmax.f32 %v5862_v51, %v1379_v5  ;;  %v6993_v15 = vunpack.c.h.bf16 %v5649_v30 }
 0x277   : >> { %v1511_v54 = vmax.f32 %v5847_v31, %v1383_v24  ;;  %2133 = vmatprep.mubr.bf16.mxu1 %v1618_v60  ;;  %v1617_v4 = vpack.c.bf16 %v1509_v63, %v1505_v41  ;;  %v6994_v6 = vunpack.c.l.bf16 %v5652_v18  ;;  %v6995_v39 = vunpack.c.h.bf16 %v5652_v18  ;;  %v6996_v31 = vld [vmem:[#allocation33_spill] sm:$0xff] }
 0x278   : >> { %v1101_v53 = vmul.f32 %v6992_v56, %v874_v55  ;;  %v1102_v50 = vmul.f32 %v6993_v15, %v874_v55  ;;  %2326 = vmatprep.mubr.bf16.mxu0 %v1620_v13  ;;  %v6997_v42 = vunpack.c.l.bf16 %v6996_v31  ;;  %v6998_v49 = vunpack.c.h.bf16 %v6996_v31  ;;  %v882_v13 = vpop.permute.xlu1 %881 }
 0x279   : >> { %v1103_v37 = vmul.f32 %v6994_v6, %v874_v55  ;;  %v1104_v57 = vmul.f32 %v6995_v39, %v874_v55  ;;  %v1619_v28 = vpack.c.bf16 %v1511_v54, %v1507_v11  ;;  %2134 = vmatmul.mubr.bf16.gmra.mrb[16].mxu1 %v1617_v4  ;;  %v7000_v58 = vunpack.c.l.bf16 %v6999_v7 }
 0x27a   : >> { %v5933_v36 = vadd.f32 %v5539_v44, %v1101_v53  ;;  %v5936_v51 = vadd.f32 %v5544_v46, %v1102_v50  ;;  %v1097_v0 = vmul.f32 %v6997_v42, %v870_v22  ;;  %v1098_v34 = vmul.f32 %v6998_v49, %v870_v22  ;;  %v7002_v42 = vld [vmem:[#allocation35_spill] sm:$0xff] }
 0x27b   : >> { %v5943_v3 = vadd.f32 %v5541_v45, %v1103_v37  ;;  %v5946_v55 = vadd.f32 %v5546_v47, %v1104_v57  ;;  %v1099_v14 = vmul.f32 %v7000_v58, %v870_v22  ;;  %v7001_v59 = vunpack.c.h.bf16 %v6999_v7  ;;  %2327 = vmatmul.mubr.bf16.gmra.mrb[16].mxu0 %v1619_v28 }
 0x27c   : >> { %v5953_v21 = vadd.f32 %v5539_v44, %v1097_v0  ;;  %v1266_v5 = vadd.f32 %v5544_v46, %v1098_v34  ;;  %v1386_v24 = vmul.f32 0.2, %v1258_v48  ;;  %v1390_v60 = vmul.f32 0.2, %v5888_v12 }
 0x27d   : >> { %v1100_v16 = vmul.f32 %v7001_v59, %v870_v22  ;;  %v5958_v41 = vadd.f32 %v5541_v45, %v1099_v14  ;;  %v1388_v56 = vmul.f32 0.2, %v1260_v43  ;;  %v1392_v53 = vmul.f32 0.2, %v5898_v40  ;;  %v7005_v59 = vld [vmem:[#allocation36_spill] sm:$0xff] }
 0x27e   : >> { %v1514_v11 = vmax.f32 %v1258_v48, %v1386_v24  ;;  %v1518_v22 = vmax.f32 %v5888_v12, %v1390_v60  ;;  %v1385_v54 = vmul.f32 0.2, %v5905_v17  ;;  %v1389_v15 = vmul.f32 0.2, %v5885_v52  ;;  %v878_v12 = vpop.permute.xlu0 %877 }
 0x27f   : >> { %v1268_v63 = vadd.f32 %v5546_v47, %v1100_v16  ;;  %v1516_v50 = vmax.f32 %v1260_v43, %v1388_v56  ;;  %v1520_v4 = vmax.f32 %v5898_v40, %v1392_v53  ;;  %v1387_v6 = vmul.f32 0.2, %v5910_v8 }
 0x280   : >> { %v1391_v37 = vmul.f32 0.2, %v5895_v38  ;;  %v1622_v39 = vpack.c.bf16 %v1518_v22, %v1514_v11  ;;  %v1513_v57 = vmax.f32 %v5905_v17, %v1385_v54  ;;  %v1517_v28 = vmax.f32 %v5885_v52, %v1389_v15 }
 0x281   : >> { %v7003_v48 = vunpack.c.l.bf16 %v7002_v42  ;;  %v1624_v49 = vpack.c.bf16 %v1520_v4, %v1516_v50  ;;  %v1515_v34 = vmax.f32 %v5910_v8, %v1387_v6  ;;  %v7004_v40 = vunpack.c.h.bf16 %v7002_v42  ;;  %v7011_v50 = vld [vmem:[#allocation38_spill] sm:$0xff] }
 0x282   : >> { %v1519_v43 = vmax.f32 %v5895_v38, %v1391_v37  ;;  %2143 = vmatprep.mubr.bf16.mxu1 %v1622_v39  ;;  %v1621_v14 = vpack.c.bf16 %v1517_v28, %v1513_v57  ;;  %v7006_v16 = vunpack.c.l.bf16 %v7005_v59  ;;  %v7007_v17 = vunpack.c.h.bf16 %v7005_v59  ;;  %v7008_v38 = vld [vmem:[#allocation37_spill] sm:$0xff] }
 0x283   : >> { %v1109_v0 = vmul.f32 %v7003_v48, %v882_v13  ;;  %v1110_v58 = vmul.f32 %v7004_v40, %v882_v13  ;;  %2336 = vmatprep.mubr.bf16.mxu0 %v1624_v49  ;;  %v7009_v53 = vunpack.c.l.bf16 %v7008_v38  ;;  %v7010_v22 = vunpack.c.h.bf16 %v7008_v38 }
 0x284   : >> { %v1111_v24 = vmul.f32 %v7006_v16, %v882_v13  ;;  %v1112_v52 = vmul.f32 %v7007_v17, %v882_v13  ;;  %v1623_v56 = vpack.c.bf16 %v1519_v43, %v1515_v34  ;;  %2144 = vmatmul.mubr.bf16.gmra.mrb[20].mxu1 %v1621_v14  ;;  %v7012_v4 = vunpack.c.l.bf16 %v7011_v50 }
 0x285   : >> { %v5981_v60 = vadd.f32 %v5539_v44, %v1109_v0  ;;  %v5984_v8 = vadd.f32 %v5544_v46, %v1110_v58  ;;  %v1105_v11 = vmul.f32 %v7009_v53, %v878_v12  ;;  %v1106_v54 = vmul.f32 %v7010_v22, %v878_v12  ;;  %v893_v58 = vpop.permute.xlu1 %892  ;;  %v7014_v53 = vld [vmem:[#allocation29_spill] sm:$0xff] }
 0x286   : >> { %v5991_v15 = vadd.f32 %v5541_v45, %v1111_v24  ;;  %v5994_v13 = vadd.f32 %v5546_v47, %v1112_v52  ;;  %v1107_v6 = vmul.f32 %v7012_v4, %v878_v12  ;;  %v7013_v37 = vunpack.c.h.bf16 %v7011_v50  ;;  %2337 = vmatmul.mubr.bf16.gmra.mrb[20].mxu0 %v1623_v56 }
 0x287   : >> { %v6001_v57 = vadd.f32 %v5539_v44, %v1105_v11  ;;  %v1274_v28 = vadd.f32 %v5544_v46, %v1106_v54  ;;  %v1394_v48 = vmul.f32 0.2, %v1266_v5  ;;  %v1398_v0 = vmul.f32 0.2, %v5936_v51 }
 0x288   : >> { %v1108_v39 = vmul.f32 %v7013_v37, %v878_v12  ;;  %v6006_v49 = vadd.f32 %v5541_v45, %v1107_v6  ;;  %v1396_v43 = vmul.f32 0.2, %v1268_v63  ;;  %v1400_v40 = vmul.f32 0.2, %v5946_v55  ;;  %v7017_v37 = vld [vmem:[#allocation30_spill] sm:$0xff] }
 0x289   : >> { %v1522_v14 = vmax.f32 %v1266_v5, %v1394_v48  ;;  %v1526_v12 = vmax.f32 %v5936_v51, %v1398_v0  ;;  %v1393_v44 = vmul.f32 0.2, %v5953_v21  ;;  %v1397_v16 = vmul.f32 0.2, %v5933_v36  ;;  %v889_v51 = vpop.permute.xlu0 %888  ;;  %v7020_v0 = vld [vmem:[#allocation21_spill] sm:$0xff] }
 0x28a   : >> { %v1276_v34 = vadd.f32 %v5546_v47, %v1108_v39  ;;  %v1524_v46 = vmax.f32 %v1268_v63, %v1396_v43  ;;  %v1528_v24 = vmax.f32 %v5946_v55, %v1400_v40  ;;  %v1395_v17 = vmul.f32 0.2, %v5958_v41 }
 0x28b   : >> { %v1399_v45 = vmul.f32 0.2, %v5943_v3  ;;  %v1626_v52 = vpack.c.bf16 %v1526_v12, %v1522_v14  ;;  %v1521_v47 = vmax.f32 %v5953_v21, %v1393_v44  ;;  %v1525_v56 = vmax.f32 %v5933_v36, %v1397_v16  ;;  %v7021_v14 = vld [vmem:[#allocation22_spill] sm:$0xff] }
 0x28c   : >> { %v7015_v5 = vunpack.c.l.bf16 %v7014_v53  ;;  %v1628_v22 = vpack.c.bf16 %v1528_v24, %v1524_v46  ;;  %v1523_v54 = vmax.f32 %v5958_v41, %v1395_v17  ;;  %v7016_v55 = vunpack.c.h.bf16 %v7014_v53  ;;  %v7025_v24 = vld [vmem:[#allocation23_spill] sm:$0xff] }
 0x28d   : >> { %v1527_v63 = vmax.f32 %v5943_v3, %v1399_v45  ;;  %2153 = vmatprep.mubr.bf16.mxu1 %v1626_v52  ;;  %v1625_v6 = vpack.c.bf16 %v1525_v56, %v1521_v47  ;;  %v7018_v39 = vunpack.c.l.bf16 %v7017_v37  ;;  %v7019_v21 = vunpack.c.h.bf16 %v7017_v37  ;;  %v7022_v3 = vld [vmem:[#allocation25_spill] sm:$0xff]  ;;  %v7026_v45 = vld [vmem:[#allocation24_spill] sm:$0xff]  ;;  %v7027_v52 = vld [vmem:[#allocation26_spill] sm:$0xff] }
 0x28e   : >> { %v1117_v11 = vmul.f32 %v7015_v5, %v893_v58  ;;  %v1118_v4 = vmul.f32 %v7016_v55, %v893_v58  ;;  %2346 = vmatprep.mubr.bf16.mxu0 %v1628_v22  ;;  %v7023_v12 = vunpack.c.l.bf16 %v7022_v3  ;;  %v7024_v16 = vunpack.c.h.bf16 %v7022_v3 }
 0x28f   : >> { %v1119_v48 = vmul.f32 %v7018_v39, %v893_v58  ;;  %v1120_v36 = vmul.f32 %v7019_v21, %v893_v58  ;;  %v1627_v40 = vpack.c.bf16 %v1527_v63, %v1523_v54  ;;  %2154 = vmatmul.mubr.bf16.gmra.mrb[24].mxu1 %v1625_v6  ;;  %v7028_v47 = vunpack.c.l.bf16 %v7027_v52  ;;  %v901_v39 = vpop.permute.xlu1 %900 }
 0x290   : >> { %v6029_v43 = vadd.f32 %v7020_v0, %v1117_v11  ;;  %v6032_v41 = vadd.f32 %v7021_v14, %v1118_v4  ;;  %v1113_v44 = vmul.f32 %v7023_v12, %v889_v51  ;;  %v1114_v46 = vmul.f32 %v7024_v16, %v889_v51 }
 0x291   : >> { %v6039_v17 = vadd.f32 %v7025_v24, %v1119_v48  ;;  %v6042_v58 = vadd.f32 %v7026_v45, %v1120_v36  ;;  %v1115_v56 = vmul.f32 %v7028_v47, %v889_v51  ;;  %v7029_v53 = vunpack.c.h.bf16 %v7027_v52  ;;  %2347 = vmatmul.mubr.bf16.gmra.mrb[24].mxu0 %v1627_v40  ;;  %v7030_v47 = vld [vmem:[#allocation31_spill] sm:$0xff] }
 0x292   : >> { %v6049_v11 = vadd.f32 %v7020_v0, %v1113_v44  ;;  %v1282_v22 = vadd.f32 %v7021_v14, %v1114_v46  ;;  %v1402_v54 = vmul.f32 0.2, %v1274_v28  ;;  %v1406_v63 = vmul.f32 0.2, %v5984_v8 }
 0x293   : >> { %v1116_v5 = vmul.f32 %v7029_v53, %v889_v51  ;;  %v6054_v55 = vadd.f32 %v7025_v24, %v1115_v56  ;;  %v1404_v6 = vmul.f32 0.2, %v1276_v34  ;;  %v1408_v37 = vmul.f32 0.2, %v5994_v13 }
 0x294   : >> { %v1530_v48 = vmax.f32 %v1274_v28, %v1402_v54  ;;  %v1534_v51 = vmax.f32 %v5984_v8, %v1406_v63  ;;  %v1401_v21 = vmul.f32 0.2, %v6001_v57  ;;  %v1405_v36 = vmul.f32 0.2, %v5981_v60  ;;  %v897_v8 = vpop.permute.xlu0 %896 }
 0x295   : >> { %v1284_v4 = vadd.f32 %v7026_v45, %v1116_v5  ;;  %v1532_v40 = vmax.f32 %v1276_v34, %v1404_v6  ;;  %v1536_v3 = vmax.f32 %v5994_v13, %v1408_v37  ;;  %v1403_v12 = vmul.f32 0.2, %v6006_v49  ;;  %v7033_v6 = vld [vmem:[#allocation32_spill] sm:$0xff] }
 0x296   : >> { %v1407_v44 = vmul.f32 0.2, %v5991_v15  ;;  %v1630_v16 = vpack.c.bf16 %v1534_v51, %v1530_v48  ;;  %v1529_v46 = vmax.f32 %v6001_v57, %v1401_v21  ;;  %v1533_v52 = vmax.f32 %v5981_v60, %v1405_v36 }
 0x297   : >> { %v7031_v28 = vunpack.c.l.bf16 %v7030_v47  ;;  %v1632_v53 = vpack.c.bf16 %v1536_v3, %v1532_v40  ;;  %v1531_v5 = vmax.f32 %v6006_v49, %v1403_v12  ;;  %v7032_v13 = vunpack.c.h.bf16 %v7030_v47 }
 0x298   : >> { %v1535_v34 = vmax.f32 %v5991_v15, %v1407_v44  ;;  %2163 = vmatprep.mubr.bf16.mxu1 %v1630_v16  ;;  %v1629_v63 = vpack.c.bf16 %v1533_v52, %v1529_v46  ;;  %v7034_v37 = vunpack.c.l.bf16 %v7033_v6  ;;  %v7035_v57 = vunpack.c.h.bf16 %v7033_v6  ;;  %v7036_v15 = vld [vmem:[#allocation27_spill] sm:$0xff]  ;;  %v7039_v16 = vld [vmem:[#allocation28_spill] sm:$0xff] }
 0x299   : >> { %v1125_v56 = vmul.f32 %v7031_v28, %v901_v39  ;;  %v1126_v54 = vmul.f32 %v7032_v13, %v901_v39  ;;  %2356 = vmatprep.mubr.bf16.mxu0 %v1632_v53  ;;  %v7037_v36 = vunpack.c.l.bf16 %v7036_v15  ;;  %v7038_v3 = vunpack.c.h.bf16 %v7036_v15 }
 0x29a   : >> { %v1127_v48 = vmul.f32 %v7034_v37, %v901_v39  ;;  %v1128_v60 = vmul.f32 %v7035_v57, %v901_v39  ;;  %v1631_v21 = vpack.c.bf16 %v1535_v34, %v1531_v5  ;;  %2164 = vmatmul.mubr.bf16.gmra.mrb[28].mxu1 %v1629_v63  ;;  %v7040_v46 = vunpack.c.l.bf16 %v7039_v16  ;;  %v909_v37 = vpop.permute.xlu1 %908 }
 0x29b   : >> { %v6077_v51 = vadd.f32 %v7020_v0, %v1125_v56  ;;  %v6080_v49 = vadd.f32 %v7021_v14, %v1126_v54  ;;  %v1121_v40 = vmul.f32 %v7037_v36, %v897_v8  ;;  %v1122_v12 = vmul.f32 %v7038_v3, %v897_v8 }
 0x29c   : >> { %v6087_v44 = vadd.f32 %v7025_v24, %v1127_v48  ;;  %v6090_v39 = vadd.f32 %v7026_v45, %v1128_v60  ;;  %v1123_v52 = vmul.f32 %v7040_v46, %v897_v8  ;;  %v7041_v47 = vunpack.c.h.bf16 %v7039_v16  ;;  %2357 = vmatmul.mubr.bf16.gmra.mrb[28].mxu0 %v1631_v21 }
 0x29d   : >> { %v6097_v56 = vadd.f32 %v7020_v0, %v1121_v40  ;;  %v1290_v53 = vadd.f32 %v7021_v14, %v1122_v12  ;;  %v1410_v5 = vmul.f32 0.2, %v1282_v22  ;;  %v1414_v34 = vmul.f32 0.2, %v6032_v41 }
 0x29e   : >> { %v1124_v28 = vmul.f32 %v7041_v47, %v897_v8  ;;  %v6102_v13 = vadd.f32 %v7025_v24, %v1123_v52  ;;  %v1412_v63 = vmul.f32 0.2, %v1284_v4  ;;  %v1416_v6 = vmul.f32 0.2, %v6042_v58 }
 0x29f   : >> { %v1538_v48 = vmax.f32 %v1282_v22, %v1410_v5  ;;  %v1542_v8 = vmax.f32 %v6032_v41, %v1414_v34  ;;  %v1409_v57 = vmul.f32 0.2, %v6049_v11  ;;  %v1413_v60 = vmul.f32 0.2, %v6029_v43  ;;  %v905_v41 = vpop.permute.xlu0 %904 }
 0x2a0   : >> { %v1292_v54 = vadd.f32 %v7026_v45, %v1124_v28  ;;  %v1540_v21 = vmax.f32 %v1284_v4, %v1412_v63  ;;  %v1544_v15 = vmax.f32 %v6042_v58, %v1416_v6  ;;  %v1411_v36 = vmul.f32 0.2, %v6054_v55 }
 0x2a1   : >> { %v1415_v40 = vmul.f32 0.2, %v6039_v17  ;;  %v1634_v3 = vpack.c.bf16 %v1542_v8, %v1538_v48  ;;  %v1537_v12 = vmax.f32 %v6049_v11, %v1409_v57  ;;  %v1541_v16 = vmax.f32 %v6029_v43, %v1413_v60 }
 0x2a2   : >> { %v7042_v22 = vunpack.c.l.bf16 %v5569_v61  ;;  %v1636_v52 = vpack.c.bf16 %v1544_v15, %v1540_v21  ;;  %v1539_v47 = vmax.f32 %v6054_v55, %v1411_v36  ;;  %v7043_v58 = vunpack.c.h.bf16 %v5569_v61 }
 0x2a3   : >> { %v1543_v4 = vmax.f32 %v6039_v17, %v1415_v40  ;;  %2173 = vmatprep.mubr.bf16.mxu1 %v1634_v3  ;;  %v1633_v5 = vpack.c.bf16 %v1541_v16, %v1537_v12  ;;  %v7044_v34 = vunpack.c.l.bf16 %v5572_v62  ;;  %v7045_v11 = vunpack.c.h.bf16 %v5572_v62 }
 0x2a4   : >> { %v1133_v46 = vmul.f32 %v7042_v22, %v909_v37  ;;  %v1134_v28 = vmul.f32 %v7043_v58, %v909_v37  ;;  %2366 = vmatprep.mubr.bf16.mxu0 %v1636_v52  ;;  %v7046_v17 = vunpack.c.l.bf16 %v5579_v1  ;;  %v7047_v8 = vunpack.c.h.bf16 %v5579_v1 }
 0x2a5   : >> { %v1135_v63 = vmul.f32 %v7044_v34, %v909_v37  ;;  %v1136_v43 = vmul.f32 %v7045_v11, %v909_v37  ;;  %v1635_v48 = vpack.c.bf16 %v1543_v4, %v1539_v47  ;;  %2174 = vmatmul.mubr.bf16.gmra.mrb[32].mxu1 %v1633_v5  ;;  %v7048_v37 = vunpack.c.l.bf16 %v5582_v2  ;;  %v917_v47 = vpop.permute.xlu1 %916 }
 0x2a6   : >> { %v6125_v6 = vadd.f32 %v7020_v0, %v1133_v46  ;;  %v6128_v55 = vadd.f32 %v7021_v14, %v1134_v28  ;;  %v1129_v61 = vmul.f32 %v7046_v17, %v905_v41  ;;  %v1130_v57 = vmul.f32 %v7047_v8, %v905_v41 }
 0x2a7   : >> { %v6135_v60 = vadd.f32 %v7025_v24, %v1135_v63  ;;  %v6138_v62 = vadd.f32 %v7026_v45, %v1136_v43  ;;  %v1131_v21 = vmul.f32 %v7048_v37, %v905_v41  ;;  %v7049_v15 = vunpack.c.h.bf16 %v5582_v2  ;;  %2367 = vmatmul.mubr.bf16.gmra.mrb[32].mxu0 %v1635_v48 }
 0x2a8   : >> { %v6145_v40 = vadd.f32 %v7020_v0, %v1129_v61  ;;  %v1298_v1 = vadd.f32 %v7021_v14, %v1130_v57  ;;  %v1418_v3 = vmul.f32 0.2, %v1290_v53  ;;  %v1422_v12 = vmul.f32 0.2, %v6080_v49 }
 0x2a9   : >> { %v1132_v36 = vmul.f32 %v7049_v15, %v905_v41  ;;  %v6150_v16 = vadd.f32 %v7025_v24, %v1131_v21  ;;  %v1420_v46 = vmul.f32 0.2, %v1292_v54  ;;  %v1424_v52 = vmul.f32 0.2, %v6090_v39 }
 0x2aa   : >> { %v1546_v2 = vmax.f32 %v1290_v53, %v1418_v3  ;;  %v1550_v41 = vmax.f32 %v6080_v49, %v1422_v12  ;;  %v1417_v4 = vmul.f32 0.2, %v6097_v56  ;;  %v1421_v58 = vmul.f32 0.2, %v6077_v51  ;;  %v913_v49 = vpop.permute.xlu0 %912 }
 0x2ab   : >> { %v1300_v22 = vadd.f32 %v7026_v45, %v1132_v36  ;;  %v1548_v28 = vmax.f32 %v1292_v54, %v1420_v46  ;;  %v1552_v5 = vmax.f32 %v6090_v39, %v1424_v52  ;;  %v1419_v34 = vmul.f32 0.2, %v6102_v13 }
 0x2ac   : >> { %v1423_v63 = vmul.f32 0.2, %v6087_v44  ;;  %v1638_v11 = vpack.c.bf16 %v1550_v41, %v1546_v2  ;;  %v1545_v43 = vmax.f32 %v6097_v56, %v1417_v4  ;;  %v1549_v48 = vmax.f32 %v6077_v51, %v1421_v58 }
 0x2ad   : >> { %v7050_v53 = vunpack.c.l.bf16 %v5589_v9  ;;  %v1640_v61 = vpack.c.bf16 %v1552_v5, %v1548_v28  ;;  %v1547_v8 = vmax.f32 %v6102_v13, %v1419_v34  ;;  %v7051_v39 = vunpack.c.h.bf16 %v5589_v9 }
 0x2ae   : >> { %v1551_v54 = vmax.f32 %v6087_v44, %v1423_v63  ;;  %2183 = vmatprep.mubr.bf16.mxu1 %v1638_v11  ;;  %v1637_v37 = vpack.c.bf16 %v1549_v48, %v1545_v43  ;;  %v7052_v21 = vunpack.c.l.bf16 %v5592_v10  ;;  %v7053_v56 = vunpack.c.h.bf16 %v5592_v10  ;;  %v925_v48 = vpop.permute.xlu1 %924 }
 0x2af   : >> { %v1141_v17 = vmul.f32 %v7050_v53, %v917_v47  ;;  %v1142_v57 = vmul.f32 %v7051_v39, %v917_v47  ;;  %2376 = vmatprep.mubr.bf16.mxu0 %v1640_v61  ;;  %v7054_v44 = vunpack.c.l.bf16 %v5599_v19  ;;  %v7055_v12 = vunpack.c.h.bf16 %v5599_v19 }
 0x2b0   : >> { %v1143_v15 = vmul.f32 %v7052_v21, %v917_v47  ;;  %v1144_v51 = vmul.f32 %v7053_v56, %v917_v47  ;;  %v1639_v3 = vpack.c.bf16 %v1551_v54, %v1547_v8  ;;  %2184 = vmatmul.mubr.bf16.gmra.mrb[36].mxu1 %v1637_v37  ;;  %v7056_v47 = vunpack.c.l.bf16 %v5602_v20 }
 0x2b1   : >> { %v6173_v36 = vadd.f32 %v7020_v0, %v1141_v17  ;;  %v6176_v13 = vadd.f32 %v7021_v14, %v1142_v57  ;;  %v1137_v9 = vmul.f32 %v7054_v44, %v913_v49  ;;  %v1138_v46 = vmul.f32 %v7055_v12, %v913_v49 }
 0x2b2   : >> { %v6183_v52 = vadd.f32 %v7025_v24, %v1143_v15  ;;  %v6186_v10 = vadd.f32 %v7026_v45, %v1144_v51  ;;  %v1139_v2 = vmul.f32 %v7056_v47, %v913_v49  ;;  %v7057_v41 = vunpack.c.h.bf16 %v5602_v20  ;;  %2377 = vmatmul.mubr.bf16.gmra.mrb[36].mxu0 %v1639_v3 }
 0x2b3   : >> { %v6193_v58 = vadd.f32 %v7020_v0, %v1137_v9  ;;  %v1306_v19 = vadd.f32 %v7021_v14, %v1138_v46  ;;  %v1426_v28 = vmul.f32 0.2, %v1298_v1  ;;  %v1430_v5 = vmul.f32 0.2, %v6128_v55 }
 0x2b4   : >> { %v1140_v4 = vmul.f32 %v7057_v41, %v913_v49  ;;  %v6198_v34 = vadd.f32 %v7025_v24, %v1139_v2  ;;  %v1428_v11 = vmul.f32 0.2, %v1300_v22  ;;  %v1432_v43 = vmul.f32 0.2, %v6138_v62 }
 0x2b5   : >> { %v1554_v20 = vmax.f32 %v1298_v1, %v1426_v28  ;;  %v1558_v53 = vmax.f32 %v6128_v55, %v1430_v5  ;;  %v1425_v17 = vmul.f32 0.2, %v6145_v40  ;;  %v1429_v49 = vmul.f32 0.2, %v6125_v6  ;;  %v921_v55 = vpop.permute.xlu0 %920 }
 0x2b6   : >> { %v1308_v63 = vadd.f32 %v7026_v45, %v1140_v4  ;;  %v1556_v61 = vmax.f32 %v1300_v22, %v1428_v11  ;;  %v1560_v8 = vmax.f32 %v6138_v62, %v1432_v43  ;;  %v1427_v54 = vmul.f32 0.2, %v6150_v16 }
 0x2b7   : >> { %v1431_v39 = vmul.f32 0.2, %v6135_v60  ;;  %v1642_v57 = vpack.c.bf16 %v1558_v53, %v1554_v20  ;;  %v1553_v37 = vmax.f32 %v6145_v40, %v1425_v17  ;;  %v1557_v21 = vmax.f32 %v6125_v6, %v1429_v49 }
 0x2b8   : >> { %v7058_v1 = vunpack.c.l.bf16 %v5609_v26  ;;  %v1644_v56 = vpack.c.bf16 %v1560_v8, %v1556_v61  ;;  %v1555_v51 = vmax.f32 %v6150_v16, %v1427_v54  ;;  %v7059_v62 = vunpack.c.h.bf16 %v5609_v26  ;;  %v933_v54 = vpop.permute.xlu1 %932 }
 0x2b9   : >> { %v1559_v22 = vmax.f32 %v6135_v60, %v1431_v39  ;;  %2193 = vmatprep.mubr.bf16.mxu1 %v1642_v57  ;;  %v1641_v44 = vpack.c.bf16 %v1557_v21, %v1553_v37  ;;  %v7060_v9 = vunpack.c.l.bf16 %v5612_v27  ;;  %v7061_v40 = vunpack.c.h.bf16 %v5612_v27 }
 0x2ba   : >> { %v1149_v15 = vmul.f32 %v7058_v1, %v925_v48  ;;  %v1150_v3 = vmul.f32 %v7059_v62, %v925_v48  ;;  %2386 = vmatprep.mubr.bf16.mxu0 %v1644_v56  ;;  %v7062_v60 = vunpack.c.l.bf16 %v5619_v32  ;;  %v7063_v2 = vunpack.c.h.bf16 %v5619_v32 }
 0x2bb   : >> { %v1151_v12 = vmul.f32 %v7060_v9, %v925_v48  ;;  %v1152_v6 = vmul.f32 %v7061_v40, %v925_v48  ;;  %v1643_v47 = vpack.c.bf16 %v1559_v22, %v1555_v51  ;;  %2194 = vmatmul.mubr.bf16.gmra.mrb[40].mxu1 %v1641_v44  ;;  %v7064_v28 = vunpack.c.l.bf16 %v5622_v33 }
 0x2bc   : >> { %v6221_v46 = vadd.f32 %v7020_v0, %v1149_v15  ;;  %v6224_v16 = vadd.f32 %v7021_v14, %v1150_v3  ;;  %v1145_v26 = vmul.f32 %v7062_v60, %v921_v55  ;;  %v1146_v41 = vmul.f32 %v7063_v2, %v921_v55 }
 0x2bd   : >> { %v6231_v4 = vadd.f32 %v7025_v24, %v1151_v12  ;;  %v6234_v27 = vadd.f32 %v7026_v45, %v1152_v6  ;;  %v1147_v5 = vmul.f32 %v7064_v28, %v921_v55  ;;  %v7065_v11 = vunpack.c.h.bf16 %v5622_v33  ;;  %2387 = vmatmul.mubr.bf16.gmra.mrb[40].mxu0 %v1643_v47 }
 0x2be   : >> { %v6241_v48 = vadd.f32 %v7020_v0, %v1145_v26  ;;  %v1314_v32 = vadd.f32 %v7021_v14, %v1146_v41  ;;  %v1434_v20 = vmul.f32 0.2, %v1306_v19  ;;  %v1438_v53 = vmul.f32 0.2, %v6176_v13 }
 0x2bf   : >> { %v1148_v43 = vmul.f32 %v7065_v11, %v921_v55  ;;  %v6246_v17 = vadd.f32 %v7025_v24, %v1147_v5  ;;  %v1436_v61 = vmul.f32 0.2, %v1308_v63  ;;  %v1440_v8 = vmul.f32 0.2, %v6186_v10 }
 0x2c0   : >> { %v1562_v33 = vmax.f32 %v1306_v19, %v1434_v20  ;;  %v1566_v39 = vmax.f32 %v6176_v13, %v1438_v53  ;;  %v1433_v57 = vmul.f32 0.2, %v6193_v58  ;;  %v1437_v37 = vmul.f32 0.2, %v6173_v36  ;;  %v929_v13 = vpop.permute.xlu0 %928 }
 0x2c1   : >> { %v1316_v49 = vadd.f32 %v7026_v45, %v1148_v43  ;;  %v1564_v21 = vmax.f32 %v1308_v63, %v1436_v61  ;;  %v1568_v1 = vmax.f32 %v6186_v10, %v1440_v8  ;;  %v1435_v15 = vmul.f32 0.2, %v6198_v34 }
 0x2c2   : >> { %v1439_v55 = vmul.f32 0.2, %v6183_v52  ;;  %v1646_v56 = vpack.c.bf16 %v1566_v39, %v1562_v33  ;;  %v1561_v51 = vmax.f32 %v6193_v58, %v1433_v57  ;;  %v1565_v22 = vmax.f32 %v6173_v36, %v1437_v37  ;;  %v941_v57 = vpop.permute.xlu1 %940 }
 0x2c3   : >> { %v7066_v19 = vunpack.c.l.bf16 %v5629_v29  ;;  %v1648_v3 = vpack.c.bf16 %v1568_v1, %v1564_v21  ;;  %v1563_v44 = vmax.f32 %v6198_v34, %v1435_v15  ;;  %v7067_v10 = vunpack.c.h.bf16 %v5629_v29 }
 0x2c4   : >> { %v1567_v63 = vmax.f32 %v6183_v52, %v1439_v55  ;;  %2203 = vmatprep.mubr.bf16.mxu1 %v1646_v56  ;;  %v1645_v12 = vpack.c.bf16 %v1565_v22, %v1561_v51  ;;  %v7068_v40 = vunpack.c.l.bf16 %v5632_v25  ;;  %v7069_v58 = vunpack.c.h.bf16 %v5632_v25 }
 0x2c5   : >> { %v1157_v62 = vmul.f32 %v7066_v19, %v933_v54  ;;  %v1158_v9 = vmul.f32 %v7067_v10, %v933_v54  ;;  %2396 = vmatprep.mubr.bf16.mxu0 %v1648_v3  ;;  %v7070_v52 = vunpack.c.l.bf16 %v5639_v35  ;;  %v7071_v26 = vunpack.c.h.bf16 %v5639_v35 }
 0x2c6   : >> { %v1159_v6 = vmul.f32 %v7068_v40, %v933_v54  ;;  %v1160_v36 = vmul.f32 %v7069_v58, %v933_v54  ;;  %v1647_v60 = vpack.c.bf16 %v1567_v63, %v1563_v44  ;;  %2204 = vmatmul.mubr.bf16.gmra.mrb[44].mxu1 %v1645_v12  ;;  %v7072_v28 = vunpack.c.l.bf16 %v5642_v23 }
 0x2c7   : >> { %v6269_v47 = vadd.f32 %v7020_v0, %v1157_v62  ;;  %v6272_v34 = vadd.f32 %v7021_v14, %v1158_v9  ;;  %v1153_v29 = vmul.f32 %v7070_v52, %v929_v13  ;;  %v1154_v2 = vmul.f32 %v7071_v26, %v929_v13 }
 0x2c8   : >> { %v6279_v41 = vadd.f32 %v7025_v24, %v1159_v6  ;;  %v6282_v25 = vadd.f32 %v7026_v45, %v1160_v36  ;;  %v1155_v5 = vmul.f32 %v7072_v28, %v929_v13  ;;  %v7073_v11 = vunpack.c.h.bf16 %v5642_v23  ;;  %2397 = vmatmul.mubr.bf16.gmra.mrb[44].mxu0 %v1647_v60 }
 0x2c9   : >> { %v6289_v20 = vadd.f32 %v7020_v0, %v1153_v29  ;;  %v1322_v35 = vadd.f32 %v7021_v14, %v1154_v2  ;;  %v1442_v53 = vmul.f32 0.2, %v1314_v32  ;;  %v1446_v61 = vmul.f32 0.2, %v6224_v16 }
 0x2ca   : >> { %v1156_v43 = vmul.f32 %v7073_v11, %v929_v13  ;;  %v6294_v8 = vadd.f32 %v7025_v24, %v1155_v5  ;;  %v1444_v33 = vmul.f32 0.2, %v1316_v49  ;;  %v1448_v39 = vmul.f32 0.2, %v6234_v27 }
 0x2cb   : >> { %v1570_v23 = vmax.f32 %v1314_v32, %v1442_v53  ;;  %v1574_v37 = vmax.f32 %v6224_v16, %v1446_v61  ;;  %v1441_v21 = vmul.f32 0.2, %v6241_v48  ;;  %v1445_v1 = vmul.f32 0.2, %v6221_v46  ;;  %v937_v16 = vpop.permute.xlu0 %936 }
 0x2cc   : >> { %v1324_v54 = vadd.f32 %v7026_v45, %v1156_v43  ;;  %v1572_v15 = vmax.f32 %v1316_v49, %v1444_v33  ;;  %v1576_v55 = vmax.f32 %v6234_v27, %v1448_v39  ;;  %v1443_v56 = vmul.f32 0.2, %v6246_v17  ;;  %v949_v39 = vpop.permute.xlu1 %948 }
 0x2cd   : >> { %v1447_v51 = vmul.f32 0.2, %v6231_v4  ;;  %v1650_v22 = vpack.c.bf16 %v1574_v37, %v1570_v23  ;;  %v1569_v19 = vmax.f32 %v6241_v48, %v1441_v21  ;;  %v1573_v62 = vmax.f32 %v6221_v46, %v1445_v1 }
 0x2ce   : >> { %v7074_v32 = vunpack.c.l.bf16 %v5649_v30  ;;  %v1652_v3 = vpack.c.bf16 %v1576_v55, %v1572_v15  ;;  %v1571_v44 = vmax.f32 %v6246_v17, %v1443_v56  ;;  %v7075_v27 = vunpack.c.h.bf16 %v5649_v30 }
 0x2cf   : >> { %v1575_v49 = vmax.f32 %v6231_v4, %v1447_v51  ;;  %2213 = vmatprep.mubr.bf16.mxu1 %v1650_v22  ;;  %v1649_v10 = vpack.c.bf16 %v1573_v62, %v1569_v19  ;;  %v7076_v9 = vunpack.c.l.bf16 %v5652_v18  ;;  %v7077_v48 = vunpack.c.h.bf16 %v5652_v18 }
 0x2d0   : >> { %v1165_v13 = vmul.f32 %v7074_v32, %v941_v57  ;;  %v1166_v63 = vmul.f32 %v7075_v27, %v941_v57  ;;  %2406 = vmatprep.mubr.bf16.mxu0 %v1652_v3  ;;  %v7078_v4 = vunpack.c.l.bf16 %v6996_v31  ;;  %v7079_v58 = vunpack.c.h.bf16 %v6996_v31 }
 0x2d1   : >> { %v1167_v12 = vmul.f32 %v7076_v9, %v941_v57  ;;  %v1168_v46 = vmul.f32 %v7077_v48, %v941_v57  ;;  %v1651_v6 = vpack.c.bf16 %v1575_v49, %v1571_v44  ;;  %2214 = vmatmul.mubr.bf16.gmra.mrb[48].mxu1 %v1649_v10  ;;  %v7080_v52 = vunpack.c.l.bf16 %v6999_v7 }
 0x2d2   : >> { %v6317_v40 = vadd.f32 %v7020_v0, %v1165_v13  ;;  %v6320_v17 = vadd.f32 %v7021_v14, %v1166_v63  ;;  %v1161_v30 = vmul.f32 %v7078_v4, %v937_v16  ;;  %v1162_v36 = vmul.f32 %v7079_v58, %v937_v16 }
 0x2d3   : >> { %v6327_v60 = vadd.f32 %v7025_v24, %v1167_v12  ;;  %v6330_v18 = vadd.f32 %v7026_v45, %v1168_v46  ;;  %v1163_v29 = vmul.f32 %v7080_v52, %v937_v16  ;;  %v7081_v26 = vunpack.c.h.bf16 %v6999_v7  ;;  %2407 = vmatmul.mubr.bf16.gmra.mrb[48].mxu0 %v1651_v6 }
 0x2d4   : >> { %v6337_v28 = vadd.f32 %v7020_v0, %v1161_v30  ;;  %v1330_v31 = vadd.f32 %v7021_v14, %v1162_v36  ;;  %v1450_v5 = vmul.f32 0.2, %v1322_v35  ;;  %v1454_v11 = vmul.f32 0.2, %v6272_v34 }
 0x2d5   : >> { %v1164_v2 = vmul.f32 %v7081_v26, %v937_v16  ;;  %v6342_v43 = vadd.f32 %v7025_v24, %v1163_v29  ;;  %v1452_v61 = vmul.f32 0.2, %v1324_v54  ;;  %v1456_v33 = vmul.f32 0.2, %v6282_v25 }
 0x2d6   : >> { %v1578_v7 = vmax.f32 %v1322_v35, %v1450_v5  ;;  %v1582_v57 = vmax.f32 %v6272_v34, %v1454_v11  ;;  %v1449_v23 = vmul.f32 0.2, %v6289_v20  ;;  %v1453_v37 = vmul.f32 0.2, %v6269_v47  ;;  %v945_v34 = vpop.permute.xlu0 %944 }
 0x2d7   : >> { %v1332_v53 = vadd.f32 %v7026_v45, %v1164_v2  ;;  %v1580_v21 = vmax.f32 %v1324_v54, %v1452_v61  ;;  %v1584_v1 = vmax.f32 %v6282_v25, %v1456_v33  ;;  %v1451_v15 = vmul.f32 0.2, %v6294_v8 }
 0x2d8   : >> { %v1455_v55 = vmul.f32 0.2, %v6279_v41  ;;  %v1654_v56 = vpack.c.bf16 %v1582_v57, %v1578_v7  ;;  %v1577_v51 = vmax.f32 %v6289_v20, %v1449_v23  ;;  %v1581_v22 = vmax.f32 %v6269_v47, %v1453_v37 }
 0x2d9   : >> { %v7082_v35 = vunpack.c.l.bf16 %v7002_v42  ;;  %v1656_v62 = vpack.c.bf16 %v1584_v1, %v1580_v21  ;;  %v1579_v32 = vmax.f32 %v6294_v8, %v1451_v15  ;;  %v7083_v25 = vunpack.c.h.bf16 %v7002_v42 }
 0x2da   : >> { %v1583_v54 = vmax.f32 %v6279_v41, %v1455_v55  ;;  %2223 = vmatprep.mubr.bf16.mxu1 %v1654_v56  ;;  %v1653_v16 = vpack.c.bf16 %v1581_v22, %v1577_v51  ;;  %v7084_v3 = vunpack.c.l.bf16 %v7005_v59  ;;  %v7085_v20 = vunpack.c.h.bf16 %v7005_v59 }
 0x2db   : >> { %v1173_v19 = vmul.f32 %v7082_v35, %v949_v39  ;;  %v1174_v13 = vmul.f32 %v7083_v25, %v949_v39  ;;  %2416 = vmatprep.mubr.bf16.mxu0 %v1656_v62  ;;  %v7086_v8 = vunpack.c.l.bf16 %v7008_v38  ;;  %v7087_v42 = vunpack.c.h.bf16 %v7008_v38  ;;  %v1729_v25 = vld [vmem:[%s6844_s6] sm:$0x3] }
 0x2dc   : >> { %v1175_v44 = vmul.f32 %v7084_v3, %v949_v39  ;;  %v1176_v47 = vmul.f32 %v7085_v20, %v949_v39  ;;  %v1655_v27 = vpack.c.bf16 %v1583_v54, %v1579_v32  ;;  %2224 = vmatmul.mubr.bf16.gmra.mrb[52].mxu1 %v1653_v16  ;;  %v7088_v59 = vunpack.c.l.bf16 %v7011_v50  ;;  %v7091_v3 = vld [vmem:[#allocation20_spill] sm:$0xff] }
 0x2dd   : >> { %v1341_v49 = vadd.f32 %v7020_v0, %v1173_v19  ;;  %v1342_v63 = vadd.f32 %v7021_v14, %v1174_v13  ;;  %v1169_v41 = vmul.f32 %v7086_v8, %v945_v34  ;;  %v1170_v10 = vmul.f32 %v7087_v42, %v945_v34  ;;  %v7090_v13 = vld [vmem:[#allocation19_spill] sm:$0xff] }
 0x2de   : >> { %v1343_v9 = vadd.f32 %v7025_v24, %v1175_v44  ;;  %v1344_v12 = vadd.f32 %v7026_v45, %v1176_v47  ;;  %v1171_v48 = vmul.f32 %v7088_v59, %v945_v34  ;;  %v7089_v46 = vunpack.c.h.bf16 %v7011_v50  ;;  %2417 = vmatmul.mubr.bf16.gmra.mrb[52].mxu0 %v1655_v27  ;;  %v2575_v27 = vld [vmem:[%s6845_s7] sm:$0x3] }
 0x2df   : >> { %v1337_v4 = vadd.f32 %v7020_v0, %v1169_v41  ;;  %v1338_v30 = vadd.f32 %v7021_v14, %v1170_v10  ;;  %v1458_v58 = vmul.f32 0.2, %v1330_v31  ;;  %v1462_v38 = vmul.f32 0.2, %v6320_v17 }
 0x2e0   : >> { %v1172_v6 = vmul.f32 %v7089_v46, %v945_v34  ;;  %v1339_v36 = vadd.f32 %v7025_v24, %v1171_v48  ;;  %v1460_v29 = vmul.f32 0.2, %v1332_v53  ;;  %v1464_v26 = vmul.f32 0.2, %v6330_v18 }
 0x2e1   : >> { %v1586_v2 = vmax.f32 %v1330_v31, %v1458_v58  ;;  %v1590_v5 = vmax.f32 %v6320_v17, %v1462_v38  ;;  %v1457_v50 = vmul.f32 0.2, %v6337_v28  ;;  %v1461_v11 = vmul.f32 0.2, %v6317_v40 }
 0x2e2   : >> { %v1340_v52 = vadd.f32 %v7026_v45, %v1172_v6  ;;  %v1588_v0 = vmax.f32 %v1332_v53, %v1460_v29  ;;  %v1592_v14 = vmax.f32 %v6330_v18, %v1464_v26  ;;  %v1459_v61 = vmul.f32 0.2, %v6342_v43 }
 0x2e3   : >> { %v1463_v33 = vmul.f32 0.2, %v6327_v60  ;;  %v1658_v24 = vpack.c.bf16 %v1590_v5, %v1586_v2  ;;  %v1585_v45 = vmax.f32 %v6337_v28, %v1457_v50  ;;  %v1589_v39 = vmax.f32 %v6317_v40, %v1461_v11 }
 0x2e4   : >> { %v1466_v7 = vmul.f32 0.2, %v1338_v30  ;;  %v1660_v31 = vpack.c.bf16 %v1592_v14, %v1588_v0  ;;  %v1587_v17 = vmax.f32 %v6342_v43, %v1459_v61  ;;  %v1470_v23 = vmul.f32 0.2, %v1342_v63 }
 0x2e5   : >> { %v1591_v57 = vmax.f32 %v6327_v60, %v1463_v33  ;;  %2233 = vmatprep.mubr.bf16.mxu1 %v1658_v24  ;;  %v1657_v53 = vpack.c.bf16 %v1589_v39, %v1585_v45  ;;  %v1468_v18 = vmul.f32 0.2, %v1340_v52  ;;  %v1472_v21 = vmul.f32 0.2, %v1344_v12 }
 0x2e6   : >> { %v1594_v37 = vmax.f32 %v1338_v30, %v1466_v7  ;;  %2426 = vmatprep.mubr.bf16.mxu0 %v1660_v31  ;;  %v1598_v15 = vmax.f32 %v1342_v63, %v1470_v23  ;;  %v1465_v55 = vmul.f32 0.2, %v1337_v4  ;;  %v1469_v56 = vmul.f32 0.2, %v1341_v49 }
 0x2e7   : >> { %v1659_v1 = vpack.c.bf16 %v1591_v57, %v1587_v17  ;;  %2234 = vmatmul.mubr.bf16.gmra.mrb[56].mxu1 %v1657_v53  ;;  %v1596_v28 = vmax.f32 %v1340_v52, %v1468_v18  ;;  %v1600_v40 = vmax.f32 %v1344_v12, %v1472_v21  ;;  %v1467_v51 = vmul.f32 0.2, %v1339_v36 }
 0x2e8   : >> { %v1471_v22 = vmul.f32 0.2, %v1343_v9  ;;  %v1662_v43 = vpack.c.bf16 %v1598_v15, %v1594_v37  ;;  %v1593_v60 = vmax.f32 %v1337_v4, %v1465_v55  ;;  %v1597_v19 = vmax.f32 %v1341_v49, %v1469_v56 }
 0x2e9   : >> { %2427 = vmatmul.mubr.bf16.gmra.mrb[56].mxu0 %v1659_v1  ;;  %v1664_v35 = vpack.c.bf16 %v1600_v40, %v1596_v28  ;;  %v1595_v34 = vmax.f32 %v1339_v36, %v1467_v51  ;;  %v6396_v16 = vrot.slane %v1729_v25, %v7090_v13  ;;  %v6399_v44 = vrot.slane %v1729_v25, %v7091_v3 }
 0x2ea   : >> { %2243 = vmatprep.mubr.bf16.mxu1 %v1662_v43  ;;  %v1599_v62 = vmax.f32 %v1343_v9, %v1471_v22  ;;  %v1661_v32 = vpack.c.bf16 %v1597_v19, %v1593_v60  ;;  %v6409_v6 = vrot.slane %v2575_v27, %v7090_v13  ;;  %v6412_v38 = vrot.slane %v2575_v27, %v7091_v3 }
 0x2eb   : >> { %2436 = vmatprep.mubr.bf16.mxu0 %v1664_v35 }
 0x2ec   : >> { %v1663_v54 = vpack.c.bf16 %v1599_v62, %v1595_v34 }
 0x2ef   : >> { %2244 = vmatmul.mubr.bf16.gmra.mrb[60].mxu1 %v1661_v32 }
 0x2f1   : >> { %2437 = vmatmul.mubr.bf16.gmra.mrb[60].mxu0 %v1663_v54 }
 0x321   : >> { %v2095_v20 = vpop.f32.mrb[0].mxu1 }
 0x322   : >> { %v2096_v47 = vadd.f32 %v2095_v20, %v6396_v16  ;;  %v2097_v49 = vpop.f32.mrb[1].mxu1  ;;  %v2288_v63 = vpop.f32.mrb[0].mxu0 }
 0x323   : >> { %v2098_v8 = vadd.f32 %v2097_v49, %v6399_v44  ;;  %v2099_v41 = vpop.f32.mrb[2].mxu1  ;;  %v2290_v10 = vpop.f32.mrb[1].mxu0 }
 0x324   : >> { %v2289_v42 = vadd.f32 %v2288_v63, %v2096_v47  ;;  %v2100_v9 = vadd.f32 %v2099_v41, %v6396_v16  ;;  %v2101_v12 = vpop.f32.mrb[3].mxu1  ;;  %v2292_v48 = vpop.f32.mrb[2].mxu0 }
 0x325   : >> { %v2291_v59 = vadd.f32 %v2290_v10, %v2098_v8  ;;  %v2102_v46 = vadd.f32 %v2101_v12, %v6399_v44  ;;  %v2294_v58 = vpop.f32.mrb[3].mxu0 }
 0x326   : >> { %v2447_v4 = vmul.f32 0.2, %v2289_v42  ;;  %v2293_v30 = vadd.f32 %v2292_v48, %v2100_v9 }
 0x327   : >> { %v2448_v36 = vmul.f32 0.2, %v2291_v59  ;;  %v2295_v52 = vadd.f32 %v2294_v58, %v2102_v46 }
 0x328   : >> { %v2511_v29 = vmax.f32 %v2289_v42, %v2447_v4  ;;  %v2449_v26 = vmul.f32 0.2, %v2293_v30 }
 0x329   : >> { %v2512_v2 = vmax.f32 %v2291_v59, %v2448_v36  ;;  %v2450_v5 = vmul.f32 0.2, %v2295_v52 }
 0x32a   : >> { %v2513_v50 = vmax.f32 %v2293_v30, %v2449_v26  ;;  %v2587_v11 = vmul.f32 %v6409_v6, %v2511_v29 }
 0x32b   : >> { %v2514_v0 = vmax.f32 %v2295_v52, %v2450_v5  ;;  %v2588_v33 = vmul.f32 %v6412_v38, %v2512_v2 }
 0x32c   : >> { %v2105_v14 = vpop.f32.mrb[4].mxu1  ;;  %v2589_v7 = vmul.f32 %v6409_v6, %v2513_v50 }
 0x32d   : >> { %v2298_v61 = vpop.f32.mrb[4].mxu0  ;;  %v2106_v24 = vadd.f32 %v2105_v14, %v6396_v16  ;;  %v2107_v45 = vpop.f32.mrb[5].mxu1  ;;  %v2651_v23 = vadd.f32 %v2588_v33, %v2587_v11  ;;  %v2590_v53 = vmul.f32 %v6412_v38, %v2514_v0 }
 0x32e   : >> { %v2300_v39 = vpop.f32.mrb[5].mxu0  ;;  %v2108_v31 = vadd.f32 %v2107_v45, %v6399_v44  ;;  %v2109_v17 = vpop.f32.mrb[6].mxu1 }
 0x32f   : >> { %v2302_v57 = vpop.f32.mrb[6].mxu0  ;;  %v2299_v37 = vadd.f32 %v2298_v61, %v2106_v24  ;;  %v2110_v18 = vadd.f32 %v2109_v17, %v6396_v16  ;;  %v2111_v21 = vpop.f32.mrb[7].mxu1  ;;  %2652 = vadd.xlane.f32.xlu0 %v2651_v23  ;;  %v2654_v56 = vadd.f32 %v2590_v53, %v2589_v7 }
 0x330   : >> { %v2304_v1 = vpop.f32.mrb[7].mxu0  ;;  %v2301_v15 = vadd.f32 %v2300_v39, %v2108_v31  ;;  %v2112_v55 = vadd.f32 %v2111_v21, %v6399_v44 }
 0x331   : >> { %v2451_v28 = vmul.f32 0.2, %v2299_v37  ;;  %v2303_v40 = vadd.f32 %v2302_v57, %v2110_v18  ;;  %2655 = vadd.xlane.f32.xlu1 %v2654_v56 }
 0x332   : >> { %v2452_v51 = vmul.f32 0.2, %v2301_v15  ;;  %v2305_v22 = vadd.f32 %v2304_v1, %v2112_v55 }
 0x333   : >> { %v2515_v43 = vmax.f32 %v2299_v37, %v2451_v28  ;;  %v2453_v35 = vmul.f32 0.2, %v2303_v40 }
 0x334   : >> { %v2516_v60 = vmax.f32 %v2301_v15, %v2452_v51  ;;  %v2454_v19 = vmul.f32 0.2, %v2305_v22 }
 0x335   : >> { %v2517_v62 = vmax.f32 %v2303_v40, %v2453_v35  ;;  %v2591_v13 = vmul.f32 %v6409_v6, %v2515_v43 }
 0x336   : >> { %v2115_v34 = vpop.f32.mrb[8].mxu1  ;;  %v2518_v3 = vmax.f32 %v2305_v22, %v2454_v19  ;;  %v2592_v27 = vmul.f32 %v6412_v38, %v2516_v60 }
 0x337   : >> { %v2116_v32 = vadd.f32 %v2115_v34, %v6396_v16  ;;  %v2117_v25 = vpop.f32.mrb[9].mxu1  ;;  %v2593_v10 = vmul.f32 %v6409_v6, %v2517_v62 }
 0x338   : >> { %v2308_v54 = vpop.f32.mrb[8].mxu0  ;;  %v2118_v20 = vadd.f32 %v2117_v25, %v6399_v44  ;;  %v2119_v49 = vpop.f32.mrb[10].mxu1  ;;  %v2657_v48 = vadd.f32 %v2592_v27, %v2591_v13  ;;  %v2594_v46 = vmul.f32 %v6412_v38, %v2518_v3 }
 0x339   : >> { %v2310_v47 = vpop.f32.mrb[9].mxu0  ;;  %v2309_v63 = vadd.f32 %v2308_v54, %v2116_v32  ;;  %v2120_v8 = vadd.f32 %v2119_v49, %v6396_v16  ;;  %v2121_v42 = vpop.f32.mrb[11].mxu1 }
 0x33a   : >> { %v2312_v41 = vpop.f32.mrb[10].mxu0  ;;  %v2311_v9 = vadd.f32 %v2310_v47, %v2118_v20  ;;  %v2122_v12 = vadd.f32 %v2121_v42, %v6399_v44  ;;  %2658 = vadd.xlane.f32.xlu1 %v2657_v48  ;;  %v2660_v52 = vadd.f32 %v2594_v46, %v2593_v10 }
 0x33b   : >> { %v2314_v59 = vpop.f32.mrb[11].mxu0  ;;  %v2455_v4 = vmul.f32 0.2, %v2309_v63  ;;  %v2313_v30 = vadd.f32 %v2312_v41, %v2120_v8 }
 0x33c   : >> { %v2456_v58 = vmul.f32 0.2, %v2311_v9  ;;  %v2315_v36 = vadd.f32 %v2314_v59, %v2122_v12 }
 0x33d   : >> { %v2519_v29 = vmax.f32 %v2309_v63, %v2455_v4  ;;  %v2457_v26 = vmul.f32 0.2, %v2313_v30 }
 0x33e   : >> { %v2520_v2 = vmax.f32 %v2311_v9, %v2456_v58  ;;  %v2458_v5 = vmul.f32 0.2, %v2315_v36  ;;  %2661 = vadd.xlane.f32.xlu1 %v2660_v52 }
 0x33f   : >> { %v2521_v50 = vmax.f32 %v2313_v30, %v2457_v26  ;;  %v2595_v0 = vmul.f32 %v6409_v6, %v2519_v29 }
 0x340   : >> { %v2522_v14 = vmax.f32 %v2315_v36, %v2458_v5  ;;  %v2596_v45 = vmul.f32 %v6412_v38, %v2520_v2 }
 0x341   : >> { %v2125_v11 = vpop.f32.mrb[12].mxu1  ;;  %v2597_v17 = vmul.f32 %v6409_v6, %v2521_v50 }
 0x342   : >> { %v2126_v61 = vadd.f32 %v2125_v11, %v6396_v16  ;;  %v2127_v24 = vpop.f32.mrb[13].mxu1  ;;  %v2663_v18 = vadd.f32 %v2596_v45, %v2595_v0  ;;  %v2598_v21 = vmul.f32 %v6412_v38, %v2522_v14 }
 0x343   : >> { %v2318_v33 = vpop.f32.mrb[12].mxu0  ;;  %v2128_v39 = vadd.f32 %v2127_v24, %v6399_v44  ;;  %v2129_v31 = vpop.f32.mrb[14].mxu1 }
 0x344   : >> { %v2320_v7 = vpop.f32.mrb[13].mxu0  ;;  %v2319_v57 = vadd.f32 %v2318_v33, %v2126_v61  ;;  %v2130_v23 = vadd.f32 %v2129_v31, %v6396_v16  ;;  %v2131_v37 = vpop.f32.mrb[15].mxu1  ;;  %2664 = vadd.xlane.f32.xlu1 %v2663_v18  ;;  %v2666_v40 = vadd.f32 %v2598_v21, %v2597_v17 }
 0x345   : >> { %v2322_v53 = vpop.f32.mrb[14].mxu0  ;;  %v2321_v1 = vadd.f32 %v2320_v7, %v2128_v39  ;;  %v2132_v15 = vadd.f32 %v2131_v37, %v6399_v44 }
 0x346   : >> { %v2324_v55 = vpop.f32.mrb[15].mxu0  ;;  %v2459_v56 = vmul.f32 0.2, %v2319_v57  ;;  %v2323_v28 = vadd.f32 %v2322_v53, %v2130_v23 }
 0x347   : >> { %v2460_v51 = vmul.f32 0.2, %v2321_v1  ;;  %v2325_v22 = vadd.f32 %v2324_v55, %v2132_v15 }
 0x348   : >> { %v2523_v43 = vmax.f32 %v2319_v57, %v2459_v56  ;;  %v2461_v35 = vmul.f32 0.2, %v2323_v28  ;;  %2667 = vadd.xlane.f32.xlu1 %v2666_v40 }
 0x349   : >> { %v2524_v60 = vmax.f32 %v2321_v1, %v2460_v51  ;;  %v2462_v19 = vmul.f32 0.2, %v2325_v22 }
 0x34a   : >> { %v2525_v34 = vmax.f32 %v2323_v28, %v2461_v35  ;;  %v2599_v32 = vmul.f32 %v6409_v6, %v2523_v43 }
 0x34b   : >> { %v2526_v54 = vmax.f32 %v2325_v22, %v2462_v19  ;;  %v2600_v20 = vmul.f32 %v6412_v38, %v2524_v60 }
 0x34c   : >> { %v2135_v62 = vpop.f32.mrb[16].mxu1  ;;  %v2601_v63 = vmul.f32 %v6409_v6, %v2525_v34 }
 0x34d   : >> { %v2136_v25 = vadd.f32 %v2135_v62, %v6396_v16  ;;  %v2137_v3 = vpop.f32.mrb[17].mxu1  ;;  %v2669_v9 = vadd.f32 %v2600_v20, %v2599_v32  ;;  %v2602_v12 = vmul.f32 %v6412_v38, %v2526_v54 }
 0x34e   : >> { %v2328_v13 = vpop.f32.mrb[16].mxu0  ;;  %v2138_v47 = vadd.f32 %v2137_v3, %v6399_v44  ;;  %v2139_v27 = vpop.f32.mrb[18].mxu1 }
 0x34f   : >> { %v2330_v49 = vpop.f32.mrb[17].mxu0  ;;  %v2329_v8 = vadd.f32 %v2328_v13, %v2136_v25  ;;  %v2140_v41 = vadd.f32 %v2139_v27, %v6396_v16  ;;  %v2141_v10 = vpop.f32.mrb[19].mxu1  ;;  %2670 = vadd.xlane.f32.xlu1 %v2669_v9  ;;  %v2672_v58 = vadd.f32 %v2602_v12, %v2601_v63 }
 0x350   : >> { %v2332_v42 = vpop.f32.mrb[18].mxu0  ;;  %v2331_v59 = vadd.f32 %v2330_v49, %v2138_v47  ;;  %v2142_v48 = vadd.f32 %v2141_v10, %v6399_v44 }
 0x351   : >> { %v2334_v46 = vpop.f32.mrb[19].mxu0  ;;  %v2463_v4 = vmul.f32 0.2, %v2329_v8  ;;  %v2333_v30 = vadd.f32 %v2332_v42, %v2140_v41 }
 0x352   : >> { %v2464_v36 = vmul.f32 0.2, %v2331_v59  ;;  %v2335_v52 = vadd.f32 %v2334_v46, %v2142_v48 }
 0x353   : >> { %v2527_v29 = vmax.f32 %v2329_v8, %v2463_v4  ;;  %v2465_v26 = vmul.f32 0.2, %v2333_v30  ;;  %2673 = vadd.xlane.f32.xlu1 %v2672_v58 }
 0x354   : >> { %v2528_v2 = vmax.f32 %v2331_v59, %v2464_v36  ;;  %v2466_v5 = vmul.f32 0.2, %v2335_v52 }
 0x355   : >> { %v2529_v50 = vmax.f32 %v2333_v30, %v2465_v26  ;;  %v2603_v0 = vmul.f32 %v6409_v6, %v2527_v29 }
 0x356   : >> { %v2530_v14 = vmax.f32 %v2335_v52, %v2466_v5  ;;  %v2604_v45 = vmul.f32 %v6412_v38, %v2528_v2 }
 0x357   : >> { %v2145_v11 = vpop.f32.mrb[20].mxu1  ;;  %v2605_v17 = vmul.f32 %v6409_v6, %v2529_v50 }
 0x358   : >> { %v2146_v61 = vadd.f32 %v2145_v11, %v6396_v16  ;;  %v2147_v24 = vpop.f32.mrb[21].mxu1  ;;  %v2675_v18 = vadd.f32 %v2604_v45, %v2603_v0  ;;  %v2606_v21 = vmul.f32 %v6412_v38, %v2530_v14 }
 0x359   : >> { %v2338_v33 = vpop.f32.mrb[20].mxu0  ;;  %v2148_v39 = vadd.f32 %v2147_v24, %v6399_v44  ;;  %v2149_v31 = vpop.f32.mrb[22].mxu1 }
 0x35a   : >> { %v2340_v7 = vpop.f32.mrb[21].mxu0  ;;  %v2339_v57 = vadd.f32 %v2338_v33, %v2146_v61  ;;  %v2150_v23 = vadd.f32 %v2149_v31, %v6396_v16  ;;  %v2151_v37 = vpop.f32.mrb[23].mxu1  ;;  %2676 = vadd.xlane.f32.xlu1 %v2675_v18  ;;  %v2678_v40 = vadd.f32 %v2606_v21, %v2605_v17 }
 0x35b   : >> { %v2342_v53 = vpop.f32.mrb[22].mxu0  ;;  %v2341_v1 = vadd.f32 %v2340_v7, %v2148_v39  ;;  %v2152_v15 = vadd.f32 %v2151_v37, %v6399_v44 }
 0x35c   : >> { %v2344_v55 = vpop.f32.mrb[23].mxu0  ;;  %v2467_v56 = vmul.f32 0.2, %v2339_v57  ;;  %v2343_v28 = vadd.f32 %v2342_v53, %v2150_v23 }
 0x35d   : >> { %v2468_v51 = vmul.f32 0.2, %v2341_v1  ;;  %v2345_v22 = vadd.f32 %v2344_v55, %v2152_v15 }
 0x35e   : >> { %v2531_v43 = vmax.f32 %v2339_v57, %v2467_v56  ;;  %v2469_v35 = vmul.f32 0.2, %v2343_v28  ;;  %2679 = vadd.xlane.f32.xlu1 %v2678_v40 }
 0x35f   : >> { %v2532_v60 = vmax.f32 %v2341_v1, %v2468_v51  ;;  %v2470_v19 = vmul.f32 0.2, %v2345_v22 }
 0x360   : >> { %v2533_v34 = vmax.f32 %v2343_v28, %v2469_v35  ;;  %v2607_v32 = vmul.f32 %v6409_v6, %v2531_v43 }
 0x361   : >> { %v2534_v54 = vmax.f32 %v2345_v22, %v2470_v19  ;;  %v2608_v20 = vmul.f32 %v6412_v38, %v2532_v60 }
 0x362   : >> { %v2155_v62 = vpop.f32.mrb[24].mxu1  ;;  %v2609_v63 = vmul.f32 %v6409_v6, %v2533_v34 }
 0x363   : >> { %v2156_v25 = vadd.f32 %v2155_v62, %v6396_v16  ;;  %v2157_v3 = vpop.f32.mrb[25].mxu1  ;;  %v2681_v9 = vadd.f32 %v2608_v20, %v2607_v32  ;;  %v2610_v12 = vmul.f32 %v6412_v38, %v2534_v54 }
 0x364   : >> { %v2348_v13 = vpop.f32.mrb[24].mxu0  ;;  %v2158_v47 = vadd.f32 %v2157_v3, %v6399_v44  ;;  %v2159_v27 = vpop.f32.mrb[26].mxu1 }
 0x365   : >> { %v2350_v49 = vpop.f32.mrb[25].mxu0  ;;  %v2349_v8 = vadd.f32 %v2348_v13, %v2156_v25  ;;  %v2160_v41 = vadd.f32 %v2159_v27, %v6396_v16  ;;  %v2161_v10 = vpop.f32.mrb[27].mxu1  ;;  %2682 = vadd.xlane.f32.xlu1 %v2681_v9  ;;  %v2684_v58 = vadd.f32 %v2610_v12, %v2609_v63 }
 0x366   : >> { %v2352_v42 = vpop.f32.mrb[26].mxu0  ;;  %v2351_v59 = vadd.f32 %v2350_v49, %v2158_v47  ;;  %v2162_v48 = vadd.f32 %v2161_v10, %v6399_v44 }
 0x367   : >> { %v2354_v46 = vpop.f32.mrb[27].mxu0  ;;  %v2471_v4 = vmul.f32 0.2, %v2349_v8  ;;  %v2353_v30 = vadd.f32 %v2352_v42, %v2160_v41 }
 0x368   : >> { %v2472_v36 = vmul.f32 0.2, %v2351_v59  ;;  %v2355_v52 = vadd.f32 %v2354_v46, %v2162_v48 }
 0x369   : >> { %v2535_v29 = vmax.f32 %v2349_v8, %v2471_v4  ;;  %v2473_v26 = vmul.f32 0.2, %v2353_v30  ;;  %2685 = vadd.xlane.f32.xlu1 %v2684_v58 }
 0x36a   : >> { %v2536_v2 = vmax.f32 %v2351_v59, %v2472_v36  ;;  %v2474_v5 = vmul.f32 0.2, %v2355_v52 }
 0x36b   : >> { %v2537_v50 = vmax.f32 %v2353_v30, %v2473_v26  ;;  %v2611_v0 = vmul.f32 %v6409_v6, %v2535_v29 }
 0x36c   : >> { %v2538_v14 = vmax.f32 %v2355_v52, %v2474_v5  ;;  %v2612_v45 = vmul.f32 %v6412_v38, %v2536_v2 }
 0x36d   : >> { %v2165_v11 = vpop.f32.mrb[28].mxu1  ;;  %v2613_v17 = vmul.f32 %v6409_v6, %v2537_v50 }
 0x36e   : >> { %v2166_v61 = vadd.f32 %v2165_v11, %v6396_v16  ;;  %v2167_v24 = vpop.f32.mrb[29].mxu1  ;;  %v2687_v18 = vadd.f32 %v2612_v45, %v2611_v0  ;;  %v2614_v21 = vmul.f32 %v6412_v38, %v2538_v14 }
 0x36f   : >> { %v2358_v33 = vpop.f32.mrb[28].mxu0  ;;  %v2168_v39 = vadd.f32 %v2167_v24, %v6399_v44  ;;  %v2169_v31 = vpop.f32.mrb[30].mxu1 }
 0x370   : >> { %v2360_v7 = vpop.f32.mrb[29].mxu0  ;;  %v2359_v57 = vadd.f32 %v2358_v33, %v2166_v61  ;;  %v2170_v23 = vadd.f32 %v2169_v31, %v6396_v16  ;;  %v2171_v37 = vpop.f32.mrb[31].mxu1  ;;  %2688 = vadd.xlane.f32.xlu1 %v2687_v18  ;;  %v2690_v40 = vadd.f32 %v2614_v21, %v2613_v17 }
 0x371   : >> { %v2362_v53 = vpop.f32.mrb[30].mxu0  ;;  %v2361_v1 = vadd.f32 %v2360_v7, %v2168_v39  ;;  %v2172_v15 = vadd.f32 %v2171_v37, %v6399_v44 }
 0x372   : >> { %v2364_v55 = vpop.f32.mrb[31].mxu0  ;;  %v2475_v56 = vmul.f32 0.2, %v2359_v57  ;;  %v2363_v28 = vadd.f32 %v2362_v53, %v2170_v23 }
 0x373   : >> { %v2476_v51 = vmul.f32 0.2, %v2361_v1  ;;  %v2365_v22 = vadd.f32 %v2364_v55, %v2172_v15 }
 0x374   : >> { %v2539_v43 = vmax.f32 %v2359_v57, %v2475_v56  ;;  %v2477_v35 = vmul.f32 0.2, %v2363_v28  ;;  %2691 = vadd.xlane.f32.xlu1 %v2690_v40 }
 0x375   : >> { %v2540_v60 = vmax.f32 %v2361_v1, %v2476_v51  ;;  %v2478_v19 = vmul.f32 0.2, %v2365_v22 }
 0x376   : >> { %v2541_v34 = vmax.f32 %v2363_v28, %v2477_v35  ;;  %v2615_v32 = vmul.f32 %v6409_v6, %v2539_v43 }
 0x377   : >> { %v2542_v54 = vmax.f32 %v2365_v22, %v2478_v19  ;;  %v2616_v20 = vmul.f32 %v6412_v38, %v2540_v60 }
 0x378   : >> { %v2175_v62 = vpop.f32.mrb[32].mxu1  ;;  %v2617_v63 = vmul.f32 %v6409_v6, %v2541_v34 }
 0x379   : >> { %v2176_v25 = vadd.f32 %v2175_v62, %v6396_v16  ;;  %v2177_v3 = vpop.f32.mrb[33].mxu1  ;;  %v2693_v9 = vadd.f32 %v2616_v20, %v2615_v32  ;;  %v2618_v12 = vmul.f32 %v6412_v38, %v2542_v54 }
 0x37a   : >> { %v2368_v13 = vpop.f32.mrb[32].mxu0  ;;  %v2178_v47 = vadd.f32 %v2177_v3, %v6399_v44  ;;  %v2179_v27 = vpop.f32.mrb[34].mxu1 }
 0x37b   : >> { %v2370_v49 = vpop.f32.mrb[33].mxu0  ;;  %v2369_v8 = vadd.f32 %v2368_v13, %v2176_v25  ;;  %v2180_v41 = vadd.f32 %v2179_v27, %v6396_v16  ;;  %v2181_v10 = vpop.f32.mrb[35].mxu1  ;;  %2694 = vadd.xlane.f32.xlu1 %v2693_v9  ;;  %v2696_v58 = vadd.f32 %v2618_v12, %v2617_v63 }
 0x37c   : >> { %v2372_v42 = vpop.f32.mrb[34].mxu0  ;;  %v2371_v59 = vadd.f32 %v2370_v49, %v2178_v47  ;;  %v2182_v48 = vadd.f32 %v2181_v10, %v6399_v44 }
 0x37d   : >> { %v2374_v46 = vpop.f32.mrb[35].mxu0  ;;  %v2479_v4 = vmul.f32 0.2, %v2369_v8  ;;  %v2373_v30 = vadd.f32 %v2372_v42, %v2180_v41 }
 0x37e   : >> { %v2480_v36 = vmul.f32 0.2, %v2371_v59  ;;  %v2375_v52 = vadd.f32 %v2374_v46, %v2182_v48 }
 0x37f   : >> { %v2543_v29 = vmax.f32 %v2369_v8, %v2479_v4  ;;  %v2481_v26 = vmul.f32 0.2, %v2373_v30  ;;  %2697 = vadd.xlane.f32.xlu1 %v2696_v58 }
 0x380   : >> { %v2544_v2 = vmax.f32 %v2371_v59, %v2480_v36  ;;  %v2482_v5 = vmul.f32 0.2, %v2375_v52 }
 0x381   : >> { %v2545_v50 = vmax.f32 %v2373_v30, %v2481_v26  ;;  %v2619_v0 = vmul.f32 %v6409_v6, %v2543_v29 }
 0x382   : >> { %v2546_v14 = vmax.f32 %v2375_v52, %v2482_v5  ;;  %v2620_v45 = vmul.f32 %v6412_v38, %v2544_v2 }
 0x383   : >> { %v2185_v11 = vpop.f32.mrb[36].mxu1  ;;  %v2621_v17 = vmul.f32 %v6409_v6, %v2545_v50 }
 0x384   : >> { %v2186_v61 = vadd.f32 %v2185_v11, %v6396_v16  ;;  %v2187_v24 = vpop.f32.mrb[37].mxu1  ;;  %v2699_v18 = vadd.f32 %v2620_v45, %v2619_v0  ;;  %v2622_v21 = vmul.f32 %v6412_v38, %v2546_v14 }
 0x385   : >> { %v2378_v33 = vpop.f32.mrb[36].mxu0  ;;  %v2188_v39 = vadd.f32 %v2187_v24, %v6399_v44  ;;  %v2189_v31 = vpop.f32.mrb[38].mxu1 }
 0x386   : >> { %v2380_v7 = vpop.f32.mrb[37].mxu0  ;;  %v2379_v57 = vadd.f32 %v2378_v33, %v2186_v61  ;;  %v2190_v23 = vadd.f32 %v2189_v31, %v6396_v16  ;;  %v2191_v37 = vpop.f32.mrb[39].mxu1  ;;  %2700 = vadd.xlane.f32.xlu0 %v2699_v18  ;;  %v2702_v40 = vadd.f32 %v2622_v21, %v2621_v17 }
 0x387   : >> { %v2382_v53 = vpop.f32.mrb[38].mxu0  ;;  %v2381_v1 = vadd.f32 %v2380_v7, %v2188_v39  ;;  %v2192_v15 = vadd.f32 %v2191_v37, %v6399_v44 }
 0x388   : >> { %v2384_v55 = vpop.f32.mrb[39].mxu0  ;;  %v2483_v56 = vmul.f32 0.2, %v2379_v57  ;;  %v2383_v28 = vadd.f32 %v2382_v53, %v2190_v23 }
 0x389   : >> { %v2484_v51 = vmul.f32 0.2, %v2381_v1  ;;  %v2385_v22 = vadd.f32 %v2384_v55, %v2192_v15 }
 0x38a   : >> { %v2547_v43 = vmax.f32 %v2379_v57, %v2483_v56  ;;  %v2485_v35 = vmul.f32 0.2, %v2383_v28  ;;  %2703 = vadd.xlane.f32.xlu0 %v2702_v40 }
 0x38b   : >> { %v2548_v60 = vmax.f32 %v2381_v1, %v2484_v51  ;;  %v2486_v19 = vmul.f32 0.2, %v2385_v22 }
 0x38c   : >> { %v2549_v34 = vmax.f32 %v2383_v28, %v2485_v35  ;;  %v2623_v32 = vmul.f32 %v6409_v6, %v2547_v43 }
 0x38d   : >> { %v2550_v54 = vmax.f32 %v2385_v22, %v2486_v19  ;;  %v2624_v20 = vmul.f32 %v6412_v38, %v2548_v60 }
 0x38e   : >> { %v2195_v62 = vpop.f32.mrb[40].mxu1  ;;  %v2625_v63 = vmul.f32 %v6409_v6, %v2549_v34 }
 0x38f   : >> { %v2196_v25 = vadd.f32 %v2195_v62, %v6396_v16  ;;  %v2197_v3 = vpop.f32.mrb[41].mxu1  ;;  %v2705_v9 = vadd.f32 %v2624_v20, %v2623_v32  ;;  %v2626_v12 = vmul.f32 %v6412_v38, %v2550_v54 }
 0x390   : >> { %v2388_v13 = vpop.f32.mrb[40].mxu0  ;;  %v2198_v47 = vadd.f32 %v2197_v3, %v6399_v44  ;;  %v2199_v27 = vpop.f32.mrb[42].mxu1 }
 0x391   : >> { %v2390_v49 = vpop.f32.mrb[41].mxu0  ;;  %v2389_v8 = vadd.f32 %v2388_v13, %v2196_v25  ;;  %v2200_v41 = vadd.f32 %v2199_v27, %v6396_v16  ;;  %v2201_v10 = vpop.f32.mrb[43].mxu1  ;;  %2706 = vadd.xlane.f32.xlu0 %v2705_v9  ;;  %v2708_v58 = vadd.f32 %v2626_v12, %v2625_v63 }
 0x392   : >> { %v2392_v42 = vpop.f32.mrb[42].mxu0  ;;  %v2391_v59 = vadd.f32 %v2390_v49, %v2198_v47  ;;  %v2202_v48 = vadd.f32 %v2201_v10, %v6399_v44 }
 0x393   : >> { %v2394_v46 = vpop.f32.mrb[43].mxu0  ;;  %v2487_v4 = vmul.f32 0.2, %v2389_v8  ;;  %v2393_v30 = vadd.f32 %v2392_v42, %v2200_v41 }
 0x394   : >> { %v2488_v36 = vmul.f32 0.2, %v2391_v59  ;;  %v2395_v52 = vadd.f32 %v2394_v46, %v2202_v48 }
 0x395   : >> { %v2551_v29 = vmax.f32 %v2389_v8, %v2487_v4  ;;  %v2489_v26 = vmul.f32 0.2, %v2393_v30  ;;  %2709 = vadd.xlane.f32.xlu0 %v2708_v58 }
 0x396   : >> { %v2552_v2 = vmax.f32 %v2391_v59, %v2488_v36  ;;  %v2490_v5 = vmul.f32 0.2, %v2395_v52 }
 0x397   : >> { %v2553_v50 = vmax.f32 %v2393_v30, %v2489_v26  ;;  %v2627_v0 = vmul.f32 %v6409_v6, %v2551_v29 }
 0x398   : >> { %v2554_v14 = vmax.f32 %v2395_v52, %v2490_v5  ;;  %v2628_v45 = vmul.f32 %v6412_v38, %v2552_v2 }
 0x399   : >> { %v2205_v11 = vpop.f32.mrb[44].mxu1  ;;  %v2629_v17 = vmul.f32 %v6409_v6, %v2553_v50 }
 0x39a   : >> { %v2206_v61 = vadd.f32 %v2205_v11, %v6396_v16  ;;  %v2207_v24 = vpop.f32.mrb[45].mxu1  ;;  %v2711_v18 = vadd.f32 %v2628_v45, %v2627_v0  ;;  %v2630_v21 = vmul.f32 %v6412_v38, %v2554_v14 }
 0x39b   : >> { %v2398_v33 = vpop.f32.mrb[44].mxu0  ;;  %v2208_v39 = vadd.f32 %v2207_v24, %v6399_v44  ;;  %v2209_v31 = vpop.f32.mrb[46].mxu1 }
 0x39c   : >> { %v2400_v7 = vpop.f32.mrb[45].mxu0  ;;  %v2399_v57 = vadd.f32 %v2398_v33, %v2206_v61  ;;  %v2210_v23 = vadd.f32 %v2209_v31, %v6396_v16  ;;  %v2211_v37 = vpop.f32.mrb[47].mxu1  ;;  %2712 = vadd.xlane.f32.xlu0 %v2711_v18  ;;  %v2714_v40 = vadd.f32 %v2630_v21, %v2629_v17 }
 0x39d   : >> { %v2402_v53 = vpop.f32.mrb[46].mxu0  ;;  %v2401_v1 = vadd.f32 %v2400_v7, %v2208_v39  ;;  %v2212_v15 = vadd.f32 %v2211_v37, %v6399_v44 }
 0x39e   : >> { %v2404_v55 = vpop.f32.mrb[47].mxu0  ;;  %v2491_v56 = vmul.f32 0.2, %v2399_v57  ;;  %v2403_v28 = vadd.f32 %v2402_v53, %v2210_v23 }
 0x39f   : >> { %v2492_v51 = vmul.f32 0.2, %v2401_v1  ;;  %v2405_v22 = vadd.f32 %v2404_v55, %v2212_v15 }
 0x3a0   : >> { %v2555_v43 = vmax.f32 %v2399_v57, %v2491_v56  ;;  %v2493_v35 = vmul.f32 0.2, %v2403_v28  ;;  %2715 = vadd.xlane.f32.xlu0 %v2714_v40 }
 0x3a1   : >> { %v2556_v60 = vmax.f32 %v2401_v1, %v2492_v51  ;;  %v2494_v19 = vmul.f32 0.2, %v2405_v22 }
 0x3a2   : >> { %v2557_v34 = vmax.f32 %v2403_v28, %v2493_v35  ;;  %v2631_v32 = vmul.f32 %v6409_v6, %v2555_v43 }
 0x3a3   : >> { %v2558_v54 = vmax.f32 %v2405_v22, %v2494_v19  ;;  %v2632_v20 = vmul.f32 %v6412_v38, %v2556_v60 }
 0x3a4   : >> { %v2215_v62 = vpop.f32.mrb[48].mxu1  ;;  %v2633_v63 = vmul.f32 %v6409_v6, %v2557_v34 }
 0x3a5   : >> { %v2216_v25 = vadd.f32 %v2215_v62, %v6396_v16  ;;  %v2217_v3 = vpop.f32.mrb[49].mxu1  ;;  %v2717_v9 = vadd.f32 %v2632_v20, %v2631_v32  ;;  %v2634_v12 = vmul.f32 %v6412_v38, %v2558_v54 }
 0x3a6   : >> { %v2408_v13 = vpop.f32.mrb[48].mxu0  ;;  %v2218_v47 = vadd.f32 %v2217_v3, %v6399_v44  ;;  %v2219_v27 = vpop.f32.mrb[50].mxu1 }
 0x3a7   : >> { %v2410_v49 = vpop.f32.mrb[49].mxu0  ;;  %v2409_v8 = vadd.f32 %v2408_v13, %v2216_v25  ;;  %v2220_v41 = vadd.f32 %v2219_v27, %v6396_v16  ;;  %v2221_v10 = vpop.f32.mrb[51].mxu1  ;;  %2718 = vadd.xlane.f32.xlu0 %v2717_v9  ;;  %v2720_v58 = vadd.f32 %v2634_v12, %v2633_v63 }
 0x3a8   : >> { %v2412_v42 = vpop.f32.mrb[50].mxu0  ;;  %v2411_v59 = vadd.f32 %v2410_v49, %v2218_v47  ;;  %v2222_v48 = vadd.f32 %v2221_v10, %v6399_v44 }
 0x3a9   : >> { %v2414_v46 = vpop.f32.mrb[51].mxu0  ;;  %v2495_v4 = vmul.f32 0.2, %v2409_v8  ;;  %v2413_v30 = vadd.f32 %v2412_v42, %v2220_v41 }
 0x3aa   : >> { %v2496_v36 = vmul.f32 0.2, %v2411_v59  ;;  %v2415_v52 = vadd.f32 %v2414_v46, %v2222_v48 }
 0x3ab   : >> { %v2559_v29 = vmax.f32 %v2409_v8, %v2495_v4  ;;  %v2497_v26 = vmul.f32 0.2, %v2413_v30  ;;  %2721 = vadd.xlane.f32.xlu0 %v2720_v58 }
 0x3ac   : >> { %v2560_v2 = vmax.f32 %v2411_v59, %v2496_v36  ;;  %v2498_v5 = vmul.f32 0.2, %v2415_v52 }
 0x3ad   : >> { %v2561_v50 = vmax.f32 %v2413_v30, %v2497_v26  ;;  %v2635_v0 = vmul.f32 %v6409_v6, %v2559_v29 }
 0x3ae   : >> { %v2562_v14 = vmax.f32 %v2415_v52, %v2498_v5  ;;  %v2636_v45 = vmul.f32 %v6412_v38, %v2560_v2 }
 0x3af   : >> { %v2225_v11 = vpop.f32.mrb[52].mxu1  ;;  %v2637_v17 = vmul.f32 %v6409_v6, %v2561_v50 }
 0x3b0   : >> { %v2226_v61 = vadd.f32 %v2225_v11, %v6396_v16  ;;  %v2227_v24 = vpop.f32.mrb[53].mxu1  ;;  %v2723_v18 = vadd.f32 %v2636_v45, %v2635_v0  ;;  %v2638_v21 = vmul.f32 %v6412_v38, %v2562_v14 }
 0x3b1   : >> { %v2418_v33 = vpop.f32.mrb[52].mxu0  ;;  %v2228_v39 = vadd.f32 %v2227_v24, %v6399_v44  ;;  %v2229_v31 = vpop.f32.mrb[54].mxu1 }
 0x3b2   : >> { %v2420_v7 = vpop.f32.mrb[53].mxu0  ;;  %v2419_v57 = vadd.f32 %v2418_v33, %v2226_v61  ;;  %v2230_v23 = vadd.f32 %v2229_v31, %v6396_v16  ;;  %v2231_v37 = vpop.f32.mrb[55].mxu1  ;;  %2724 = vadd.xlane.f32.xlu0 %v2723_v18  ;;  %v2726_v40 = vadd.f32 %v2638_v21, %v2637_v17 }
 0x3b3   : >> { %v2422_v53 = vpop.f32.mrb[54].mxu0  ;;  %v2421_v1 = vadd.f32 %v2420_v7, %v2228_v39  ;;  %v2232_v15 = vadd.f32 %v2231_v37, %v6399_v44 }
 0x3b4   : >> { %v2424_v55 = vpop.f32.mrb[55].mxu0  ;;  %v2499_v56 = vmul.f32 0.2, %v2419_v57  ;;  %v2423_v28 = vadd.f32 %v2422_v53, %v2230_v23 }
 0x3b5   : >> { %v2500_v51 = vmul.f32 0.2, %v2421_v1  ;;  %v2425_v22 = vadd.f32 %v2424_v55, %v2232_v15 }
 0x3b6   : >> { %v2563_v43 = vmax.f32 %v2419_v57, %v2499_v56  ;;  %v2501_v35 = vmul.f32 0.2, %v2423_v28  ;;  %2727 = vadd.xlane.f32.xlu0 %v2726_v40 }
 0x3b7   : >> { %v2564_v60 = vmax.f32 %v2421_v1, %v2500_v51  ;;  %v2502_v19 = vmul.f32 0.2, %v2425_v22 }
 0x3b8   : >> { %v2565_v34 = vmax.f32 %v2423_v28, %v2501_v35  ;;  %v2639_v32 = vmul.f32 %v6409_v6, %v2563_v43 }
 0x3b9   : >> { %v2566_v54 = vmax.f32 %v2425_v22, %v2502_v19  ;;  %v2640_v20 = vmul.f32 %v6412_v38, %v2564_v60 }
 0x3ba   : >> { %v2235_v62 = vpop.f32.mrb[56].mxu1  ;;  %v2641_v63 = vmul.f32 %v6409_v6, %v2565_v34 }
 0x3bb   : >> { %v2236_v25 = vadd.f32 %v2235_v62, %v6396_v16  ;;  %v2237_v3 = vpop.f32.mrb[57].mxu1  ;;  %v2729_v9 = vadd.f32 %v2640_v20, %v2639_v32  ;;  %v2642_v12 = vmul.f32 %v6412_v38, %v2566_v54 }
 0x3bc   : >> { %v2428_v13 = vpop.f32.mrb[56].mxu0  ;;  %v2238_v47 = vadd.f32 %v2237_v3, %v6399_v44  ;;  %v2239_v27 = vpop.f32.mrb[58].mxu1 }
 0x3bd   : >> { %v2430_v49 = vpop.f32.mrb[57].mxu0  ;;  %v2429_v8 = vadd.f32 %v2428_v13, %v2236_v25  ;;  %v2240_v41 = vadd.f32 %v2239_v27, %v6396_v16  ;;  %v2241_v10 = vpop.f32.mrb[59].mxu1  ;;  %2730 = vadd.xlane.f32.xlu0 %v2729_v9  ;;  %v2732_v58 = vadd.f32 %v2642_v12, %v2641_v63 }
 0x3be   : >> { %v2432_v42 = vpop.f32.mrb[58].mxu0  ;;  %v2431_v59 = vadd.f32 %v2430_v49, %v2238_v47  ;;  %v2242_v48 = vadd.f32 %v2241_v10, %v6399_v44  ;;  %v2656_v3 = vpop.xlane.xlu1 %2655 }
 0x3bf   : >> { %v2434_v46 = vpop.f32.mrb[59].mxu0  ;;  %v2503_v4 = vmul.f32 0.2, %v2429_v8  ;;  %v2433_v30 = vadd.f32 %v2432_v42, %v2240_v41  ;;  %v2653_v42 = vpop.xlane.xlu0 %2652 }
 0x3c0   : >> { %v2504_v36 = vmul.f32 0.2, %v2431_v59  ;;  %v2435_v52 = vadd.f32 %v2434_v46, %v2242_v48 }
 0x3c1   : >> { %v2567_v29 = vmax.f32 %v2429_v8, %v2503_v4  ;;  %v2505_v26 = vmul.f32 0.2, %v2433_v30  ;;  %2733 = vadd.xlane.f32.xlu0 %v2732_v58 }
 0x3c2   : >> { %v2568_v2 = vmax.f32 %v2431_v59, %v2504_v36  ;;  %v2506_v5 = vmul.f32 0.2, %v2435_v52  ;;  %v2245_v50 = vpop.f32.mrb[60].mxu1 }
 0x3c3   : >> { %v2569_v11 = vmax.f32 %v2433_v30, %v2505_v26  ;;  %v2246_v0 = vadd.f32 %v2245_v50, %v6396_v16  ;;  %v2247_v61 = vpop.f32.mrb[61].mxu1  ;;  %v2643_v33 = vmul.f32 %v6409_v6, %v2567_v29 }
 0x3c4   : >> { %v2438_v14 = vpop.f32.mrb[60].mxu0  ;;  %v2570_v24 = vmax.f32 %v2435_v52, %v2506_v5  ;;  %v2248_v45 = vadd.f32 %v2247_v61, %v6399_v44  ;;  %v2249_v7 = vpop.f32.mrb[62].mxu1  ;;  %v2644_v31 = vmul.f32 %v6412_v38, %v2568_v2 }
 0x3c5   : >> { %v2440_v39 = vpop.f32.mrb[61].mxu0  ;;  %v2439_v17 = vadd.f32 %v2438_v14, %v2246_v0  ;;  %v2250_v57 = vadd.f32 %v2249_v7, %v6396_v16  ;;  %v2251_v53 = vpop.f32.mrb[63].mxu1  ;;  %v2645_v37 = vmul.f32 %v6409_v6, %v2569_v11 }
 0x3c6   : >> { %v2442_v23 = vpop.f32.mrb[62].mxu0  ;;  %v2441_v18 = vadd.f32 %v2440_v39, %v2248_v45  ;;  %v2252_v21 = vadd.f32 %v2251_v53, %v6399_v44  ;;  %v2735_v15 = vadd.f32 %v2644_v31, %v2643_v33  ;;  %v2646_v55 = vmul.f32 %v6412_v38, %v2570_v24 }
 0x3c7   : >> { %v2444_v1 = vpop.f32.mrb[63].mxu0  ;;  %v2507_v56 = vmul.f32 0.2, %v2439_v17  ;;  %v2443_v28 = vadd.f32 %v2442_v23, %v2250_v57  ;;  %v2659_v20 = vpop.xlane.xlu1 %2658 }
 0x3c8   : >> { %v2508_v40 = vmul.f32 0.2, %v2441_v18  ;;  %v2445_v51 = vadd.f32 %v2444_v1, %v2252_v21  ;;  %2736 = vadd.xlane.f32.xlu0 %v2735_v15  ;;  %v2738_v22 = vadd.f32 %v2646_v55, %v2645_v37 }
 0x3c9   : >> { %v2571_v43 = vmax.f32 %v2439_v17, %v2507_v56  ;;  %v2509_v35 = vmul.f32 0.2, %v2443_v28 }
 0x3ca   : >> { %v2572_v16 = vmax.f32 %v2441_v18, %v2508_v40  ;;  %v2510_v60 = vmul.f32 0.2, %v2445_v51 }
 0x3cb   : >> { %v2573_v19 = vmax.f32 %v2443_v28, %v2509_v35  ;;  %v2647_v34 = vmul.f32 %v6409_v6, %v2571_v43  ;;  %v2662_v47 = vpop.xlane.xlu1 %2661 }
 0x3cc   : >> { %v2574_v62 = vmax.f32 %v2445_v51, %v2510_v60  ;;  %2739 = vadd.xlane.f32.xlu0 %v2738_v22  ;;  %v2648_v44 = vmul.f32 %v6412_v38, %v2572_v16 }
 0x3cd   : >> { %v2649_v32 = vmul.f32 %v6409_v6, %v2573_v19  ;;  %v6541_v6 = vstv %s5437_s8 }
 0x3ce   : >> { %v2741_v54 = vadd.f32 %v2648_v44, %v2647_v34  ;;  %v2650_v25 = vmul.f32 %v6412_v38, %v2574_v62  ;;  %v2748_v38 = vadd.f32 %v6541_v6, %v2653_v42  ;;  %v2749_v48 = vadd.f32 %v6541_v6, %v2656_v3 }
 0x3cf   : >> { %v2750_v46 = vadd.f32 %v6541_v6, %v2659_v20  ;;  %v2751_v4 = vadd.f32 %v6541_v6, %v2662_v47 }
 0x3d0   : >> { %2742 = vadd.xlane.f32.xlu0 %v2741_v54  ;;  %v2744_v13 = vadd.f32 %v2650_v25, %v2649_v32  ;;  %v4025_v58 = vmul.f32 -1.442695, %v2748_v38  ;;  %v4026_v52 = vmul.f32 -1.442695, %v2749_v48 }
 0x3d1   : >> { %v2665_v49 = vpop.xlane.xlu1 %2664  ;;  %v4027_v26 = vmul.f32 -1.442695, %v2750_v46  ;;  %v4028_v5 = vmul.f32 -1.442695, %v2751_v4 }
 0x3d2   : >> { %v2752_v36 = vadd.f32 %v6541_v6, %v2665_v49  ;;  %4569 = vpow2.f32 %v4025_v58 }
 0x3d3   : >> { %4571 = vpow2.f32 %v4026_v52 }
 0x3d4   : >> { %2745 = vadd.xlane.f32.xlu0 %v2744_v13  ;;  %v4029_v0 = vmul.f32 -1.442695, %v2752_v36  ;;  %4573 = vpow2.f32 %v4027_v26 }
 0x3d5   : >> { %v2668_v27 = vpop.xlane.xlu1 %2667  ;;  %4575 = vpow2.f32 %v4028_v5 }
 0x3d6   : >> { %v2753_v29 = vadd.f32 %v6541_v6, %v2668_v27  ;;  %4577 = vpow2.f32 %v4029_v0 }
 0x3d8   : >> { %v4030_v61 = vmul.f32 -1.442695, %v2753_v29 }
 0x3da   : >> { %4579 = vpow2.f32 %v4030_v61 }
 0x3dc   : >> { %v2671_v63 = vpop.xlane.xlu1 %2670  ;;  %v4570_v15 = vpop.eup %4569 }
 0x3dd   : >> { %v2754_v50 = vadd.f32 %v6541_v6, %v2671_v63  ;;  %v4572_v55 = vpop.eup %4571  ;;  %v2876_v22 = vadd.f32 1.0, %v4570_v15 }
 0x3de   : >> { %v4574_v28 = vpop.eup %4573  ;;  %v2877_v16 = vadd.f32 1.0, %v4572_v55 }
 0x3df   : >> { %v4031_v45 = vmul.f32 -1.442695, %v2754_v50  ;;  %v4576_v51 = vpop.eup %4575  ;;  %v2878_v19 = vadd.f32 1.0, %v4574_v28 }
 0x3e0   : >> { %v2674_v8 = vpop.xlane.xlu1 %2673  ;;  %v4578_v35 = vpop.eup %4577  ;;  %v2879_v62 = vadd.f32 1.0, %v4576_v51 }
 0x3e1   : >> { %v2755_v14 = vadd.f32 %v6541_v6, %v2674_v8  ;;  %4581 = vpow2.f32 %v4031_v45  ;;  %v2880_v32 = vadd.f32 1.0, %v4578_v35 }
 0x3e3   : >> { %v4032_v7 = vmul.f32 -1.442695, %v2755_v14 }
 0x3e4   : >> { %v4580_v60 = vpop.eup %4579 }
 0x3e5   : >> { %4583 = vpow2.f32 %v4032_v7  ;;  %v2881_v13 = vadd.f32 1.0, %v4580_v60 }
 0x3e7   : >> { %v2677_v41 = vpop.xlane.xlu1 %2676 }
 0x3e8   : >> { %v2756_v33 = vadd.f32 %v6541_v6, %v2677_v41 }
 0x3ea   : >> { %v4033_v23 = vmul.f32 -1.442695, %v2756_v33 }
 0x3eb   : >> { %v2680_v10 = vpop.xlane.xlu1 %2679  ;;  %v4582_v44 = vpop.eup %4581 }
 0x3ec   : >> { %v2757_v24 = vadd.f32 %v6541_v6, %v2680_v10  ;;  %4585 = vpow2.f32 %v4033_v23  ;;  %v2882_v27 = vadd.f32 1.0, %v4582_v44 }
 0x3ee   : >> { %v4034_v53 = vmul.f32 -1.442695, %v2757_v24 }
 0x3ef   : >> { %v4584_v25 = vpop.eup %4583 }
 0x3f0   : >> { %4587 = vpow2.f32 %v4034_v53  ;;  %v2883_v8 = vadd.f32 1.0, %v4584_v25 }
 0x3f2   : >> { %v2683_v59 = vpop.xlane.xlu1 %2682 }
 0x3f3   : >> { %v2758_v39 = vadd.f32 %v6541_v6, %v2683_v59 }
 0x3f5   : >> { %v4035_v37 = vmul.f32 -1.442695, %v2758_v39 }
 0x3f6   : >> { %v2686_v2 = vpop.xlane.xlu1 %2685  ;;  %v4586_v3 = vpop.eup %4585 }
 0x3f7   : >> { %v2759_v31 = vadd.f32 %v6541_v6, %v2686_v2  ;;  %4589 = vpow2.f32 %v4035_v37  ;;  %v2884_v42 = vadd.f32 1.0, %v4586_v3 }
 0x3f9   : >> { %v4036_v21 = vmul.f32 -1.442695, %v2759_v31 }
 0x3fa   : >> { %v4588_v49 = vpop.eup %4587 }
 0x3fb   : >> { %4591 = vpow2.f32 %v4036_v21  ;;  %v2885_v59 = vadd.f32 1.0, %v4588_v49 }
 0x3fd   : >> { %v2689_v17 = vpop.xlane.xlu1 %2688 }
 0x3fe   : >> { %v2760_v18 = vadd.f32 %v6541_v6, %v2689_v17 }
 0x400   : >> { %v4037_v56 = vmul.f32 -1.442695, %v2760_v18 }
 0x401   : >> { %v2692_v40 = vpop.xlane.xlu1 %2691  ;;  %v4590_v63 = vpop.eup %4589 }
 0x402   : >> { %4593 = vpow2.f32 %v4037_v56  ;;  %v2761_v34 = vadd.f32 %v6541_v6, %v2692_v40  ;;  %v2886_v46 = vadd.f32 1.0, %v4590_v63 }
 0x403   : >> { %4595 = vrcp.f32 %v2876_v22 }
 0x404   : >> { %4597 = vrcp.f32 %v2877_v16  ;;  %v4038_v20 = vmul.f32 -1.442695, %v2761_v34 }
 0x405   : >> { %4599 = vrcp.f32 %v2878_v19  ;;  %v4592_v41 = vpop.eup %4591 }
 0x406   : >> { %4601 = vrcp.f32 %v2879_v62  ;;  %v2887_v58 = vadd.f32 1.0, %v4592_v41 }
 0x407   : >> { %4603 = vrcp.f32 %v2880_v32 }
 0x408   : >> { %v2695_v47 = vpop.xlane.xlu1 %2694  ;;  %4605 = vrcp.f32 %v2881_v13 }
 0x409   : >> { %v2762_v10 = vadd.f32 %v6541_v6, %v2695_v47  ;;  %4607 = vpow2.f32 %v4038_v20 }
 0x40a   : >> { %4609 = vrcp.f32 %v2882_v27 }
 0x40b   : >> { %4611 = vrcp.f32 %v2883_v8  ;;  %v4039_v29 = vmul.f32 -1.442695, %v2762_v10 }
 0x40c   : >> { %v4594_v4 = vpop.eup %4593  ;;  %v2698_v36 = vpop.xlane.xlu1 %2697  ;;  %4613 = vrcp.f32 %v2884_v42 }
 0x40d   : >> { %v6576_v5 = vpop.eup %4595  ;;  %4615 = vrcp.f32 %v2885_v59  ;;  %v2888_v14 = vadd.f32 1.0, %v4594_v4  ;;  %v2763_v61 = vadd.f32 %v6541_v6, %v2698_v36 }
 0x40e   : >> { %v6580_v0 = vpop.eup %4597  ;;  %4617 = vrcp.f32 %v2886_v46 }
 0x40f   : >> { %4619 = vrcp.f32 %v2887_v58  ;;  %v4040_v53 = vmul.f32 -1.442695, %v2763_v61 }
 0x410   : >> { %4621 = vpow2.f32 %v4039_v29 }
 0x413   : >> { %v6538_v9 = vpop.xlane.xlu0 %2700 }
 0x414   : >> { %v2764_v48 = vadd.f32 %v6541_v6, %v6538_v9 }
 0x416   : >> { %v4041_v50 = vmul.f32 -1.442695, %v2764_v48 }
 0x417   : >> { %v6543_v12 = vpop.xlane.xlu0 %2703 }
 0x418   : >> { %v2765_v52 = vadd.f32 %v6541_v6, %v6543_v12  ;;  %v6583_v12 = vpop.eup %4599  ;;  %4623 = vpow2.f32 %v4041_v50 }
 0x419   : >> { %v6587_v24 = vpop.eup %4601  ;;  %4625 = vrcp.f32 %v2888_v14 }
 0x41a   : >> { %v4042_v33 = vmul.f32 -1.442695, %v2765_v52  ;;  %v6591_v39 = vpop.eup %4603 }
 0x41b   : >> { %v6595_v23 = vpop.eup %4605 }
 0x41c   : >> { %4627 = vpow2.f32 %v4042_v33 }
 0x41e   : >> { %v6549_v30 = vpop.xlane.xlu0 %2706 }
 0x41f   : >> { %v2766_v26 = vadd.f32 %v6541_v6, %v6549_v30 }
 0x421   : >> { %v4043_v45 = vmul.f32 -1.442695, %v2766_v26 }
 0x422   : >> { %v6554_v11 = vpop.xlane.xlu0 %2709 }
 0x423   : >> { %v2767_v9 = vadd.f32 %v6541_v6, %v6554_v11  ;;  %4629 = vpow2.f32 %v4043_v45 }
 0x425   : >> { %v4044_v7 = vmul.f32 -1.442695, %v2767_v9 }
 0x427   : >> { %4631 = vpow2.f32 %v4044_v7 }
 0x428   : >> { %4633 = vpow2.f32 %v4040_v53 }
 0x429   : >> { %v6561_v57 = vpop.xlane.xlu0 %2712 }
 0x42a   : >> { %v2768_v30 = vadd.f32 %v6541_v6, %v6561_v57  ;;  %v4608_v57 = vpop.eup %4607 }
 0x42b   : >> { %v6598_v21 = vpop.eup %4609  ;;  %v2889_v22 = vadd.f32 1.0, %v4608_v57 }
 0x42c   : >> { %v4045_v37 = vmul.f32 -1.442695, %v2768_v30  ;;  %v6601_v55 = vpop.eup %4611 }
 0x42d   : >> { %v6564_v1 = vpop.xlane.xlu0 %2715  ;;  %v6604_v51 = vpop.eup %4613 }
 0x42e   : >> { %v2769_v11 = vadd.f32 %v6541_v6, %v6564_v1  ;;  %v6607_v35 = vpop.eup %4615  ;;  %4635 = vpow2.f32 %v4045_v37  ;;  %v7093_v37 = vld [vmem:[#allocation18_spill] sm:$0xff] }
 0x42f   : >> { %v6610_v19 = vpop.eup %4617 }
 0x430   : >> { %v4046_v1 = vmul.f32 -1.442695, %v2769_v11  ;;  %v6612_v62 = vpop.eup %4619 }
 0x431   : >> { %v4622_v32 = vpop.eup %4621 }
 0x432   : >> { %4637 = vpow2.f32 %v4046_v1  ;;  %v4624_v13 = vpop.eup %4623  ;;  %v2890_v27 = vadd.f32 1.0, %v4622_v32 }
 0x433   : >> { %v6615_v47 = vpop.eup %4625  ;;  %v2892_v41 = vadd.f32 1.0, %v4624_v13 }
 0x434   : >> { %v6566_v43 = vpop.xlane.xlu0 %2718  ;;  %v4628_v49 = vpop.eup %4627 }
 0x435   : >> { %v2770_v31 = vadd.f32 %v6541_v6, %v6566_v43  ;;  %v4630_v8 = vpop.eup %4629  ;;  %v2893_v4 = vadd.f32 1.0, %v4628_v49 }
 0x436   : >> { %v4632_v10 = vpop.eup %4631  ;;  %v2894_v36 = vadd.f32 1.0, %v4630_v8 }
 0x437   : >> { %v4047_v56 = vmul.f32 -1.442695, %v2770_v31  ;;  %v6621_v46 = vpop.eup %4633  ;;  %v2895_v26 = vadd.f32 1.0, %v4632_v10 }
 0x438   : >> { %v2722_v54 = vpop.xlane.xlu0 %2721  ;;  %v4636_v58 = vpop.eup %4635 }
 0x439   : >> { %v2771_v18 = vadd.f32 %v6541_v6, %v2722_v54  ;;  %4639 = vpow2.f32 %v4047_v56  ;;  %v2896_v11 = vadd.f32 1.0, %v4636_v58 }
 0x43a   : >> { %4641 = vrcp.f32 %v2889_v22 }
 0x43b   : >> { %v4048_v16 = vmul.f32 -1.442695, %v2771_v18 }
 0x43c   : >> { %v4638_v29 = vpop.eup %4637 }
 0x43d   : >> { %4643 = vpow2.f32 %v4048_v16 }
 0x43f   : >> { %v2725_v38 = vpop.xlane.xlu0 %2724 }
 0x440   : >> { %v2772_v15 = vadd.f32 %v6541_v6, %v2725_v38  ;;  %v7092_v38 = vlaneseq }
 0x442   : >> { %v4049_v34 = vmul.f32 -1.442695, %v2772_v15  ;;  %v6618_v59 = vand.u32 127, %v7092_v38 }
 0x443   : >> { %v2728_v2 = vpop.xlane.xlu0 %2727  ;;  %v4640_v50 = vpop.eup %4639 }
 0x444   : >> { %v2773_v28 = vadd.f32 %v6541_v6, %v2728_v2  ;;  %4645 = vpow2.f32 %v4049_v34  ;;  %v3017_v9 = vadd.s32 4294967288, %v6618_v59  ;;  %v3024_v14 = vadd.s32 4294967280, %v6618_v59  ;;  %v6626_v33 = vpop.eup %4641 }
 0x445   : >> { %v3031_v30 = vadd.s32 4294967272, %v6618_v59  ;;  %v3038_v45 = vadd.s32 4294967264, %v6618_v59  ;;  %v3045_v31 = vadd.s32 4294967256, %v6618_v59  ;;  %v6633_v18 = vsub.s32 %v6618_v59, %v7093_v37 }
 0x446   : >> { %v4050_v44 = vmul.f32 -1.442695, %v2773_v28  ;;  %v2898_v1 = vadd.f32 1.0, %v4640_v50  ;;  %v6636_v28 = vsub.s32 %v3017_v9, %v7093_v37  ;;  %v3073_v8 = vadd.s32 4294967224, %v6618_v59 }
 0x447   : >> { %v4644_v7 = vpop.eup %4643  ;;  %v6643_v16 = vsub.s32 %v3031_v30, %v7093_v37  ;;  %v6649_v32 = vsub.s32 %v3045_v31, %v7093_v37  ;;  %v3080_v10 = vadd.s32 4294967216, %v6618_v59  ;;  %v3087_v38 = vadd.s32 4294967208, %v6618_v59 }
 0x448   : >> { %4647 = vpow2.f32 %v4050_v44  ;;  %v2899_v34 = vadd.f32 1.0, %v4644_v7  ;;  %v3094_v58 = vadd.s32 4294967200, %v6618_v59  ;;  %v3108_v30 = vadd.s32 4294967184, %v6618_v59 }
 0x449   : >> { %v6678_v7 = vsub.s32 %v3080_v10, %v7093_v37  ;;  %v3115_v31 = vadd.s32 4294967176, %v6618_v59 }
 0x44a   : >> { %v2731_v17 = vpop.xlane.xlu0 %2730 }
 0x44b   : >> { %v2774_v43 = vadd.f32 %v6541_v6, %v2731_v17  ;;  %v2897_v17 = vadd.f32 1.0, %v4638_v29 }
 0x44d   : >> { %v4051_v54 = vmul.f32 -1.442695, %v2774_v43 }
 0x44e   : >> { %v2734_v40 = vpop.xlane.xlu0 %2733  ;;  %v4646_v57 = vpop.eup %4645 }
 0x44f   : >> { %v2775_v60 = vadd.f32 %v6541_v6, %v2734_v40  ;;  %4649 = vpow2.f32 %v4051_v54  ;;  %v6639_v40 = vsub.s32 %v3024_v14, %v7093_v37  ;;  %v2900_v54 = vadd.f32 1.0, %v4646_v57 }
 0x451   : >> { %v4052_v3 = vmul.f32 -1.442695, %v2775_v60  ;;  %v6646_v60 = vsub.s32 %v3038_v45, %v7093_v37 }
 0x452   : >> { %v4648_v56 = vpop.eup %4647 }
 0x453   : >> { %4651 = vpow2.f32 %v4052_v3  ;;  %v3052_v3 = vadd.s32 4294967248, %v6618_v59  ;;  %v2901_v49 = vadd.f32 1.0, %v4648_v56 }
 0x455   : >> { %v2737_v25 = vpop.xlane.xlu0 %2736 }
 0x456   : >> { %v2776_v20 = vadd.f32 %v6541_v6, %v2737_v25 }
 0x458   : >> { %v4053_v63 = vmul.f32 -1.442695, %v2776_v20  ;;  %v3059_v20 = vadd.s32 4294967240, %v6618_v59 }
 0x459   : >> { %v2740_v42 = vpop.xlane.xlu0 %2739  ;;  %v4650_v43 = vpop.eup %4649 }
 0x45a   : >> { %v2777_v48 = vadd.f32 %v6541_v6, %v2740_v42  ;;  %4653 = vpow2.f32 %v4053_v63  ;;  %v3066_v63 = vadd.s32 4294967232, %v6618_v59 }
 0x45b   : >> { %4655 = vrcp.f32 %v2890_v27 }
 0x45c   : >> { %v4054_v52 = vmul.f32 -1.442695, %v2777_v48  ;;  %4657 = vrcp.f32 %v2892_v41  ;;  %v2902_v41 = vadd.f32 1.0, %v4650_v43  ;;  %v6670_v14 = vsub.s32 %v3066_v63, %v7093_v37 }
 0x45d   : >> { %v2743_v2 = vpop.xlane.xlu0 %2742  ;;  %v4652_v44 = vpop.eup %4651 }
 0x45e   : >> { %4659 = vpow2.f32 %v4054_v52  ;;  %v2778_v61 = vadd.f32 %v6541_v6, %v2743_v2  ;;  %v2903_v48 = vadd.f32 1.0, %v4652_v44  ;;  %v3101_v52 = vadd.s32 4294967192, %v6618_v59  ;;  %v2975_v59 = vld [vmem:[%s2974_s23] sm:$0x3] }
 0x45f   : >> { %4661 = vrcp.f32 %v2893_v4  ;;  %v6667_v2 = vsub.s32 %v3059_v20, %v7093_v37 }
 0x460   : >> { %4663 = vrcp.f32 %v2894_v36  ;;  %v4055_v53 = vmul.f32 -1.442695, %v2778_v61  ;;  %v2891_v61 = vadd.f32 1.0, %v6621_v46  ;;  %v6682_v46 = vsub.s32 %v3087_v38, %v7093_v37 }
 0x461   : >> { %4665 = vrcp.f32 %v2895_v26  ;;  %v2746_v15 = vpop.xlane.xlu0 %2745  ;;  %v6664_v26 = vsub.s32 %v3052_v3, %v7093_v37  ;;  %v6688_v57 = vsub.s32 %v3101_v52, %v7093_v37  ;;  %v6705_v3 = vsub.s32 %v3115_v31, %v7093_v37 }
 0x462   : >> { %4667 = vpow2.f32 %v4055_v53  ;;  %v2779_v22 = vadd.f32 %v6541_v6, %v2746_v15  ;;  %v6685_v53 = vsub.s32 %v3094_v58, %v7093_v37  ;;  %v3021_v15 = vrot.slane %v6580_v0, %v6636_v28 }
 0x463   : >> { %4669 = vrcp.f32 %v2896_v11  ;;  %v6675_v11 = vsub.s32 %v3073_v8, %v7093_v37  ;;  %v3016_v0 = vrot.slane %v6576_v5, %v6633_v18  ;;  %v3042_v8 = vrot.slane %v6591_v39, %v6646_v60 }
 0x464   : >> { %4671 = vrcp.f32 %v2897_v17  ;;  %v4056_v25 = vmul.f32 -1.442695, %v2779_v22  ;;  %v4654_v13 = vpop.eup %4653  ;;  %v2976_v22 = vstv %s792_s22 }
 0x465   : >> { %4673 = vrcp.f32 %v2898_v1  ;;  %v6653_v27 = vpop.eup %4655  ;;  %v2904_v36 = vadd.f32 1.0, %v4654_v13  ;;  %v6712_v63 = vmul.f32 %v2976_v22, %v2975_v59 }
 0x466   : >> { %4675 = vpow2.f32 %v4056_v25  ;;  %v6657_v42 = vpop.eup %4657 }
 0x467   : >> { %4677 = vrcp.f32 %v2899_v34  ;;  %v3028_v34 = vrot.slane %v6583_v12, %v6639_v40  ;;  %v3035_v12 = vrot.slane %v6587_v24, %v6643_v16 }
 0x468   : >> { %v4660_v4 = vpop.eup %4659  ;;  %4679 = vrcp.f32 %v2900_v54  ;;  %v6699_v54 = vsub.s32 %v3108_v30, %v7093_v37 }
 0x469   : >> { %v4662_v29 = vpop.eup %4661  ;;  %4681 = vrcp.f32 %v2901_v49  ;;  %v2905_v50 = vadd.f32 1.0, %v4660_v4 }
 0x46a   : >> { %v4664_v9 = vpop.eup %4663  ;;  %4683 = vrcp.f32 %v2902_v41  ;;  %v3129_v44 = vrot.slane %v4662_v29, %v6636_v28  ;;  %v3125_v28 = vrot.slane %v6657_v42, %v6633_v18  ;;  %v3049_v18 = vrot.slane %v6595_v23, %v6649_v32 }
 0x46b   : >> { %v4666_v45 = vpop.eup %4665  ;;  %4685 = vrcp.f32 %v2903_v48  ;;  %v3134_v13 = vrot.slane %v4664_v9, %v6639_v40  ;;  %v3023_v40 = vsel %vm3022_vm1, %v3021_v15, %v3016_v0  ;;  %v3056_v48 = vrot.slane %v6598_v21, %v6664_v26 }
 0x46c   : >> { %v4668_v17 = vpop.eup %4667  ;;  %4687 = vrcp.f32 %v2904_v36  ;;  %v3139_v49 = vrot.slane %v4666_v45, %v6643_v16  ;;  %v3030_v24 = vsel %vm3029_vm2, %v3028_v34, %v3023_v40  ;;  %v3130_v16 = vsel %vm3022_vm1, %v3129_v44, %v3125_v28  ;;  %v2973_v34 = vld [vmem:[%s2972_s26] sm:$0x3] }
 0x46d   : >> { %v4670_v1 = vpop.eup %4669  ;;  %4689 = vrcp.f32 %v2905_v50  ;;  %v2906_v56 = vadd.f32 1.0, %v4668_v17  ;;  %v3135_v39 = vsel %vm3029_vm2, %v3134_v13, %v3130_v16  ;;  %v3037_v58 = vsel %vm3036_vm3, %v3035_v12, %v3030_v24 }
 0x46e   : >> { %v4672_v43 = vpop.eup %4671  ;;  %4691 = vrcp.f32 %v2891_v61  ;;  %v3144_v37 = vrot.slane %v4670_v1, %v6646_v60  ;;  %v3063_v23 = vrot.slane %v6601_v55, %v6667_v2  ;;  %v3140_v36 = vsel %vm3036_vm3, %v3139_v49, %v3135_v39 }
 0x46f   : >> { %v4674_v25 = vpop.eup %4673  ;;  %4693 = vrcp.f32 %v2906_v56  ;;  %v3149_v42 = vrot.slane %v4672_v43, %v6649_v32  ;;  %v3044_v21 = vsel %vm3043_vm4, %v3042_v8, %v3037_v58  ;;  %v3070_v29 = vrot.slane %v6604_v51, %v6670_v14 }
 0x470   : >> { %v4676_v20 = vpop.eup %4675  ;;  %v3154_v60 = vrot.slane %v4674_v25, %v6664_v26  ;;  %v3145_v26 = vsel %vm3043_vm4, %v3144_v37, %v3140_v36  ;;  %v3051_v61 = vsel %vm3050_vm5, %v3049_v18, %v3044_v21  ;;  %v3077_v55 = vrot.slane %v6607_v35, %v6675_v11 }
 0x471   : >> { %v4678_v5 = vpop.eup %4677  ;;  %v2907_v41 = vadd.f32 1.0, %v4676_v20  ;;  %v3058_v31 = vsel %vm3057_vm6, %v3056_v48, %v3051_v61  ;;  %v3084_v51 = vrot.slane %v6610_v19, %v6678_v7  ;;  %v3091_v35 = vrot.slane %v6612_v62, %v6682_v46 }
 0x472   : >> { %v4680_v10 = vpop.eup %4679  ;;  %v3159_v32 = vrot.slane %v4678_v5, %v6667_v2  ;;  %v3150_v2 = vsel %vm3050_vm5, %v3149_v42, %v3145_v26  ;;  %v3065_v15 = vsel %vm3064_vm7, %v3063_v23, %v3058_v31  ;;  %v3098_v19 = vrot.slane %v6615_v47, %v6685_v53  ;;  %v7094_v42 = vld [vmem:[#allocation17_spill] sm:$0xff] }
 0x473   : >> { %v4682_v38 = vpop.eup %4681  ;;  %4695 = vrcp.f32 %v2907_v41  ;;  %v3164_v50 = vrot.slane %v4680_v10, %v6670_v14  ;;  %v3155_v17 = vsel %vm3057_vm6, %v3154_v60, %v3150_v2  ;;  %v3072_v22 = vsel %vm3071_vm8, %v3070_v29, %v3065_v15 }
 0x474   : >> { %v4684_v4 = vpop.eup %4683  ;;  %v3169_v30 = vrot.slane %v4682_v38, %v6675_v11  ;;  %v3160_v11 = vsel %vm3064_vm7, %v3159_v32, %v3155_v17  ;;  %v3079_v44 = vsel %vm3078_vm9, %v3077_v55, %v3072_v22  ;;  %v3105_v62 = vrot.slane %v6626_v33, %v6688_v57 }
 0x475   : >> { %v4686_v52 = vpop.eup %4685  ;;  %v3174_v14 = vrot.slane %v4684_v4, %v6678_v7  ;;  %v3165_v7 = vsel %vm3071_vm8, %v3164_v50, %v3160_v11  ;;  %v3086_v0 = vsel %vm3085_vm10, %v3084_v51, %v3079_v44  ;;  %v3112_v13 = vrot.slane %v6653_v27, %v6699_v54 }
 0x476   : >> { %v4688_v9 = vpop.eup %4687  ;;  %v3179_v56 = vrot.slane %v4686_v52, %v6682_v46  ;;  %v3170_v25 = vsel %vm3078_vm9, %v3169_v30, %v3165_v7  ;;  %v2978_v49 = vsub.f32 %v2973_v34, %v6712_v63  ;;  %vm3205_vm1 = vcmask 1041408  }
 0x477   : >> { %v4690_v45 = vpop.eup %4689  ;;  %v3184_v43 = vrot.slane %v4688_v9, %v6685_v53  ;;  %v3175_v47 = vsel %vm3085_vm10, %v3174_v14, %v3170_v25  ;;  %v3093_v53 = vsel %vm3092_vm11, %v3091_v35, %v3086_v0  ;;  %vm3212_vm2 = vcmask (%p797_p4), 1024  }
 0x478   : >> { %v4692_v1 = vpop.eup %4691  ;;  %v3189_v46 = vrot.slane %v4690_v45, %v6688_v57  ;;  %v3180_v33 = vsel %vm3092_vm11, %v3179_v56, %v3175_v47  ;;  %v3100_v57 = vsel %vm3099_vm12, %v3098_v19, %v3093_v53 }
 0x479   : >> { %v4694_v59 = vpop.eup %4693  ;;  %v3119_v12 = vrot.slane %v4692_v1, %v6705_v3  ;;  %v3185_v5 = vsel %vm3099_vm12, %v3184_v43, %v3180_v33  ;;  %v3107_v27 = vsel %vm3106_vm13, %v3105_v62, %v3100_v57 }
 0x47a   : >> { %v3194_v20 = vrot.slane %v4694_v59, %v6699_v54  ;;  %v3190_v40 = vsel %vm3106_vm13, %v3189_v46, %v3185_v5  ;;  %v3114_v8 = vsel %vm3113_vm14, %v3112_v13, %v3107_v27 }
 0x47b   : >> { %v3121_v41 = vsel %vm3120_vm15, %v3119_v12, %v3114_v8 }
 0x47c   : >> { %v3195_v37 = vsel %vm3113_vm14, %v3194_v20, %v3190_v40 }
 0x47d   : >> { %v4696_v28 = vpop.eup %4695 }
 0x47e   : >> { %v3199_v54 = vrot.slane %v4696_v28, %v6705_v3  ;;  %v3210_v3 = vld [vmem:[#allocation3] sm:$0x3] (%p797_p4) }
 0x480   : >> { %v3200_v10 = vsel %vm3120_vm15, %v3199_v54, %v3195_v37 }
 0x481   : >> { %v3202_v24 = vsel %vm3201_vm0, %v3200_v10, %v3121_v41 }
 0x482   : >> { %v3204_v18 = vmul.f32 %v3202_v24, %v2978_v49 }
 0x484   : >> { %v3206_v63 = vsel %vm3205_vm1, %v3204_v18, 0.0 }
 0x485   : >> { %3207 = vadd.xlane.f32.xlu1 %v3206_v63 }
 0x50f   : > { %799 = sbr.rel (!%p797_p4) target bundleno = 450 (0x1c2), region = 153 }
 0x512   : >> { %v3208_v16 = vpop.xlane.xlu1 %3207 }
 0x513   : >> { %v3209_v38 = vadd.f32 %v7094_v42, %v3208_v16  }
 0x515   : >> { %v7095_v13 = vmov %v3209_v38  ;;  %v3211_v48 = vadd.f32 (%p797_p4), %v3210_v3, %v3209_v38 }
 0x516   : > { %3216 = sbr.rel (%p4057_p5) target bundleno = 1769 (0x6e9), region = 98  ;;  %v4697_v39 = vld [vmem:[#allocation12 + $0x4] ss:$8 sps:$4 sm:$0xff] (!%p4057_p5)   ;;  %v4701_v23 = vld [vmem:[#allocation12] ss:$8 sps:$4 sm:$0xff] (!%p4057_p5)   ;;  %s7100_s10 = sld [smem:[#allocation41_spill]] (!%p4057_p5) }
 0x517   : > { %3213 = vst.msk [vmem:[#allocation3] sm:$0x3] %vm3212_vm2, %v3211_v48  ;;  %v7096_v60 = vld [vmem:[#allocation16_spill] sm:$0xff] (!%p4057_p5)  ;;  %3641 = vmatprep.subr.bf16.mxu1 (!%p4057_p5), %v4697_v39  ;;  %v5070_v52 = vmov (!%p4057_p5), 1983009808   ;;  %v7097_v30 = vld [vmem:[#allocation18_spill] sm:$0xff] (!%p4057_p5) }
 0x518   : > { %v3217_v4 = vmul.f32 (!%p4057_p5), 0.2, %v7096_v60  ;;  %v4699_v58 = vld [vmem:[#allocation12 + $0x104] ss:$8 sps:$4 sm:$0xff] (!%p4057_p5)   ;;  %v4702_v36 = vld [vmem:[#allocation12 + $0x100] ss:$8 sps:$4 sm:$0xff] (!%p4057_p5)   ;;  %v3222_v21 = vunpack.c.l.s4 (!%p4057_p5), %v5070_v52  ;;  %3642 = vmatpush1.bf16.msra.mxu1 (!%p4057_p5), %v4701_v23 }
 0x519   : > { %3682 = vmatprep.subr.bf16.mxu0 (!%p4057_p5), %v4699_v58  ;;  %v4703_v29 = vld [vmem:[#allocation12 + $0x14] ss:$8 sps:$4 sm:$0xff] (!%p4057_p5)   ;;  %v4707_v50 = vld [vmem:[#allocation12 + $0x10] ss:$8 sps:$4 sm:$0xff] (!%p4057_p5)   ;;  %v4709_v2 = vld [vmem:[#allocation12 + $0x24] ss:$8 sps:$4 sm:$0xff] (!%p4057_p5)  }
 0x51a   : > { %v3218_v32 = vmax.f32 (!%p4057_p5), %v7096_v60, %v3217_v4  ;;  %3683 = vmatpush1.bf16.msra.mxu0 (!%p4057_p5), %v4702_v36  ;;  %v4705_v26 = vld [vmem:[#allocation12 + $0x114] ss:$8 sps:$4 sm:$0xff] (!%p4057_p5)   ;;  %v3223_v9 = vunpack.c.0.s8 (!%p4057_p5), %v3222_v21  ;;  %3643 = vmatprep.subr.bf16.mxu1 (!%p4057_p5), %v4703_v29  ;;  %v4708_v55 = vld [vmem:[#allocation12 + $0x110] ss:$8 sps:$4 sm:$0xff] (!%p4057_p5)   ;;  %v4711_v31 = vld [vmem:[#allocation12 + $0x124] ss:$8 sps:$4 sm:$0xff] (!%p4057_p5)  }
 0x51b   : > { %3684 = vmatprep.subr.bf16.mxu0 (!%p4057_p5), %v4705_v26  ;;  %v4713_v51 = vld [vmem:[#allocation12 + $0x20] ss:$8 sps:$4 sm:$0xff] (!%p4057_p5)   ;;  %v4715_v14 = vld [vmem:[#allocation12 + $0x34] ss:$8 sps:$4 sm:$0xff] (!%p4057_p5)   ;;  %v4719_v59 = vld [vmem:[#allocation12 + $0x30] ss:$8 sps:$4 sm:$0xff] (!%p4057_p5)  }
 0x51c   : > { %v3220_v61 = vcombine.high (!%p4057_p5), %v3218_v32, %v3218_v32  ;;  %v3226_v45 = vsub.s32 (!%p4057_p5), %v3223_v9, %v7097_v30  ;;  %v4714_v17 = vld [vmem:[#allocation12 + $0x120] ss:$8 sps:$4 sm:$0xff] (!%p4057_p5)   ;;  %3644 = vmatpush1.bf16.msra.mxu1 (!%p4057_p5), %v4707_v50  ;;  %v4717_v35 = vld [vmem:[#allocation12 + $0x134] ss:$8 sps:$4 sm:$0xff] (!%p4057_p5)   ;;  %v4720_v22 = vld [vmem:[#allocation12 + $0x130] ss:$8 sps:$4 sm:$0xff] (!%p4057_p5)  }
 0x51d   : > { %3645 = vmatprep.subr.bf16.mxu1 %v4709_v2  ;;  %v4721_v19 = vld [vmem:[#allocation12 + $0x44] ss:$8 sps:$4 sm:$0xff]   ;;  %v4725_v44 = vld [vmem:[#allocation12 + $0x40] ss:$8 sps:$4 sm:$0xff]   ;;  %v4727_v25 = vld [vmem:[#allocation12 + $0x54] ss:$8 sps:$4 sm:$0xff]  }
 0x51e   : > { %3685 = vmatpush1.bf16.msra.mxu0 %v4708_v55  ;;  %v6791_v1 = vrot.slane %v3218_v32, %v3226_v45  ;;  %v6793_v15 = vrot.slane %v3220_v61, %v3226_v45  ;;  %v4723_v34 = vld [vmem:[#allocation12 + $0x144] ss:$8 sps:$4 sm:$0xff]   ;;  %v4726_v62 = vld [vmem:[#allocation12 + $0x140] ss:$8 sps:$4 sm:$0xff]   ;;  %v4729_v46 = vld [vmem:[#allocation12 + $0x154] ss:$8 sps:$4 sm:$0xff]  }
 0x51f   : > { %3686 = vmatprep.subr.bf16.mxu0 %v4711_v31  ;;  %v4731_v0 = vld [vmem:[#allocation12 + $0x50] ss:$8 sps:$4 sm:$0xff]   ;;  %v4733_v47 = vld [vmem:[#allocation12 + $0x64] ss:$8 sps:$4 sm:$0xff]   ;;  %v4737_v53 = vld [vmem:[#allocation12 + $0x60] ss:$8 sps:$4 sm:$0xff]  }
 0x520   : > { %v3235_v11 = vcombine.high %v6791_v1, %v6791_v1  ;;  %v3236_v56 = vcombine.high %v6793_v15, %v6793_v15  ;;  %3646 = vmatpush1.bf16.msra.mxu1 %v4713_v51  ;;  %v4732_v13 = vld [vmem:[#allocation12 + $0x150] ss:$8 sps:$4 sm:$0xff]   ;;  %v4735_v20 = vld [vmem:[#allocation12 + $0x164] ss:$8 sps:$4 sm:$0xff]   ;;  %v4738_v12 = vld [vmem:[#allocation12 + $0x160] ss:$8 sps:$4 sm:$0xff]   ;;  %v3241_v30 = vpack.c.bf16 %v6791_v1, %v6791_v1  ;;  %v3243_v45 = vpack.c.bf16 %v6793_v15, %v6793_v15 }
 0x521   : > { %3647 = vmatprep.subr.bf16.mxu1 %v4715_v14  ;;  %v4739_v33 = vld [vmem:[#allocation12 + $0x74] ss:$8 sps:$4 sm:$0xff]   ;;  %v4743_v49 = vld [vmem:[#allocation12 + $0x70] ss:$8 sps:$4 sm:$0xff]   ;;  %v4745_v5 = vld [vmem:[#allocation12 + $0x84] ss:$8 sps:$4 sm:$0xff]  }
 0x522   : > { %3687 = vmatpush1.bf16.msra.mxu0 %v4714_v17  ;;  %v3242_v7 = vpack.c.bf16 %v3235_v11, %v3235_v11  ;;  %v3244_v43 = vpack.c.bf16 %v3236_v56, %v3236_v56  ;;  %v4741_v28 = vld [vmem:[#allocation12 + $0x174] ss:$8 sps:$4 sm:$0xff]   ;;  %v4744_v57 = vld [vmem:[#allocation12 + $0x170] ss:$8 sps:$4 sm:$0xff]   ;;  %v4747_v27 = vld [vmem:[#allocation12 + $0x184] ss:$8 sps:$4 sm:$0xff]  }
 0x523   : > { %3688 = vmatprep.subr.bf16.mxu0 %v4717_v35  ;;  %v4749_v40 = vld [vmem:[#allocation12 + $0x80] ss:$8 sps:$4 sm:$0xff]   ;;  %v4751_v8 = vld [vmem:[#allocation12 + $0x94] ss:$8 sps:$4 sm:$0xff]   ;;  %v4755_v41 = vld [vmem:[#allocation12 + $0x90] ss:$8 sps:$4 sm:$0xff]  }
 0x524   : > { %3673 = vmatprep.mubr.bf16.mxu1 %v3242_v7  ;;  %3714 = vmatprep.mubr.bf16.mxu0 %v3244_v43  ;;  %v4750_v54 = vld [vmem:[#allocation12 + $0x180] ss:$8 sps:$4 sm:$0xff]   ;;  %v4753_v37 = vld [vmem:[#allocation12 + $0x194] ss:$8 sps:$4 sm:$0xff]   ;;  %v4756_v10 = vld [vmem:[#allocation12 + $0x190] ss:$8 sps:$4 sm:$0xff]  }
 0x525   : > { %3648 = vmatpush1.bf16.msra.mxu1 %v4719_v59  ;;  %v4757_v24 = vld [vmem:[#allocation12 + $0xa4] ss:$8 sps:$4 sm:$0xff]   ;;  %v4761_v63 = vld [vmem:[#allocation12 + $0xa0] ss:$8 sps:$4 sm:$0xff]   ;;  %v4763_v42 = vld [vmem:[#allocation12 + $0xb4] ss:$8 sps:$4 sm:$0xff]  }
 0x526   : > { %3689 = vmatpush1.bf16.msra.mxu0 %v4720_v22  ;;  %3649 = vmatprep.subr.bf16.mxu1 %v4721_v19  ;;  %v4759_v18 = vld [vmem:[#allocation12 + $0x1a4] ss:$8 sps:$4 sm:$0xff]   ;;  %v4762_v16 = vld [vmem:[#allocation12 + $0x1a0] ss:$8 sps:$4 sm:$0xff]   ;;  %v4765_v38 = vld [vmem:[#allocation12 + $0x1b4] ss:$8 sps:$4 sm:$0xff]  }
 0x527   : > { %3690 = vmatprep.subr.bf16.mxu0 %v4723_v34  ;;  %v4767_v3 = vld [vmem:[#allocation12 + $0xb0] ss:$8 sps:$4 sm:$0xff]   ;;  %v4769_v39 = vld [vmem:[#allocation12 + $0xc4] ss:$8 sps:$4 sm:$0xff]   ;;  %v4773_v4 = vld [vmem:[#allocation12 + $0xc0] ss:$8 sps:$4 sm:$0xff]  }
 0x528   : > { %v4768_v48 = vld [vmem:[#allocation12 + $0x1b0] ss:$8 sps:$4 sm:$0xff]   ;;  %v4771_v60 = vld [vmem:[#allocation12 + $0x1c4] ss:$8 sps:$4 sm:$0xff]   ;;  %v4774_v58 = vld [vmem:[#allocation12 + $0x1c0] ss:$8 sps:$4 sm:$0xff]  }
 0x529   : > { %3650 = vmatpush1.bf16.msra.mxu1 %v4725_v44  ;;  %v4775_v23 = vld [vmem:[#allocation12 + $0xd4] ss:$8 sps:$4 sm:$0xff]   ;;  %v4779_v32 = vld [vmem:[#allocation12 + $0xd0] ss:$8 sps:$4 sm:$0xff]   ;;  %v4781_v21 = vld [vmem:[#allocation12 + $0xe4] ss:$8 sps:$4 sm:$0xff]  }
 0x52a   : > { %3691 = vmatpush1.bf16.msra.mxu0 %v4726_v62  ;;  %3651 = vmatprep.subr.bf16.mxu1 %v4727_v25  ;;  %v4777_v36 = vld [vmem:[#allocation12 + $0x1d4] ss:$8 sps:$4 sm:$0xff]   ;;  %v4780_v52 = vld [vmem:[#allocation12 + $0x1d0] ss:$8 sps:$4 sm:$0xff]   ;;  %v4783_v29 = vld [vmem:[#allocation12 + $0x1e4] ss:$8 sps:$4 sm:$0xff]  }
 0x52b   : > { %3692 = vmatprep.subr.bf16.mxu0 %v4729_v46  ;;  %v4785_v26 = vld [vmem:[#allocation12 + $0xe0] ss:$8 sps:$4 sm:$0xff]   ;;  %v4787_v9 = vld [vmem:[#allocation12 + $0xf4] ss:$8 sps:$4 sm:$0xff]   ;;  %v4791_v55 = vld [vmem:[#allocation12 + $0xf0] ss:$8 sps:$4 sm:$0xff]  }
 0x52c   : > { %v4786_v50 = vld [vmem:[#allocation12 + $0x1e0] ss:$8 sps:$4 sm:$0xff]   ;;  %v4789_v61 = vld [vmem:[#allocation12 + $0x1f4] ss:$8 sps:$4 sm:$0xff]   ;;  %v4792_v2 = vld [vmem:[#allocation12 + $0x1f0] ss:$8 sps:$4 sm:$0xff]  }
 0x52d   : > { %3652 = vmatpush1.bf16.msra.mxu1 %v4731_v0  ;;  %v3309_v31 = vld [vmem:[%s6844_s6] sm:$0x3]  ;;  %v7098_v51 = vld [vmem:[#allocation19_spill] sm:$0xff] }
 0x52e   : > { %3693 = vmatpush1.bf16.msra.mxu0 %v4732_v13  ;;  %3653 = vmatprep.subr.bf16.mxu1 %v4733_v47  ;;  %v3314_v17 = vrot.slane %v3309_v31, %v7098_v51  ;;  %v7099_v14 = vld [vmem:[#allocation20_spill] sm:$0xff] }
 0x52f   : > { %3694 = vmatprep.subr.bf16.mxu0 %v4735_v20  ;;  %v3318_v35 = vrot.slane %v3309_v31, %v7099_v14  ;;  %v3727_v43 = vld [vmem:[%s6845_s7] sm:$0x3] }
 0x530   : > { %v3732_v0 = vrot.slane %v3727_v43, %v7098_v51  ;;  %v3736_v47 = vrot.slane %v3727_v43, %v7099_v14 }
 0x531   : > { %3654 = vmatpush1.bf16.msra.mxu1 %v4737_v53 }
 0x532   : > { %3695 = vmatpush1.bf16.msra.mxu0 %v4738_v12  ;;  %3655 = vmatprep.subr.bf16.mxu1 %v4739_v33 }
 0x533   : > { %3696 = vmatprep.subr.bf16.mxu0 %v4741_v28 }
 0x535   : > { %3656 = vmatpush1.bf16.msra.mxu1 %v4743_v49 }
 0x536   : > { %3697 = vmatpush1.bf16.msra.mxu0 %v4744_v57  ;;  %3657 = vmatprep.subr.bf16.mxu1 %v4745_v5 }
 0x537   : > { %3698 = vmatprep.subr.bf16.mxu0 %v4747_v27 }
 0x539   : > { %3658 = vmatpush1.bf16.msra.mxu1 %v4749_v40 }
 0x53a   : > { %3699 = vmatpush1.bf16.msra.mxu0 %v4750_v54  ;;  %3659 = vmatprep.subr.bf16.mxu1 %v4751_v8 }
 0x53b   : > { %3700 = vmatprep.subr.bf16.mxu0 %v4753_v37  ;;  %v3755_v37 = vld [vmem:[#allocation3] sm:$0x3] }
 0x53d   : > { %3660 = vmatpush1.bf16.msra.mxu1 %v4755_v41 }
 0x53e   : > { %3701 = vmatpush1.bf16.msra.mxu0 %v4756_v10  ;;  %3661 = vmatprep.subr.bf16.mxu1 %v4757_v24 }
 0x53f   : > { %3702 = vmatprep.subr.bf16.mxu0 %v4759_v18 }
 0x541   : > { %3662 = vmatpush1.bf16.msra.mxu1 %v4761_v63 }
 0x542   : > { %3703 = vmatpush1.bf16.msra.mxu0 %v4762_v16  ;;  %3663 = vmatprep.subr.bf16.mxu1 %v4763_v42 }
 0x543   : > { %3704 = vmatprep.subr.bf16.mxu0 %v4765_v38 }
 0x545   : > { %3664 = vmatpush1.bf16.msra.mxu1 %v4767_v3 }
 0x546   : > { %3705 = vmatpush1.bf16.msra.mxu0 %v4768_v48  ;;  %3665 = vmatprep.subr.bf16.mxu1 %v4769_v39 }
 0x547   : > { %3706 = vmatprep.subr.bf16.mxu0 %v4771_v60 }
 0x549   : > { %3666 = vmatpush1.bf16.msra.mxu1 %v4773_v4 }
 0x54a   : > { %3707 = vmatpush1.bf16.msra.mxu0 %v4774_v58  ;;  %3667 = vmatprep.subr.bf16.mxu1 %v4775_v23 }
 0x54b   : > { %3708 = vmatprep.subr.bf16.mxu0 %v4777_v36 }
 0x54d   : > { %3668 = vmatpush1.bf16.msra.mxu1 %v4779_v32 }
 0x54e   : > { %3709 = vmatpush1.bf16.msra.mxu0 %v4780_v52  ;;  %3669 = vmatprep.subr.bf16.mxu1 %v4781_v21 }
 0x54f   : > { %3710 = vmatprep.subr.bf16.mxu0 %v4783_v29 }
 0x551   : > { %3670 = vmatpush1.bf16.msra.mxu1 %v4785_v26 }
 0x552   : > { %3711 = vmatpush1.bf16.msra.mxu0 %v4786_v50  ;;  %3671 = vmatprep.subr.bf16.mxu1 %v4787_v9 }
 0x553   : > { %3712 = vmatprep.subr.bf16.mxu0 %v4789_v61 }
 0x555   : > { %3672 = vmatpush1.bf16.msra.mxu1 %v4791_v55 }
 0x556   : > { %3713 = vmatpush1.bf16.msra.mxu0 %v4792_v2 }
 0x558   : > { %3674 = vmatmul.mubr.bf16.vlgmr.msra.gmra.mrb[0].mxu1 %v3241_v30 }
 0x559   : > { %3715 = vmatmul.mubr.bf16.vlgmr.msra.gmra.mrb[0].mxu0 %v3243_v45 }
 0x62b   : > { %v3675_v11 = vpop.f32.mrb[0].mxu1 }
 0x62c   : > { %v3716_v56 = vpop.f32.mrb[0].mxu0  ;;  %v3676_v59 = vadd.f32 %v3675_v11, %v3314_v17  ;;  %v3677_v22 = vpop.f32.mrb[1].mxu1 }
 0x62d   : > { %v3718_v1 = vpop.f32.mrb[1].mxu0  ;;  %v3678_v19 = vadd.f32 %v3677_v22, %v3318_v35  ;;  %v3679_v7 = vpop.f32.mrb[2].mxu1 }
 0x62e   : > { %v3720_v15 = vpop.f32.mrb[2].mxu0  ;;  %v3717_v34 = vadd.f32 %v3716_v56, %v3676_v59  ;;  %v3680_v44 = vpop.f32.mrb[3].mxu1 }
 0x62f   : > { %v3721_v62 = vpop.f32.mrb[3].mxu0  ;;  %v3719_v25 = vadd.f32 %v3718_v1, %v3678_v19 }
 0x630   : > { %v3723_v46 = vmul.f32 0.2, %v3717_v34 }
 0x631   : > { %v3724_v13 = vmul.f32 0.2, %v3719_v25 }
 0x632   : > { %v3725_v20 = vmax.f32 %v3717_v34, %v3723_v46 }
 0x633   : > { %v3726_v53 = vmax.f32 %v3719_v25, %v3724_v13 }
 0x634   : > { %v3739_v12 = vmul.f32 %v3732_v0, %v3725_v20 }
 0x635   : > { %v3740_v33 = vmul.f32 %v3736_v47, %v3726_v53 }
 0x636   : > { %v3742_v28 = vsel %vm3205_vm1, %v3739_v12, 0.0 }
 0x637   : > { %v3743_v49 = vsel %vm3205_vm1, %v3740_v33, 0.0 }
 0x638   : > { %v3744_v57 = vadd.f32 %v3743_v49, %v3742_v28 }
 0x63a   : > { %3745 = vadd.xlane.f32.xlu0 %v3744_v57 }
 0x6c7   : > { %v3746_v5 = vpop.xlane.xlu0 %3745 }
 0x6c8   : > { %v3748_v27 = vadd.f32 %v3746_v5, %v6541_v6 }
 0x6ca   : > { %v4122_v40 = vmul.f32 -1.442695, %v3748_v27 }
 0x6cc   : > { %4793 = vpow2.f32 %v4122_v40 }
 0x6d6   : > { %v4794_v54 = vpop.eup %4793 }
 0x6d7   : > { %v3752_v8 = vadd.f32 1.0, %v4794_v54 }
 0x6d9   : > { %4795 = vrcp.f32 %v3752_v8 }
 0x6e3   : > { %v4796_v41 = vpop.eup %4795 }
 0x6e4   : > { %v3756_v10 = vsub.f32 %v4796_v41, %v3755_v37 }
 0x6e6   : > { %v3757_v24 = vadd.f32 %v3756_v10, %v3755_v37 }
 0x6e8   : > { %3758 = vst.msk [vmem:[%s7100_s10] sm:$0x3] %vm3212_vm2, %v3757_v24 }
 0x6e9 PF: > { %s25_s16 = sadd.s32 1, %s5025_s16   ;;  %s7101_s22 = smov %s5295_s11 }
 0x6ea   : > { %p22_p8 = scmp.ge.s32.totalorder %s25_s16, 6   ;;  %s7102_s11 = smov %s5009_s12 }
 0x6eb   : > { %s7103_s12 = smov %s5013_s13  ;;  %s7104_s13 = smov %s7101_s22 }
 0x6ec   : > { %s7105_s14 = smov %s5021_s15  ;;  %s7106_s15 = smov %s7108_s27 }
 0x6ed   :  { %24 = sbr.rel (!%p22_p8) target bundleno = 11 (0xb), region = 164 }
 0x6f4   :  { %3778 = vsyncpa [#allocation6], 1 }
 0x6f5   :  { %3780 = vsyncpa [#allocation6 + $0x1], 1 }
 0x6f6   :  { %3781 = vsyncpa [#allocation8], 1 }
 0x6f7   :  { %3782 = vsyncpa [#allocation11], 1 }

</bundles_post_ra>
